<compile_context>
chip_gen: v6e
topology: v6e:2x2x1
jax: 0.10.0
libtpu: 0.0.40
codegen_flags: <defaults>
</compile_context>

<pallas_src>
import numpy as np
import jax
import jax.numpy as jnp
from jax.experimental import pallas as pl
from jax.experimental.pallas import tpu as pltpu

# ----- model hyper-parameters (small, consistent with the module) -----
D_MODEL = 32
D_K = 8
D_V = 8
H = 4
D_FF = 64
N_LAYERS = 3      # N
LF = 1            # Lf
T_STEPS = 1       # T
PADDING_IDX = 0
SEQ = 8
BATCH = 2
EPS = 1e-5        # torch.nn.LayerNorm default
NEG_BIG = -1e30   # finite "-inf" for masked softmax

_PARAM_ORDER = ['wq', 'bq', 'wkv', 'bkv', 'wo', 'bo', 'ln_mha', 'ln_enc',
                'w1', 'b1', 'w2', 'b2', 'ln_ff', 'wg', 'bg']


# ---------------------------------------------------------------------------
# Pallas kernel: the ENTIRE MultiLevelEncoder layer stack for one batch element.
# ---------------------------------------------------------------------------
def _mle_kernel(
    slab_ref, mb_ref,
    wq_ref, bq_ref, wkv_ref, bkv_ref, wo_ref, bo_ref,
    ln_mha_ref, ln_enc_ref, w1_ref, b1_ref, w2_ref, b2_ref, ln_ff_ref,
    wg_ref, bg_ref,
    out_ref,
):
    slab = slab_ref[0]                    # (S, 4*D) lane-packed [input | pixel | detect | x_all]
    x1 = slab[:, 0 * D_MODEL:1 * D_MODEL]
    x2 = slab[:, 1 * D_MODEL:2 * D_MODEL]
    x3 = slab[:, 2 * D_MODEL:3 * D_MODEL]
    x_all = slab[:, 3 * D_MODEL:4 * D_MODEL]

    mb = mb_ref[0]                        # (3, S) additive key-padding bias rows
    bias_att = mb[0:1, :]                 # input mask
    bias_pix = mb[1:2, :]                 # pixel mask
    bias_det = mb[2:3, :]                 # detect mask
    bias_mix = bias_det                   # mix mask == detect mask in the reference module
    src_bias = (bias_att, bias_pix, bias_det, bias_mix)
    neg_row = jnp.full((1, SEQ), NEG_BIG, jnp.float32)

    scale = 1.0 / np.sqrt(D_K)
    hdk = H * D_K

    def ln(x, g, b):
        # single stacked XLU reduction: [sum(x); sum(x*x)] in one pass; var = E[x^2] - mu^2
        r = x.shape[0]
        y = jnp.concatenate([x, x * x], axis=0)
        s = jnp.sum(y, axis=-1, keepdims=True) * (1.0 / D_MODEL)
        mu, ex2 = s[:r], s[r:]
        var = ex2 - mu * mu
        return (x - mu) * jax.lax.rsqrt(var + EPS) * g + b

    def softmax_rows(s):
        m = jnp.max(s, axis=-1, keepdims=True)
        e = jnp.exp(s - m)
        # approx reciprocal (EUP): ~1e-3-level deviation vs exact division
        return e * pl.reciprocal(jnp.sum(e, axis=-1, keepdims=True), approx=True)

    def load_layer(l):                    # hoist per-layer weight loads
        return dict(
            wq=wq_ref[l], bq=bq_ref[l], wkv=wkv_ref[l], bkv=bkv_ref[l],
            wo=wo_ref[l], bo=bo_ref[l], ln_mha=ln_mha_ref[l], ln_enc=ln_enc_ref[l],
            w1=w1_ref[l], b1=b1_ref[l], w2=w2_ref[l], b2=b2_ref[l],
            ln_ff=ln_ff_ref[l])

    def block_bias(stream_src, n_src):
        # Block-structured additive bias (n_streams*S, n_src*S): each query stream attends
        # only to its own KV source (off-block entries get NEG_BIG -> exact 0 after softmax).
        rows = []
        for src in stream_src:
            cols = [src_bias[j] if j == src else neg_row for j in range(n_src)]
            rows.append(jnp.broadcast_to(jnp.concatenate(cols, axis=-1), (SEQ, n_src * SEQ)))
        return jnp.concatenate(rows, axis=0)

    def stack_ln(gb3, ms, idx):           # gb3: (3, 2, D) m-indexed LN params -> (len(ms)*S, D)
        return jnp.concatenate(
            [jnp.broadcast_to(gb3[m, idx:idx + 1, :], (SEQ, D_MODEL)) for m in ms], axis=0)

    def enc_block(lw, q, kv, bias, g_enc, b_enc, g_ff, b_ff):
        # q:   (Rq, D) stacked query streams
        # kv:  (Rk, D) stacked key/value sources
        # bias: additive attention bias broadcastable to (Rq, Rk)
        # g_*/b_*: LayerNorm gamma/beta broadcastable to (Rq, D) (per-row when streams stacked)
        Q = jnp.dot(q, lw['wq'], preferred_element_type=jnp.float32) + lw['bq']     # (Rq, H*dk)
        KV = jnp.dot(kv, lw['wkv'], preferred_element_type=jnp.float32) + lw['bkv'] # (Rk, H*(dk+dv))
        K = KV[:, :hdk]
        V = KV[:, hdk:]
        acc = None
        for hh in range(H):
            qh = Q[:, hh * D_K:(hh + 1) * D_K]
            kh = K[:, hh * D_K:(hh + 1) * D_K]
            vh = V[:, hh * D_V:(hh + 1) * D_V]
            s = jax.lax.dot_general(qh, kh, (((1,), (1,)), ((), ())),
                                    preferred_element_type=jnp.float32) * scale + bias
            p = softmax_rows(s)                                          # (Rq, Rk)
            ctx = jnp.dot(p, vh, preferred_element_type=jnp.float32)     # (Rq, dv)
            contrib = jnp.dot(ctx, lw['wo'][hh * D_V:(hh + 1) * D_V, :],
                              preferred_element_type=jnp.float32)        # accumulate through wo
            acc = contrib if acc is None else acc + contrib
        mha = acc + lw['bo']
        # MultiHeadAttention: layer_norm(queries + dropout(attn_out))   (dropout = identity)
        att = ln(q + mha, lw['ln_mha'][0:1, :], lw['ln_mha'][1:2, :])
        # EncoderLayer: lnorm{,1,2}(queries + dropout(att)) selected by m (per-row stacked)
        att = ln(q + att, g_enc, b_enc)
        # PositionWiseFeedForward: layer_norm_m(att + fc2(relu(fc1(att))))
        h1 = jnp.maximum(
            jnp.dot(att, lw['w1'], preferred_element_type=jnp.float32) + lw['b1'], 0.0)
        h2 = jnp.dot(h1, lw['w2'], preferred_element_type=jnp.float32) + lw['b2']
        return ln(att + h2, g_ff, b_ff)

    out, out1, out2 = x1, x2, x3
    xx1, xx2, xx3 = x1, x2, x3

    for i in range(N_LAYERS):
        lw = load_layer(i)
        if i < LF:
            for t in range(T_STEPS):
                if t == T_STEPS - 1:
                    # Last self-attention step fused with the (independent) mixed-stream
                    # step: 6 stacked query streams, 4 stacked KV sources (x_all K/V
                    # projected once, shared by the 3 mixed streams).
                    q6 = jnp.concatenate([out, out1, out2, xx1, xx2, xx3], axis=0)   # (6S, D)
                    kv4 = jnp.concatenate([out, out1, out2, x_all], axis=0)          # (4S, D)
                    bias6 = block_bias((0, 1, 2, 3, 3, 3), 4)
                    ms6 = (0, 1, 2, 0, 0, 0)
                    res = enc_block(lw, q6, kv4, bias6,
                                    stack_ln(lw['ln_enc'], ms6, 0),
                                    stack_ln(lw['ln_enc'], ms6, 1),
                                    stack_ln(lw['ln_ff'], ms6, 0),
                                    stack_ln(lw['ln_ff'], ms6, 1))
                    out = res[0 * SEQ:1 * SEQ]
                    out1 = res[1 * SEQ:2 * SEQ]
                    out2 = res[2 * SEQ:3 * SEQ]
                    xx1 = res[3 * SEQ:4 * SEQ]
                    xx2 = res[4 * SEQ:5 * SEQ]
                    xx3 = res[5 * SEQ:6 * SEQ]
                else:
                    # intermediate T steps (only reached if T_STEPS > 1): 3 self streams
                    q3 = jnp.concatenate([out, out1, out2], axis=0)
                    bias3 = block_bias((0, 1, 2), 3)
                    ms3 = (0, 1, 2)
                    res = enc_block(lw, q3, q3, bias3,
                                    stack_ln(lw['ln_enc'], ms3, 0),
                                    stack_ln(lw['ln_enc'], ms3, 1),
                                    stack_ln(lw['ln_ff'], ms3, 0),
                                    stack_ln(lw['ln_ff'], ms3, 1))
                    out = res[0 * SEQ:1 * SEQ]
                    out1 = res[1 * SEQ:2 * SEQ]
                    out2 = res[2 * SEQ:3 * SEQ]
        elif i == LF:
            # fusion gate: softmax(Linear(cat([out, out1, out2], -1)))
            glog = (jnp.dot(out, wg_ref[0], preferred_element_type=jnp.float32)
                    + jnp.dot(out1, wg_ref[1], preferred_element_type=jnp.float32)
                    + jnp.dot(out2, wg_ref[2], preferred_element_type=jnp.float32)
                    + bg_ref[...])                                       # (S, 3)
            gate = softmax_rows(glog)
            feat1 = gate[:, 0:1] * out + gate[:, 1:2] * out1 + gate[:, 2:3] * out2
            feat2 = feat1 + x_all
            out = enc_block(lw, feat2, feat2, bias_att,
                            lw['ln_enc'][0, 0:1, :], lw['ln_enc'][0, 1:2, :],
                            lw['ln_ff'][0, 0:1, :], lw['ln_ff'][0, 1:2, :])
        else:
            out = enc_block(lw, out, out, bias_att,
                            lw['ln_enc'][0, 0:1, :], lw['ln_enc'][0, 1:2, :],
                            lw['ln_ff'][0, 0:1, :], lw['ln_ff'][0, 1:2, :])

    # single lane-dense 128-wide store: [out | x1 | x2 | x3]
    out_ref[0] = jnp.concatenate([out, xx1, xx2, xx3], axis=-1)


def _full_spec(shape):
    nd = len(shape)
    return pl.BlockSpec(shape, lambda b, _nd=nd: (0,) * _nd)


# ---------------------------------------------------------------------------
# Plain-JAX glue: projection, contrastive criterion, mask
# ---------------------------------------------------------------------------
def _negative_mask(batch_size):
    m = np.ones((batch_size, 2 * batch_size), dtype=bool)
    for i in range(batch_size):
        m[i, i] = False
        m[i, i + batch_size] = False
    return np.concatenate([m, m], axis=0)


def criterion(out_1, out_2, tau_plus, beta, temperature):
    bs = out_1.shape[0]
    out = jnp.concatenate([out_1, out_2], axis=0)
    neg = jnp.exp(out @ out.T / temperature)
    mask = _negative_mask(bs)
    idx = np.nonzero(mask.reshape(-1))[0]            # static -> masked_select order
    neg = neg.reshape(-1)[idx].reshape(2 * bs, -1)
    pos = jnp.exp(jnp.sum(out_1 * out_2, axis=-1) / temperature)
    pos = jnp.concatenate([pos, pos], axis=0)
    Nn = bs * 2 - 2
    imp = jnp.exp(beta * jnp.log(neg))
    reweight_neg = (imp * neg).sum(axis=-1) / imp.mean(axis=-1)
    Ng = (-tau_plus * Nn * pos + reweight_neg) / (1.0 - tau_plus)
    Ng = jnp.maximum(Ng, Nn * np.e ** (-1.0 / temperature))
    return jnp.mean(-jnp.log(pos / (pos + Ng)))


def multi_level_encoder_forward(params, x_input, pixel, detect):
    B, S, D = x_input.shape

    # additive key-padding bias (-1e30 = padded key); the reference module literally masks
    # on torch.sum(x, -1) == padding_idx, so this is faithful.
    def pad_bias(x):
        return jnp.where(jnp.sum(x, -1) == PADDING_IDX, NEG_BIG, 0.0).astype(jnp.float32)

    maskb = jnp.stack([pad_bias(x_input), pad_bias(pixel), pad_bias(detect)], axis=1)  # (B,3,S)
    # lane-dense packed activations: [input | pixel | detect | x_all] -> (B, S, 4*D) = (2, 8, 128)
    slab = jnp.concatenate([x_input, pixel, detect, x_input + pixel + detect], axis=-1)

    pvals = [params[k] for k in _PARAM_ORDER]

    slab_spec = pl.BlockSpec((1, S, 4 * D), lambda b: (b, 0, 0))
    mask_spec = pl.BlockSpec((1, 3, S), lambda b: (b, 0, 0))
    in_specs = [slab_spec, mask_spec] + [_full_spec(v.shape) for v in pvals]

    packed = pl.pallas_call(
        _mle_kernel,
        out_shape=jax.ShapeDtypeStruct((B, S, 4 * D), jnp.float32),
        grid=(B,),
        in_specs=in_specs,
        out_specs=pl.BlockSpec((1, S, 4 * D), lambda b: (b, 0, 0)),
        compiler_params=pltpu.CompilerParams(dimension_semantics=("parallel",)),
    )(slab, maskb, *pvals)

    out = packed[..., 0 * D:1 * D]
    x1o = packed[..., 1 * D:2 * D]
    x2o = packed[..., 2 * D:3 * D]
    x3o = packed[..., 3 * D:4 * D]

    def proj_norm(x):
        z = x.mean(1) @ params['wp'] + params['bp']
        n = jnp.maximum(jnp.linalg.norm(z, axis=-1, keepdims=True), 1e-12)
        return z / n

    z1, z2, z3 = proj_norm(x1o), proj_norm(x2o), proj_norm(x3o)
    temp = params['temperature']
    contrastive_loss = (criterion(z1, z2, 0.1, 0.5, temp)
                        + criterion(z1, z3, 0.1, 0.5, temp)
                        + criterion(z2, z3, 0.1, 0.5, temp)) / 3.0

    attention_mask_bool = (jnp.sum(x_input, -1) == PADDING_IDX)[:, None, None, :]
    return out, attention_mask_bool, contrastive_loss


# ---------------------------------------------------------------------------
# Deterministic synthetic parameter initialization (mirrors module shapes).
# Per-head projections are stored in fused nn.Linear form: (d_model, h*d_k).
# ---------------------------------------------------------------------------
def init_params(key):
    keys = jax.random.split(key, 12)

    def lin(k, fan_in, shape):
        lim = 1.0 / np.sqrt(fan_in)
        return jax.random.uniform(k, shape, jnp.float32, -lim, lim)

    L = N_LAYERS
    HDK, HDV = H * D_K, H * D_V
    params = {
        'wq':  lin(keys[0], D_MODEL, (L, D_MODEL, HDK)),
        'bq':  lin(keys[1], D_MODEL, (L, 1, HDK)),
        'wkv': lin(keys[2], D_MODEL, (L, D_MODEL, HDK + HDV)),     # [Wk | Wv]
        'bkv': lin(keys[3], D_MODEL, (L, 1, HDK + HDV)),
        'wo':  lin(keys[4], HDV, (L, HDV, D_MODEL)),
        'bo':  lin(keys[5], HDV, (L, 1, D_MODEL)),
        'w1':  lin(keys[6], D_MODEL, (L, D_MODEL, D_FF)),
        'b1':  lin(keys[7], D_MODEL, (L, 1, D_FF)),
        'w2':  lin(keys[8], D_FF, (L, D_FF, D_MODEL)),
        'b2':  lin(keys[9], D_FF, (L, 1, D_MODEL)),
        # LayerNorms: [gamma; beta] rows; enc/ff ones are indexed by m in {0,1,2}
        'ln_mha': jnp.stack([jnp.ones((L, D_MODEL), jnp.float32),
                             jnp.zeros((L, D_MODEL), jnp.float32)], axis=1),       # (L,2,D)
        'ln_enc': jnp.stack([jnp.ones((L, 3, D_MODEL), jnp.float32),
                             jnp.zeros((L, 3, D_MODEL), jnp.float32)], axis=2),    # (L,3,2,D)
        'ln_ff':  jnp.stack([jnp.ones((L, 3, D_MODEL), jnp.float32),
                             jnp.zeros((L, 3, D_MODEL), jnp.float32)], axis=2),    # (L,3,2,D)
    }
    lim_g = np.sqrt(6.0 / (3 * D_MODEL + 3))                       # xavier_uniform
    params['wg'] = jax.random.uniform(keys[10], (3, D_MODEL, 3), jnp.float32, -lim_g, lim_g)
    params['bg'] = jnp.zeros((1, 3), jnp.float32)
    lim_p = 1.0 / np.sqrt(D_MODEL)
    params['wp'] = jax.random.uniform(keys[11], (D_MODEL, 64), jnp.float32, -lim_p, lim_p)
    params['bp'] = jnp.zeros((64,), jnp.float32)
    params['temperature'] = jnp.array([1.0], jnp.float32)
    # note: self.pooler is never used in forward -> omitted
    return params


if __name__ == "__main__":
    key = jax.random.PRNGKey(0)
    k1, k2, k3, kparams = jax.random.split(key, 4)
    x_input = jax.random.normal(k1, (BATCH, SEQ, D_MODEL), jnp.float32)
    pixel = jax.random.normal(k2, (BATCH, SEQ, D_MODEL), jnp.float32)
    detect = jax.random.normal(k3, (BATCH, SEQ, D_MODEL), jnp.float32)
    params = init_params(kparams)

    fwd = jax.jit(multi_level_encoder_forward)
    out, attn_mask, contrastive_loss = fwd(params, x_input, pixel, detect)
    jax.block_until_ready((out, attn_mask, contrastive_loss))
    assert out.shape == (BATCH, SEQ, D_MODEL)
    assert attn_mask.shape == (BATCH, 1, 1, SEQ)
    assert np.isfinite(np.asarray(out)).all()
    assert np.isfinite(float(contrastive_loss))
    print("KERNEL_OK")
</pallas_src>

<mosaic_0001>
module attributes {stable_mosaic.version = 11 : i64} {
  func.func @_mle_kernel(%arg0: i32, %arg1: memref<1x8x128xf32, #tpu.memory_space<vmem>>, %arg2: memref<1x3x8xf32, #tpu.memory_space<vmem>>, %arg3: memref<3x32x32xf32, #tpu.memory_space<vmem>>, %arg4: memref<3x1x32xf32, #tpu.memory_space<vmem>>, %arg5: memref<3x32x64xf32, #tpu.memory_space<vmem>>, %arg6: memref<3x1x64xf32, #tpu.memory_space<vmem>>, %arg7: memref<3x32x32xf32, #tpu.memory_space<vmem>>, %arg8: memref<3x1x32xf32, #tpu.memory_space<vmem>>, %arg9: memref<3x2x32xf32, #tpu.memory_space<vmem>>, %arg10: memref<3x3x2x32xf32, #tpu.memory_space<vmem>>, %arg11: memref<3x32x64xf32, #tpu.memory_space<vmem>>, %arg12: memref<3x1x64xf32, #tpu.memory_space<vmem>>, %arg13: memref<3x64x32xf32, #tpu.memory_space<vmem>>, %arg14: memref<3x1x32xf32, #tpu.memory_space<vmem>>, %arg15: memref<3x3x2x32xf32, #tpu.memory_space<vmem>>, %arg16: memref<3x32x3xf32, #tpu.memory_space<vmem>>, %arg17: memref<1x3xf32, #tpu.memory_space<vmem>>, %arg18: memref<1x8x128xf32, #tpu.memory_space<vmem>>) attributes {dimension_semantics = [#tpu.dimension_semantics<parallel>], iteration_bounds = array<i64: 2>, scalar_prefetch = 0 : i64, scratch_operands = 0 : i64, tpu.core_type = #tpu.core_type<tc>, window_params = [{transform_indices = @transform_0, window_bounds = array<i64: 1, 8, 128>}, {transform_indices = @transform_1, window_bounds = array<i64: 1, 3, 8>}, {pipeline_mode = #tpu.pipeline_mode<synchronous>, transform_indices = @transform_2, window_bounds = array<i64: 3, 32, 32>}, {pipeline_mode = #tpu.pipeline_mode<synchronous>, transform_indices = @transform_3, window_bounds = array<i64: 3, 1, 32>}, {pipeline_mode = #tpu.pipeline_mode<synchronous>, transform_indices = @transform_4, window_bounds = array<i64: 3, 32, 64>}, {pipeline_mode = #tpu.pipeline_mode<synchronous>, transform_indices = @transform_5, window_bounds = array<i64: 3, 1, 64>}, {pipeline_mode = #tpu.pipeline_mode<synchronous>, transform_indices = @transform_6, window_bounds = array<i64: 3, 32, 32>}, {pipeline_mode = #tpu.pipeline_mode<synchronous>, transform_indices = @transform_7, window_bounds = array<i64: 3, 1, 32>}, {pipeline_mode = #tpu.pipeline_mode<synchronous>, transform_indices = @transform_8, window_bounds = array<i64: 3, 2, 32>}, {pipeline_mode = #tpu.pipeline_mode<synchronous>, transform_indices = @transform_9, window_bounds = array<i64: 3, 3, 2, 32>}, {pipeline_mode = #tpu.pipeline_mode<synchronous>, transform_indices = @transform_10, window_bounds = array<i64: 3, 32, 64>}, {pipeline_mode = #tpu.pipeline_mode<synchronous>, transform_indices = @transform_11, window_bounds = array<i64: 3, 1, 64>}, {pipeline_mode = #tpu.pipeline_mode<synchronous>, transform_indices = @transform_12, window_bounds = array<i64: 3, 64, 32>}, {pipeline_mode = #tpu.pipeline_mode<synchronous>, transform_indices = @transform_13, window_bounds = array<i64: 3, 1, 32>}, {pipeline_mode = #tpu.pipeline_mode<synchronous>, transform_indices = @transform_14, window_bounds = array<i64: 3, 3, 2, 32>}, {pipeline_mode = #tpu.pipeline_mode<synchronous>, transform_indices = @transform_15, window_bounds = array<i64: 3, 32, 3>}, {pipeline_mode = #tpu.pipeline_mode<synchronous>, transform_indices = @transform_16, window_bounds = array<i64: 1, 3>}, {transform_indices = @transform_17, window_bounds = array<i64: 1, 8, 128>}]} {
    %c0 = arith.constant 0 : index
    %c0_0 = arith.constant 0 : index
    %c0_1 = arith.constant 0 : index
    %0 = vector.load %arg1[%c0, %c0_0, %c0_1] : memref<1x8x128xf32, #tpu.memory_space<vmem>>, vector<1x8x128xf32>
    %1 = vector.shape_cast %0 : vector<1x8x128xf32> to vector<8x128xf32>
    %2 = vector.extract_strided_slice %1 {offsets = [0, 0], sizes = [8, 32], strides = [1, 1]} : vector<8x128xf32> to vector<8x32xf32>
    %3 = vector.extract_strided_slice %1 {offsets = [0, 32], sizes = [8, 32], strides = [1, 1]} : vector<8x128xf32> to vector<8x32xf32>
    %4 = vector.extract_strided_slice %1 {offsets = [0, 64], sizes = [8, 32], strides = [1, 1]} : vector<8x128xf32> to vector<8x32xf32>
    %5 = vector.extract_strided_slice %1 {offsets = [0, 96], sizes = [8, 32], strides = [1, 1]} : vector<8x128xf32> to vector<8x32xf32>
    %c0_2 = arith.constant 0 : index
    %c0_3 = arith.constant 0 : index
    %c0_4 = arith.constant 0 : index
    %6 = vector.load %arg2[%c0_2, %c0_3, %c0_4] : memref<1x3x8xf32, #tpu.memory_space<vmem>>, vector<1x3x8xf32>
    %7 = vector.shape_cast %6 : vector<1x3x8xf32> to vector<3x8xf32>
    %8 = vector.extract_strided_slice %7 {offsets = [0, 0], sizes = [1, 8], strides = [1, 1]} : vector<3x8xf32> to vector<1x8xf32>
    %9 = vector.extract_strided_slice %7 {offsets = [1, 0], sizes = [1, 8], strides = [1, 1]} : vector<3x8xf32> to vector<1x8xf32>
    %10 = vector.extract_strided_slice %7 {offsets = [2, 0], sizes = [1, 8], strides = [1, 1]} : vector<3x8xf32> to vector<1x8xf32>
    %cst = arith.constant -1.000000e+30 : f32
    %11 = vector.broadcast %cst : f32 to vector<1x8xf32>
    %c0_5 = arith.constant 0 : index
    %c0_6 = arith.constant 0 : index
    %c0_7 = arith.constant 0 : index
    %12 = vector.load %arg3[%c0_5, %c0_6, %c0_7] : memref<3x32x32xf32, #tpu.memory_space<vmem>>, vector<1x32x32xf32>
    %13 = vector.shape_cast %12 : vector<1x32x32xf32> to vector<32x32xf32>
    %c0_8 = arith.constant 0 : index
    %c0_9 = arith.constant 0 : index
    %c0_10 = arith.constant 0 : index
    %14 = vector.load %arg4[%c0_8, %c0_9, %c0_10] : memref<3x1x32xf32, #tpu.memory_space<vmem>>, vector<1x1x32xf32>
    %15 = vector.shape_cast %14 : vector<1x1x32xf32> to vector<1x32xf32>
    %c0_11 = arith.constant 0 : index
    %c0_12 = arith.constant 0 : index
    %c0_13 = arith.constant 0 : index
    %16 = vector.load %arg5[%c0_11, %c0_12, %c0_13] : memref<3x32x64xf32, #tpu.memory_space<vmem>>, vector<1x32x64xf32>
    %17 = vector.shape_cast %16 : vector<1x32x64xf32> to vector<32x64xf32>
    %c0_14 = arith.constant 0 : index
    %c0_15 = arith.constant 0 : index
    %c0_16 = arith.constant 0 : index
    %18 = vector.load %arg6[%c0_14, %c0_15, %c0_16] : memref<3x1x64xf32, #tpu.memory_space<vmem>>, vector<1x1x64xf32>
    %19 = vector.shape_cast %18 : vector<1x1x64xf32> to vector<1x64xf32>
    %c0_17 = arith.constant 0 : index
    %c0_18 = arith.constant 0 : index
    %c0_19 = arith.constant 0 : index
    %20 = vector.load %arg7[%c0_17, %c0_18, %c0_19] : memref<3x32x32xf32, #tpu.memory_space<vmem>>, vector<1x32x32xf32>
    %21 = vector.shape_cast %20 : vector<1x32x32xf32> to vector<32x32xf32>
    %c0_20 = arith.constant 0 : index
    %c0_21 = arith.constant 0 : index
    %c0_22 = arith.constant 0 : index
    %22 = vector.load %arg8[%c0_20, %c0_21, %c0_22] : memref<3x1x32xf32, #tpu.memory_space<vmem>>, vector<1x1x32xf32>
    %23 = vector.shape_cast %22 : vector<1x1x32xf32> to vector<1x32xf32>
    %c0_23 = arith.constant 0 : index
    %c0_24 = arith.constant 0 : index
    %c0_25 = arith.constant 0 : index
    %24 = vector.load %arg9[%c0_23, %c0_24, %c0_25] : memref<3x2x32xf32, #tpu.memory_space<vmem>>, vector<1x2x32xf32>
    %25 = vector.shape_cast %24 : vector<1x2x32xf32> to vector<2x32xf32>
    %c0_26 = arith.constant 0 : index
    %c0_27 = arith.constant 0 : index
    %c0_28 = arith.constant 0 : index
    %c0_29 = arith.constant 0 : index
    %26 = vector.load %arg10[%c0_26, %c0_27, %c0_28, %c0_29] : memref<3x3x2x32xf32, #tpu.memory_space<vmem>>, vector<1x3x2x32xf32>
    %27 = vector.shape_cast %26 : vector<1x3x2x32xf32> to vector<3x2x32xf32>
    %c0_30 = arith.constant 0 : index
    %c0_31 = arith.constant 0 : index
    %c0_32 = arith.constant 0 : index
    %28 = vector.load %arg11[%c0_30, %c0_31, %c0_32] : memref<3x32x64xf32, #tpu.memory_space<vmem>>, vector<1x32x64xf32>
    %29 = vector.shape_cast %28 : vector<1x32x64xf32> to vector<32x64xf32>
    %c0_33 = arith.constant 0 : index
    %c0_34 = arith.constant 0 : index
    %c0_35 = arith.constant 0 : index
    %30 = vector.load %arg12[%c0_33, %c0_34, %c0_35] : memref<3x1x64xf32, #tpu.memory_space<vmem>>, vector<1x1x64xf32>
    %31 = vector.shape_cast %30 : vector<1x1x64xf32> to vector<1x64xf32>
    %c0_36 = arith.constant 0 : index
    %c0_37 = arith.constant 0 : index
    %c0_38 = arith.constant 0 : index
    %32 = vector.load %arg13[%c0_36, %c0_37, %c0_38] : memref<3x64x32xf32, #tpu.memory_space<vmem>>, vector<1x64x32xf32>
    %33 = vector.shape_cast %32 : vector<1x64x32xf32> to vector<64x32xf32>
    %c0_39 = arith.constant 0 : index
    %c0_40 = arith.constant 0 : index
    %c0_41 = arith.constant 0 : index
    %34 = vector.load %arg14[%c0_39, %c0_40, %c0_41] : memref<3x1x32xf32, #tpu.memory_space<vmem>>, vector<1x1x32xf32>
    %35 = vector.shape_cast %34 : vector<1x1x32xf32> to vector<1x32xf32>
    %c0_42 = arith.constant 0 : index
    %c0_43 = arith.constant 0 : index
    %c0_44 = arith.constant 0 : index
    %c0_45 = arith.constant 0 : index
    %36 = vector.load %arg15[%c0_42, %c0_43, %c0_44, %c0_45] : memref<3x3x2x32xf32, #tpu.memory_space<vmem>>, vector<1x3x2x32xf32>
    %37 = vector.shape_cast %36 : vector<1x3x2x32xf32> to vector<3x2x32xf32>
    %38 = tpu.concatenate %2, %3, %4, %2, %3, %4 in 0 : vector<8x32xf32>, vector<8x32xf32>, vector<8x32xf32>, vector<8x32xf32>, vector<8x32xf32>, vector<8x32xf32> -> vector<48x32xf32>
    %39 = tpu.concatenate %2, %3, %4, %5 in 0 : vector<8x32xf32>, vector<8x32xf32>, vector<8x32xf32>, vector<8x32xf32> -> vector<32x32xf32>
    %40 = tpu.concatenate %8, %11, %11, %11 in 1 : vector<1x8xf32>, vector<1x8xf32>, vector<1x8xf32>, vector<1x8xf32> -> vector<1x32xf32>
    %41 = vector.shape_cast %40 : vector<1x32xf32> to vector<1x32xf32>
    %42 = vector.broadcast %41 : vector<1x32xf32> to vector<8x32xf32>
    %43 = tpu.concatenate %11, %9, %11, %11 in 1 : vector<1x8xf32>, vector<1x8xf32>, vector<1x8xf32>, vector<1x8xf32> -> vector<1x32xf32>
    %44 = vector.shape_cast %43 : vector<1x32xf32> to vector<1x32xf32>
    %45 = vector.broadcast %44 : vector<1x32xf32> to vector<8x32xf32>
    %46 = tpu.concatenate %11, %11, %10, %11 in 1 : vector<1x8xf32>, vector<1x8xf32>, vector<1x8xf32>, vector<1x8xf32> -> vector<1x32xf32>
    %47 = vector.shape_cast %46 : vector<1x32xf32> to vector<1x32xf32>
    %48 = vector.broadcast %47 : vector<1x32xf32> to vector<8x32xf32>
    %49 = tpu.concatenate %11, %11, %11, %10 in 1 : vector<1x8xf32>, vector<1x8xf32>, vector<1x8xf32>, vector<1x8xf32> -> vector<1x32xf32>
    %50 = vector.shape_cast %49 : vector<1x32xf32> to vector<1x32xf32>
    %51 = vector.broadcast %50 : vector<1x32xf32> to vector<8x32xf32>
    %52 = tpu.concatenate %11, %11, %11, %10 in 1 : vector<1x8xf32>, vector<1x8xf32>, vector<1x8xf32>, vector<1x8xf32> -> vector<1x32xf32>
    %53 = vector.shape_cast %52 : vector<1x32xf32> to vector<1x32xf32>
    %54 = vector.broadcast %53 : vector<1x32xf32> to vector<8x32xf32>
    %55 = tpu.concatenate %11, %11, %11, %10 in 1 : vector<1x8xf32>, vector<1x8xf32>, vector<1x8xf32>, vector<1x8xf32> -> vector<1x32xf32>
    %56 = vector.shape_cast %55 : vector<1x32xf32> to vector<1x32xf32>
    %57 = vector.broadcast %56 : vector<1x32xf32> to vector<8x32xf32>
    %58 = tpu.concatenate %42, %45, %48, %51, %54, %57 in 0 : vector<8x32xf32>, vector<8x32xf32>, vector<8x32xf32>, vector<8x32xf32>, vector<8x32xf32>, vector<8x32xf32> -> vector<48x32xf32>
    %59 = vector.extract_strided_slice %27 {offsets = [0, 0, 0], sizes = [1, 1, 32], strides = [1, 1, 1]} : vector<3x2x32xf32> to vector<1x1x32xf32>
    %60 = vector.shape_cast %59 : vector<1x1x32xf32> to vector<1x32xf32>
    %61 = vector.shape_cast %60 : vector<1x32xf32> to vector<1x32xf32>
    %62 = vector.broadcast %61 : vector<1x32xf32> to vector<8x32xf32>
    %63 = vector.extract_strided_slice %27 {offsets = [1, 0, 0], sizes = [1, 1, 32], strides = [1, 1, 1]} : vector<3x2x32xf32> to vector<1x1x32xf32>
    %64 = vector.shape_cast %63 : vector<1x1x32xf32> to vector<1x32xf32>
    %65 = vector.shape_cast %64 : vector<1x32xf32> to vector<1x32xf32>
    %66 = vector.broadcast %65 : vector<1x32xf32> to vector<8x32xf32>
    %67 = vector.extract_strided_slice %27 {offsets = [2, 0, 0], sizes = [1, 1, 32], strides = [1, 1, 1]} : vector<3x2x32xf32> to vector<1x1x32xf32>
    %68 = vector.shape_cast %67 : vector<1x1x32xf32> to vector<1x32xf32>
    %69 = vector.shape_cast %68 : vector<1x32xf32> to vector<1x32xf32>
    %70 = vector.broadcast %69 : vector<1x32xf32> to vector<8x32xf32>
    %71 = vector.extract_strided_slice %27 {offsets = [0, 0, 0], sizes = [1, 1, 32], strides = [1, 1, 1]} : vector<3x2x32xf32> to vector<1x1x32xf32>
    %72 = vector.shape_cast %71 : vector<1x1x32xf32> to vector<1x32xf32>
    %73 = vector.shape_cast %72 : vector<1x32xf32> to vector<1x32xf32>
    %74 = vector.broadcast %73 : vector<1x32xf32> to vector<8x32xf32>
    %75 = vector.extract_strided_slice %27 {offsets = [0, 0, 0], sizes = [1, 1, 32], strides = [1, 1, 1]} : vector<3x2x32xf32> to vector<1x1x32xf32>
    %76 = vector.shape_cast %75 : vector<1x1x32xf32> to vector<1x32xf32>
    %77 = vector.shape_cast %76 : vector<1x32xf32> to vector<1x32xf32>
    %78 = vector.broadcast %77 : vector<1x32xf32> to vector<8x32xf32>
    %79 = vector.extract_strided_slice %27 {offsets = [0, 0, 0], sizes = [1, 1, 32], strides = [1, 1, 1]} : vector<3x2x32xf32> to vector<1x1x32xf32>
    %80 = vector.shape_cast %79 : vector<1x1x32xf32> to vector<1x32xf32>
    %81 = vector.shape_cast %80 : vector<1x32xf32> to vector<1x32xf32>
    %82 = vector.broadcast %81 : vector<1x32xf32> to vector<8x32xf32>
    %83 = tpu.concatenate %62, %66, %70, %74, %78, %82 in 0 : vector<8x32xf32>, vector<8x32xf32>, vector<8x32xf32>, vector<8x32xf32>, vector<8x32xf32>, vector<8x32xf32> -> vector<48x32xf32>
    %84 = vector.extract_strided_slice %27 {offsets = [0, 1, 0], sizes = [1, 1, 32], strides = [1, 1, 1]} : vector<3x2x32xf32> to vector<1x1x32xf32>
    %85 = vector.shape_cast %84 : vector<1x1x32xf32> to vector<1x32xf32>
    %86 = vector.shape_cast %85 : vector<1x32xf32> to vector<1x32xf32>
    %87 = vector.broadcast %86 : vector<1x32xf32> to vector<8x32xf32>
    %88 = vector.extract_strided_slice %27 {offsets = [1, 1, 0], sizes = [1, 1, 32], strides = [1, 1, 1]} : vector<3x2x32xf32> to vector<1x1x32xf32>
    %89 = vector.shape_cast %88 : vector<1x1x32xf32> to vector<1x32xf32>
    %90 = vector.shape_cast %89 : vector<1x32xf32> to vector<1x32xf32>
    %91 = vector.broadcast %90 : vector<1x32xf32> to vector<8x32xf32>
    %92 = vector.extract_strided_slice %27 {offsets = [2, 1, 0], sizes = [1, 1, 32], strides = [1, 1, 1]} : vector<3x2x32xf32> to vector<1x1x32xf32>
    %93 = vector.shape_cast %92 : vector<1x1x32xf32> to vector<1x32xf32>
    %94 = vector.shape_cast %93 : vector<1x32xf32> to vector<1x32xf32>
    %95 = vector.broadcast %94 : vector<1x32xf32> to vector<8x32xf32>
    %96 = vector.extract_strided_slice %27 {offsets = [0, 1, 0], sizes = [1, 1, 32], strides = [1, 1, 1]} : vector<3x2x32xf32> to vector<1x1x32xf32>
    %97 = vector.shape_cast %96 : vector<1x1x32xf32> to vector<1x32xf32>
    %98 = vector.shape_cast %97 : vector<1x32xf32> to vector<1x32xf32>
    %99 = vector.broadcast %98 : vector<1x32xf32> to vector<8x32xf32>
    %100 = vector.extract_strided_slice %27 {offsets = [0, 1, 0], sizes = [1, 1, 32], strides = [1, 1, 1]} : vector<3x2x32xf32> to vector<1x1x32xf32>
    %101 = vector.shape_cast %100 : vector<1x1x32xf32> to vector<1x32xf32>
    %102 = vector.shape_cast %101 : vector<1x32xf32> to vector<1x32xf32>
    %103 = vector.broadcast %102 : vector<1x32xf32> to vector<8x32xf32>
    %104 = vector.extract_strided_slice %27 {offsets = [0, 1, 0], sizes = [1, 1, 32], strides = [1, 1, 1]} : vector<3x2x32xf32> to vector<1x1x32xf32>
    %105 = vector.shape_cast %104 : vector<1x1x32xf32> to vector<1x32xf32>
    %106 = vector.shape_cast %105 : vector<1x32xf32> to vector<1x32xf32>
    %107 = vector.broadcast %106 : vector<1x32xf32> to vector<8x32xf32>
    %108 = tpu.concatenate %87, %91, %95, %99, %103, %107 in 0 : vector<8x32xf32>, vector<8x32xf32>, vector<8x32xf32>, vector<8x32xf32>, vector<8x32xf32>, vector<8x32xf32> -> vector<48x32xf32>
    %109 = vector.extract_strided_slice %37 {offsets = [0, 0, 0], sizes = [1, 1, 32], strides = [1, 1, 1]} : vector<3x2x32xf32> to vector<1x1x32xf32>
    %110 = vector.shape_cast %109 : vector<1x1x32xf32> to vector<1x32xf32>
    %111 = vector.shape_cast %110 : vector<1x32xf32> to vector<1x32xf32>
    %112 = vector.broadcast %111 : vector<1x32xf32> to vector<8x32xf32>
    %113 = vector.extract_strided_slice %37 {offsets = [1, 0, 0], sizes = [1, 1, 32], strides = [1, 1, 1]} : vector<3x2x32xf32> to vector<1x1x32xf32>
    %114 = vector.shape_cast %113 : vector<1x1x32xf32> to vector<1x32xf32>
    %115 = vector.shape_cast %114 : vector<1x32xf32> to vector<1x32xf32>
    %116 = vector.broadcast %115 : vector<1x32xf32> to vector<8x32xf32>
    %117 = vector.extract_strided_slice %37 {offsets = [2, 0, 0], sizes = [1, 1, 32], strides = [1, 1, 1]} : vector<3x2x32xf32> to vector<1x1x32xf32>
    %118 = vector.shape_cast %117 : vector<1x1x32xf32> to vector<1x32xf32>
    %119 = vector.shape_cast %118 : vector<1x32xf32> to vector<1x32xf32>
    %120 = vector.broadcast %119 : vector<1x32xf32> to vector<8x32xf32>
    %121 = vector.extract_strided_slice %37 {offsets = [0, 0, 0], sizes = [1, 1, 32], strides = [1, 1, 1]} : vector<3x2x32xf32> to vector<1x1x32xf32>
    %122 = vector.shape_cast %121 : vector<1x1x32xf32> to vector<1x32xf32>
    %123 = vector.shape_cast %122 : vector<1x32xf32> to vector<1x32xf32>
    %124 = vector.broadcast %123 : vector<1x32xf32> to vector<8x32xf32>
    %125 = vector.extract_strided_slice %37 {offsets = [0, 0, 0], sizes = [1, 1, 32], strides = [1, 1, 1]} : vector<3x2x32xf32> to vector<1x1x32xf32>
    %126 = vector.shape_cast %125 : vector<1x1x32xf32> to vector<1x32xf32>
    %127 = vector.shape_cast %126 : vector<1x32xf32> to vector<1x32xf32>
    %128 = vector.broadcast %127 : vector<1x32xf32> to vector<8x32xf32>
    %129 = vector.extract_strided_slice %37 {offsets = [0, 0, 0], sizes = [1, 1, 32], strides = [1, 1, 1]} : vector<3x2x32xf32> to vector<1x1x32xf32>
    %130 = vector.shape_cast %129 : vector<1x1x32xf32> to vector<1x32xf32>
    %131 = vector.shape_cast %130 : vector<1x32xf32> to vector<1x32xf32>
    %132 = vector.broadcast %131 : vector<1x32xf32> to vector<8x32xf32>
    %133 = tpu.concatenate %112, %116, %120, %124, %128, %132 in 0 : vector<8x32xf32>, vector<8x32xf32>, vector<8x32xf32>, vector<8x32xf32>, vector<8x32xf32>, vector<8x32xf32> -> vector<48x32xf32>
    %134 = vector.extract_strided_slice %37 {offsets = [0, 1, 0], sizes = [1, 1, 32], strides = [1, 1, 1]} : vector<3x2x32xf32> to vector<1x1x32xf32>
    %135 = vector.shape_cast %134 : vector<1x1x32xf32> to vector<1x32xf32>
    %136 = vector.shape_cast %135 : vector<1x32xf32> to vector<1x32xf32>
    %137 = vector.broadcast %136 : vector<1x32xf32> to vector<8x32xf32>
    %138 = vector.extract_strided_slice %37 {offsets = [1, 1, 0], sizes = [1, 1, 32], strides = [1, 1, 1]} : vector<3x2x32xf32> to vector<1x1x32xf32>
    %139 = vector.shape_cast %138 : vector<1x1x32xf32> to vector<1x32xf32>
    %140 = vector.shape_cast %139 : vector<1x32xf32> to vector<1x32xf32>
    %141 = vector.broadcast %140 : vector<1x32xf32> to vector<8x32xf32>
    %142 = vector.extract_strided_slice %37 {offsets = [2, 1, 0], sizes = [1, 1, 32], strides = [1, 1, 1]} : vector<3x2x32xf32> to vector<1x1x32xf32>
    %143 = vector.shape_cast %142 : vector<1x1x32xf32> to vector<1x32xf32>
    %144 = vector.shape_cast %143 : vector<1x32xf32> to vector<1x32xf32>
    %145 = vector.broadcast %144 : vector<1x32xf32> to vector<8x32xf32>
    %146 = vector.extract_strided_slice %37 {offsets = [0, 1, 0], sizes = [1, 1, 32], strides = [1, 1, 1]} : vector<3x2x32xf32> to vector<1x1x32xf32>
    %147 = vector.shape_cast %146 : vector<1x1x32xf32> to vector<1x32xf32>
    %148 = vector.shape_cast %147 : vector<1x32xf32> to vector<1x32xf32>
    %149 = vector.broadcast %148 : vector<1x32xf32> to vector<8x32xf32>
    %150 = vector.extract_strided_slice %37 {offsets = [0, 1, 0], sizes = [1, 1, 32], strides = [1, 1, 1]} : vector<3x2x32xf32> to vector<1x1x32xf32>
    %151 = vector.shape_cast %150 : vector<1x1x32xf32> to vector<1x32xf32>
    %152 = vector.shape_cast %151 : vector<1x32xf32> to vector<1x32xf32>
    %153 = vector.broadcast %152 : vector<1x32xf32> to vector<8x32xf32>
    %154 = vector.extract_strided_slice %37 {offsets = [0, 1, 0], sizes = [1, 1, 32], strides = [1, 1, 1]} : vector<3x2x32xf32> to vector<1x1x32xf32>
    %155 = vector.shape_cast %154 : vector<1x1x32xf32> to vector<1x32xf32>
    %156 = vector.shape_cast %155 : vector<1x32xf32> to vector<1x32xf32>
    %157 = vector.broadcast %156 : vector<1x32xf32> to vector<8x32xf32>
    %158 = tpu.concatenate %137, %141, %145, %149, %153, %157 in 0 : vector<8x32xf32>, vector<8x32xf32>, vector<8x32xf32>, vector<8x32xf32>, vector<8x32xf32>, vector<8x32xf32> -> vector<48x32xf32>
    %cst_46 = arith.constant dense<0.000000e+00> : vector<48x32xf32>
    %159 = tpu.matmul %38, %13, %cst_46 {dimension_numbers = #tpu.dot_dimension_numbers<[1], [0], [0], [1], [0, 0, 1, 1], [], []>} : vector<48x32xf32>, vector<32x32xf32>, vector<48x32xf32> -> vector<48x32xf32>
    %160 = vector.broadcast %15 : vector<1x32xf32> to vector<48x32xf32>
    %161 = arith.addf %159, %160 : vector<48x32xf32>
    %cst_47 = arith.constant dense<0.000000e+00> : vector<32x64xf32>
    %162 = tpu.matmul %39, %17, %cst_47 {dimension_numbers = #tpu.dot_dimension_numbers<[1], [0], [0], [1], [0, 0, 1, 1], [], []>} : vector<32x32xf32>, vector<32x64xf32>, vector<32x64xf32> -> vector<32x64xf32>
    %163 = vector.broadcast %19 : vector<1x64xf32> to vector<32x64xf32>
    %164 = arith.addf %162, %163 : vector<32x64xf32>
    %165 = vector.extract_strided_slice %164 {offsets = [0, 0], sizes = [32, 32], strides = [1, 1]} : vector<32x64xf32> to vector<32x32xf32>
    %166 = vector.extract_strided_slice %164 {offsets = [0, 32], sizes = [32, 32], strides = [1, 1]} : vector<32x64xf32> to vector<32x32xf32>
    %167 = vector.extract_strided_slice %161 {offsets = [0, 0], sizes = [48, 8], strides = [1, 1]} : vector<48x32xf32> to vector<48x8xf32>
    %168 = vector.extract_strided_slice %165 {offsets = [0, 0], sizes = [32, 8], strides = [1, 1]} : vector<32x32xf32> to vector<32x8xf32>
    %169 = vector.extract_strided_slice %166 {offsets = [0, 0], sizes = [32, 8], strides = [1, 1]} : vector<32x32xf32> to vector<32x8xf32>
    %cst_48 = arith.constant dense<0.000000e+00> : vector<48x32xf32>
    %170 = tpu.matmul %167, %168, %cst_48 {dimension_numbers = #tpu.dot_dimension_numbers<[1], [1], [0], [0], [0, 0, 1, 0], [], []>} : vector<48x8xf32>, vector<32x8xf32>, vector<48x32xf32> -> vector<48x32xf32>
    %cst_49 = arith.constant 0.353553385 : f32
    %171 = vector.broadcast %cst_49 : f32 to vector<48x32xf32>
    %172 = arith.mulf %170, %171 : vector<48x32xf32>
    %173 = arith.addf %172, %58 : vector<48x32xf32>
    %cst_50 = arith.constant dense<0xFF800000> : vector<48xf32>
    %174 = vector.multi_reduction <maximumf>, %173, %cst_50 [1] : vector<48x32xf32> to vector<48xf32>
    %175 = vector.shape_cast %174 : vector<48xf32> to vector<48x1xf32>
    %176 = vector.broadcast %175 : vector<48x1xf32> to vector<48x32xf32>
    %177 = arith.subf %173, %176 : vector<48x32xf32>
    %178 = math.exp %177 : vector<48x32xf32>
    %cst_51 = arith.constant dense<0.000000e+00> : vector<48xf32>
    %179 = vector.multi_reduction <add>, %178, %cst_51 [1] : vector<48x32xf32> to vector<48xf32>
    %180 = vector.shape_cast %179 : vector<48xf32> to vector<48x1xf32>
    %181 = tpu.reciprocal %180 {approx = true} : vector<48x1xf32> -> vector<48x1xf32>
    %182 = vector.broadcast %181 : vector<48x1xf32> to vector<48x32xf32>
    %183 = arith.mulf %178, %182 : vector<48x32xf32>
    %cst_52 = arith.constant dense<0.000000e+00> : vector<48x8xf32>
    %184 = tpu.matmul %183, %169, %cst_52 {dimension_numbers = #tpu.dot_dimension_numbers<[1], [0], [0], [1], [0, 0, 1, 1], [], []>} : vector<48x32xf32>, vector<32x8xf32>, vector<48x8xf32> -> vector<48x8xf32>
    %185 = vector.extract_strided_slice %21 {offsets = [0, 0], sizes = [8, 32], strides = [1, 1]} : vector<32x32xf32> to vector<8x32xf32>
    %cst_53 = arith.constant dense<0.000000e+00> : vector<48x32xf32>
    %186 = tpu.matmul %184, %185, %cst_53 {dimension_numbers = #tpu.dot_dimension_numbers<[1], [0], [0], [1], [0, 0, 1, 1], [], []>} : vector<48x8xf32>, vector<8x32xf32>, vector<48x32xf32> -> vector<48x32xf32>
    %187 = vector.extract_strided_slice %161 {offsets = [0, 8], sizes = [48, 8], strides = [1, 1]} : vector<48x32xf32> to vector<48x8xf32>
    %188 = vector.extract_strided_slice %165 {offsets = [0, 8], sizes = [32, 8], strides = [1, 1]} : vector<32x32xf32> to vector<32x8xf32>
    %189 = vector.extract_strided_slice %166 {offsets = [0, 8], sizes = [32, 8], strides = [1, 1]} : vector<32x32xf32> to vector<32x8xf32>
    %cst_54 = arith.constant dense<0.000000e+00> : vector<48x32xf32>
    %190 = tpu.matmul %187, %188, %cst_54 {dimension_numbers = #tpu.dot_dimension_numbers<[1], [1], [0], [0], [0, 0, 1, 0], [], []>} : vector<48x8xf32>, vector<32x8xf32>, vector<48x32xf32> -> vector<48x32xf32>
    %cst_55 = arith.constant 0.353553385 : f32
    %191 = vector.broadcast %cst_55 : f32 to vector<48x32xf32>
    %192 = arith.mulf %190, %191 : vector<48x32xf32>
    %193 = arith.addf %192, %58 : vector<48x32xf32>
    %cst_56 = arith.constant dense<0xFF800000> : vector<48xf32>
    %194 = vector.multi_reduction <maximumf>, %193, %cst_56 [1] : vector<48x32xf32> to vector<48xf32>
    %195 = vector.shape_cast %194 : vector<48xf32> to vector<48x1xf32>
    %196 = vector.broadcast %195 : vector<48x1xf32> to vector<48x32xf32>
    %197 = arith.subf %193, %196 : vector<48x32xf32>
    %198 = math.exp %197 : vector<48x32xf32>
    %cst_57 = arith.constant dense<0.000000e+00> : vector<48xf32>
    %199 = vector.multi_reduction <add>, %198, %cst_57 [1] : vector<48x32xf32> to vector<48xf32>
    %200 = vector.shape_cast %199 : vector<48xf32> to vector<48x1xf32>
    %201 = tpu.reciprocal %200 {approx = true} : vector<48x1xf32> -> vector<48x1xf32>
    %202 = vector.broadcast %201 : vector<48x1xf32> to vector<48x32xf32>
    %203 = arith.mulf %198, %202 : vector<48x32xf32>
    %cst_58 = arith.constant dense<0.000000e+00> : vector<48x8xf32>
    %204 = tpu.matmul %203, %189, %cst_58 {dimension_numbers = #tpu.dot_dimension_numbers<[1], [0], [0], [1], [0, 0, 1, 1], [], []>} : vector<48x32xf32>, vector<32x8xf32>, vector<48x8xf32> -> vector<48x8xf32>
    %205 = vector.extract_strided_slice %21 {offsets = [8, 0], sizes = [8, 32], strides = [1, 1]} : vector<32x32xf32> to vector<8x32xf32>
    %cst_59 = arith.constant dense<0.000000e+00> : vector<48x32xf32>
    %206 = tpu.matmul %204, %205, %cst_59 {dimension_numbers = #tpu.dot_dimension_numbers<[1], [0], [0], [1], [0, 0, 1, 1], [], []>} : vector<48x8xf32>, vector<8x32xf32>, vector<48x32xf32> -> vector<48x32xf32>
    %207 = arith.addf %186, %206 : vector<48x32xf32>
    %208 = vector.extract_strided_slice %161 {offsets = [0, 16], sizes = [48, 8], strides = [1, 1]} : vector<48x32xf32> to vector<48x8xf32>
    %209 = vector.extract_strided_slice %165 {offsets = [0, 16], sizes = [32, 8], strides = [1, 1]} : vector<32x32xf32> to vector<32x8xf32>
    %210 = vector.extract_strided_slice %166 {offsets = [0, 16], sizes = [32, 8], strides = [1, 1]} : vector<32x32xf32> to vector<32x8xf32>
    %cst_60 = arith.constant dense<0.000000e+00> : vector<48x32xf32>
    %211 = tpu.matmul %208, %209, %cst_60 {dimension_numbers = #tpu.dot_dimension_numbers<[1], [1], [0], [0], [0, 0, 1, 0], [], []>} : vector<48x8xf32>, vector<32x8xf32>, vector<48x32xf32> -> vector<48x32xf32>
    %cst_61 = arith.constant 0.353553385 : f32
    %212 = vector.broadcast %cst_61 : f32 to vector<48x32xf32>
    %213 = arith.mulf %211, %212 : vector<48x32xf32>
    %214 = arith.addf %213, %58 : vector<48x32xf32>
    %cst_62 = arith.constant dense<0xFF800000> : vector<48xf32>
    %215 = vector.multi_reduction <maximumf>, %214, %cst_62 [1] : vector<48x32xf32> to vector<48xf32>
    %216 = vector.shape_cast %215 : vector<48xf32> to vector<48x1xf32>
    %217 = vector.broadcast %216 : vector<48x1xf32> to vector<48x32xf32>
    %218 = arith.subf %214, %217 : vector<48x32xf32>
    %219 = math.exp %218 : vector<48x32xf32>
    %cst_63 = arith.constant dense<0.000000e+00> : vector<48xf32>
    %220 = vector.multi_reduction <add>, %219, %cst_63 [1] : vector<48x32xf32> to vector<48xf32>
    %221 = vector.shape_cast %220 : vector<48xf32> to vector<48x1xf32>
    %222 = tpu.reciprocal %221 {approx = true} : vector<48x1xf32> -> vector<48x1xf32>
    %223 = vector.broadcast %222 : vector<48x1xf32> to vector<48x32xf32>
    %224 = arith.mulf %219, %223 : vector<48x32xf32>
    %cst_64 = arith.constant dense<0.000000e+00> : vector<48x8xf32>
    %225 = tpu.matmul %224, %210, %cst_64 {dimension_numbers = #tpu.dot_dimension_numbers<[1], [0], [0], [1], [0, 0, 1, 1], [], []>} : vector<48x32xf32>, vector<32x8xf32>, vector<48x8xf32> -> vector<48x8xf32>
    %226 = vector.extract_strided_slice %21 {offsets = [16, 0], sizes = [8, 32], strides = [1, 1]} : vector<32x32xf32> to vector<8x32xf32>
    %cst_65 = arith.constant dense<0.000000e+00> : vector<48x32xf32>
    %227 = tpu.matmul %225, %226, %cst_65 {dimension_numbers = #tpu.dot_dimension_numbers<[1], [0], [0], [1], [0, 0, 1, 1], [], []>} : vector<48x8xf32>, vector<8x32xf32>, vector<48x32xf32> -> vector<48x32xf32>
    %228 = arith.addf %207, %227 : vector<48x32xf32>
    %229 = vector.extract_strided_slice %161 {offsets = [0, 24], sizes = [48, 8], strides = [1, 1]} : vector<48x32xf32> to vector<48x8xf32>
    %230 = vector.extract_strided_slice %165 {offsets = [0, 24], sizes = [32, 8], strides = [1, 1]} : vector<32x32xf32> to vector<32x8xf32>
    %231 = vector.extract_strided_slice %166 {offsets = [0, 24], sizes = [32, 8], strides = [1, 1]} : vector<32x32xf32> to vector<32x8xf32>
    %cst_66 = arith.constant dense<0.000000e+00> : vector<48x32xf32>
    %232 = tpu.matmul %229, %230, %cst_66 {dimension_numbers = #tpu.dot_dimension_numbers<[1], [1], [0], [0], [0, 0, 1, 0], [], []>} : vector<48x8xf32>, vector<32x8xf32>, vector<48x32xf32> -> vector<48x32xf32>
    %cst_67 = arith.constant 0.353553385 : f32
    %233 = vector.broadcast %cst_67 : f32 to vector<48x32xf32>
    %234 = arith.mulf %232, %233 : vector<48x32xf32>
    %235 = arith.addf %234, %58 : vector<48x32xf32>
    %cst_68 = arith.constant dense<0xFF800000> : vector<48xf32>
    %236 = vector.multi_reduction <maximumf>, %235, %cst_68 [1] : vector<48x32xf32> to vector<48xf32>
    %237 = vector.shape_cast %236 : vector<48xf32> to vector<48x1xf32>
    %238 = vector.broadcast %237 : vector<48x1xf32> to vector<48x32xf32>
    %239 = arith.subf %235, %238 : vector<48x32xf32>
    %240 = math.exp %239 : vector<48x32xf32>
    %cst_69 = arith.constant dense<0.000000e+00> : vector<48xf32>
    %241 = vector.multi_reduction <add>, %240, %cst_69 [1] : vector<48x32xf32> to vector<48xf32>
    %242 = vector.shape_cast %241 : vector<48xf32> to vector<48x1xf32>
    %243 = tpu.reciprocal %242 {approx = true} : vector<48x1xf32> -> vector<48x1xf32>
    %244 = vector.broadcast %243 : vector<48x1xf32> to vector<48x32xf32>
    %245 = arith.mulf %240, %244 : vector<48x32xf32>
    %cst_70 = arith.constant dense<0.000000e+00> : vector<48x8xf32>
    %246 = tpu.matmul %245, %231, %cst_70 {dimension_numbers = #tpu.dot_dimension_numbers<[1], [0], [0], [1], [0, 0, 1, 1], [], []>} : vector<48x32xf32>, vector<32x8xf32>, vector<48x8xf32> -> vector<48x8xf32>
    %247 = vector.extract_strided_slice %21 {offsets = [24, 0], sizes = [8, 32], strides = [1, 1]} : vector<32x32xf32> to vector<8x32xf32>
    %cst_71 = arith.constant dense<0.000000e+00> : vector<48x32xf32>
    %248 = tpu.matmul %246, %247, %cst_71 {dimension_numbers = #tpu.dot_dimension_numbers<[1], [0], [0], [1], [0, 0, 1, 1], [], []>} : vector<48x8xf32>, vector<8x32xf32>, vector<48x32xf32> -> vector<48x32xf32>
    %249 = arith.addf %228, %248 : vector<48x32xf32>
    %250 = vector.broadcast %23 : vector<1x32xf32> to vector<48x32xf32>
    %251 = arith.addf %249, %250 : vector<48x32xf32>
    %252 = arith.addf %38, %251 : vector<48x32xf32>
    %253 = vector.extract_strided_slice %25 {offsets = [0, 0], sizes = [1, 32], strides = [1, 1]} : vector<2x32xf32> to vector<1x32xf32>
    %254 = vector.extract_strided_slice %25 {offsets = [1, 0], sizes = [1, 32], strides = [1, 1]} : vector<2x32xf32> to vector<1x32xf32>
    %255 = arith.mulf %252, %252 : vector<48x32xf32>
    %256 = tpu.concatenate %252, %255 in 0 : vector<48x32xf32>, vector<48x32xf32> -> vector<96x32xf32>
    %cst_72 = arith.constant dense<0.000000e+00> : vector<96xf32>
    %257 = vector.multi_reduction <add>, %256, %cst_72 [1] : vector<96x32xf32> to vector<96xf32>
    %258 = vector.shape_cast %257 : vector<96xf32> to vector<96x1xf32>
    %cst_73 = arith.constant 3.125000e-02 : f32
    %259 = vector.broadcast %cst_73 : f32 to vector<96x1xf32>
    %260 = arith.mulf %258, %259 : vector<96x1xf32>
    %261 = vector.extract_strided_slice %260 {offsets = [0, 0], sizes = [48, 1], strides = [1, 1]} : vector<96x1xf32> to vector<48x1xf32>
    %262 = vector.extract_strided_slice %260 {offsets = [48, 0], sizes = [48, 1], strides = [1, 1]} : vector<96x1xf32> to vector<48x1xf32>
    %263 = arith.mulf %261, %261 : vector<48x1xf32>
    %264 = arith.subf %262, %263 : vector<48x1xf32>
    %265 = vector.broadcast %261 : vector<48x1xf32> to vector<48x32xf32>
    %266 = arith.subf %252, %265 : vector<48x32xf32>
    %cst_74 = arith.constant 9.99999974E-6 : f32
    %267 = vector.broadcast %cst_74 : f32 to vector<48x1xf32>
    %268 = arith.addf %264, %267 : vector<48x1xf32>
    %269 = math.rsqrt %268 : vector<48x1xf32>
    %270 = vector.broadcast %269 : vector<48x1xf32> to vector<48x32xf32>
    %271 = arith.mulf %266, %270 : vector<48x32xf32>
    %272 = vector.broadcast %253 : vector<1x32xf32> to vector<48x32xf32>
    %273 = arith.mulf %271, %272 : vector<48x32xf32>
    %274 = vector.broadcast %254 : vector<1x32xf32> to vector<48x32xf32>
    %275 = arith.addf %273, %274 : vector<48x32xf32>
    %276 = arith.addf %38, %275 : vector<48x32xf32>
    %277 = arith.mulf %276, %276 : vector<48x32xf32>
    %278 = tpu.concatenate %276, %277 in 0 : vector<48x32xf32>, vector<48x32xf32> -> vector<96x32xf32>
    %cst_75 = arith.constant dense<0.000000e+00> : vector<96xf32>
    %279 = vector.multi_reduction <add>, %278, %cst_75 [1] : vector<96x32xf32> to vector<96xf32>
    %280 = vector.shape_cast %279 : vector<96xf32> to vector<96x1xf32>
    %cst_76 = arith.constant 3.125000e-02 : f32
    %281 = vector.broadcast %cst_76 : f32 to vector<96x1xf32>
    %282 = arith.mulf %280, %281 : vector<96x1xf32>
    %283 = vector.extract_strided_slice %282 {offsets = [0, 0], sizes = [48, 1], strides = [1, 1]} : vector<96x1xf32> to vector<48x1xf32>
    %284 = vector.extract_strided_slice %282 {offsets = [48, 0], sizes = [48, 1], strides = [1, 1]} : vector<96x1xf32> to vector<48x1xf32>
    %285 = arith.mulf %283, %283 : vector<48x1xf32>
    %286 = arith.subf %284, %285 : vector<48x1xf32>
    %287 = vector.broadcast %283 : vector<48x1xf32> to vector<48x32xf32>
    %288 = arith.subf %276, %287 : vector<48x32xf32>
    %cst_77 = arith.constant 9.99999974E-6 : f32
    %289 = vector.broadcast %cst_77 : f32 to vector<48x1xf32>
    %290 = arith.addf %286, %289 : vector<48x1xf32>
    %291 = math.rsqrt %290 : vector<48x1xf32>
    %292 = vector.broadcast %291 : vector<48x1xf32> to vector<48x32xf32>
    %293 = arith.mulf %288, %292 : vector<48x32xf32>
    %294 = arith.mulf %293, %83 : vector<48x32xf32>
    %295 = arith.addf %294, %108 : vector<48x32xf32>
    %cst_78 = arith.constant dense<0.000000e+00> : vector<48x64xf32>
    %296 = tpu.matmul %295, %29, %cst_78 {dimension_numbers = #tpu.dot_dimension_numbers<[1], [0], [0], [1], [0, 0, 1, 1], [], []>} : vector<48x32xf32>, vector<32x64xf32>, vector<48x64xf32> -> vector<48x64xf32>
    %297 = vector.broadcast %31 : vector<1x64xf32> to vector<48x64xf32>
    %298 = arith.addf %296, %297 : vector<48x64xf32>
    %cst_79 = arith.constant 0.000000e+00 : f32
    %299 = vector.broadcast %cst_79 : f32 to vector<48x64xf32>
    %300 = arith.maximumf %298, %299 : vector<48x64xf32>
    %cst_80 = arith.constant dense<0.000000e+00> : vector<48x32xf32>
    %301 = tpu.matmul %300, %33, %cst_80 {dimension_numbers = #tpu.dot_dimension_numbers<[1], [0], [0], [1], [0, 0, 1, 1], [], []>} : vector<48x64xf32>, vector<64x32xf32>, vector<48x32xf32> -> vector<48x32xf32>
    %302 = vector.broadcast %35 : vector<1x32xf32> to vector<48x32xf32>
    %303 = arith.addf %301, %302 : vector<48x32xf32>
    %304 = arith.addf %295, %303 : vector<48x32xf32>
    %305 = arith.mulf %304, %304 : vector<48x32xf32>
    %306 = tpu.concatenate %304, %305 in 0 : vector<48x32xf32>, vector<48x32xf32> -> vector<96x32xf32>
    %cst_81 = arith.constant dense<0.000000e+00> : vector<96xf32>
    %307 = vector.multi_reduction <add>, %306, %cst_81 [1] : vector<96x32xf32> to vector<96xf32>
    %308 = vector.shape_cast %307 : vector<96xf32> to vector<96x1xf32>
    %cst_82 = arith.constant 3.125000e-02 : f32
    %309 = vector.broadcast %cst_82 : f32 to vector<96x1xf32>
    %310 = arith.mulf %308, %309 : vector<96x1xf32>
    %311 = vector.extract_strided_slice %310 {offsets = [0, 0], sizes = [48, 1], strides = [1, 1]} : vector<96x1xf32> to vector<48x1xf32>
    %312 = vector.extract_strided_slice %310 {offsets = [48, 0], sizes = [48, 1], strides = [1, 1]} : vector<96x1xf32> to vector<48x1xf32>
    %313 = arith.mulf %311, %311 : vector<48x1xf32>
    %314 = arith.subf %312, %313 : vector<48x1xf32>
    %315 = vector.broadcast %311 : vector<48x1xf32> to vector<48x32xf32>
    %316 = arith.subf %304, %315 : vector<48x32xf32>
    %cst_83 = arith.constant 9.99999974E-6 : f32
    %317 = vector.broadcast %cst_83 : f32 to vector<48x1xf32>
    %318 = arith.addf %314, %317 : vector<48x1xf32>
    %319 = math.rsqrt %318 : vector<48x1xf32>
    %320 = vector.broadcast %319 : vector<48x1xf32> to vector<48x32xf32>
    %321 = arith.mulf %316, %320 : vector<48x32xf32>
    %322 = arith.mulf %321, %133 : vector<48x32xf32>
    %323 = arith.addf %322, %158 : vector<48x32xf32>
    %324 = vector.extract_strided_slice %323 {offsets = [0, 0], sizes = [8, 32], strides = [1, 1]} : vector<48x32xf32> to vector<8x32xf32>
    %325 = vector.extract_strided_slice %323 {offsets = [8, 0], sizes = [8, 32], strides = [1, 1]} : vector<48x32xf32> to vector<8x32xf32>
    %326 = vector.extract_strided_slice %323 {offsets = [16, 0], sizes = [8, 32], strides = [1, 1]} : vector<48x32xf32> to vector<8x32xf32>
    %327 = vector.extract_strided_slice %323 {offsets = [24, 0], sizes = [8, 32], strides = [1, 1]} : vector<48x32xf32> to vector<8x32xf32>
    %328 = vector.extract_strided_slice %323 {offsets = [32, 0], sizes = [8, 32], strides = [1, 1]} : vector<48x32xf32> to vector<8x32xf32>
    %329 = vector.extract_strided_slice %323 {offsets = [40, 0], sizes = [8, 32], strides = [1, 1]} : vector<48x32xf32> to vector<8x32xf32>
    %c1 = arith.constant 1 : index
    %c0_84 = arith.constant 0 : index
    %c0_85 = arith.constant 0 : index
    %330 = vector.load %arg3[%c1, %c0_84, %c0_85] : memref<3x32x32xf32, #tpu.memory_space<vmem>>, vector<1x32x32xf32>
    %331 = vector.shape_cast %330 : vector<1x32x32xf32> to vector<32x32xf32>
    %c1_86 = arith.constant 1 : index
    %c0_87 = arith.constant 0 : index
    %c0_88 = arith.constant 0 : index
    %332 = vector.load %arg4[%c1_86, %c0_87, %c0_88] : memref<3x1x32xf32, #tpu.memory_space<vmem>>, vector<1x1x32xf32>
    %333 = vector.shape_cast %332 : vector<1x1x32xf32> to vector<1x32xf32>
    %c1_89 = arith.constant 1 : index
    %c0_90 = arith.constant 0 : index
    %c0_91 = arith.constant 0 : index
    %334 = vector.load %arg5[%c1_89, %c0_90, %c0_91] : memref<3x32x64xf32, #tpu.memory_space<vmem>>, vector<1x32x64xf32>
    %335 = vector.shape_cast %334 : vector<1x32x64xf32> to vector<32x64xf32>
    %c1_92 = arith.constant 1 : index
    %c0_93 = arith.constant 0 : index
    %c0_94 = arith.constant 0 : index
    %336 = vector.load %arg6[%c1_92, %c0_93, %c0_94] : memref<3x1x64xf32, #tpu.memory_space<vmem>>, vector<1x1x64xf32>
    %337 = vector.shape_cast %336 : vector<1x1x64xf32> to vector<1x64xf32>
    %c1_95 = arith.constant 1 : index
    %c0_96 = arith.constant 0 : index
    %c0_97 = arith.constant 0 : index
    %338 = vector.load %arg7[%c1_95, %c0_96, %c0_97] : memref<3x32x32xf32, #tpu.memory_space<vmem>>, vector<1x32x32xf32>
    %339 = vector.shape_cast %338 : vector<1x32x32xf32> to vector<32x32xf32>
    %c1_98 = arith.constant 1 : index
    %c0_99 = arith.constant 0 : index
    %c0_100 = arith.constant 0 : index
    %340 = vector.load %arg8[%c1_98, %c0_99, %c0_100] : memref<3x1x32xf32, #tpu.memory_space<vmem>>, vector<1x1x32xf32>
    %341 = vector.shape_cast %340 : vector<1x1x32xf32> to vector<1x32xf32>
    %c1_101 = arith.constant 1 : index
    %c0_102 = arith.constant 0 : index
    %c0_103 = arith.constant 0 : index
    %342 = vector.load %arg9[%c1_101, %c0_102, %c0_103] : memref<3x2x32xf32, #tpu.memory_space<vmem>>, vector<1x2x32xf32>
    %343 = vector.shape_cast %342 : vector<1x2x32xf32> to vector<2x32xf32>
    %c1_104 = arith.constant 1 : index
    %c0_105 = arith.constant 0 : index
    %c0_106 = arith.constant 0 : index
    %c0_107 = arith.constant 0 : index
    %344 = vector.load %arg10[%c1_104, %c0_105, %c0_106, %c0_107] : memref<3x3x2x32xf32, #tpu.memory_space<vmem>>, vector<1x3x2x32xf32>
    %345 = vector.shape_cast %344 : vector<1x3x2x32xf32> to vector<3x2x32xf32>
    %c1_108 = arith.constant 1 : index
    %c0_109 = arith.constant 0 : index
    %c0_110 = arith.constant 0 : index
    %346 = vector.load %arg11[%c1_108, %c0_109, %c0_110] : memref<3x32x64xf32, #tpu.memory_space<vmem>>, vector<1x32x64xf32>
    %347 = vector.shape_cast %346 : vector<1x32x64xf32> to vector<32x64xf32>
    %c1_111 = arith.constant 1 : index
    %c0_112 = arith.constant 0 : index
    %c0_113 = arith.constant 0 : index
    %348 = vector.load %arg12[%c1_111, %c0_112, %c0_113] : memref<3x1x64xf32, #tpu.memory_space<vmem>>, vector<1x1x64xf32>
    %349 = vector.shape_cast %348 : vector<1x1x64xf32> to vector<1x64xf32>
    %c1_114 = arith.constant 1 : index
    %c0_115 = arith.constant 0 : index
    %c0_116 = arith.constant 0 : index
    %350 = vector.load %arg13[%c1_114, %c0_115, %c0_116] : memref<3x64x32xf32, #tpu.memory_space<vmem>>, vector<1x64x32xf32>
    %351 = vector.shape_cast %350 : vector<1x64x32xf32> to vector<64x32xf32>
    %c1_117 = arith.constant 1 : index
    %c0_118 = arith.constant 0 : index
    %c0_119 = arith.constant 0 : index
    %352 = vector.load %arg14[%c1_117, %c0_118, %c0_119] : memref<3x1x32xf32, #tpu.memory_space<vmem>>, vector<1x1x32xf32>
    %353 = vector.shape_cast %352 : vector<1x1x32xf32> to vector<1x32xf32>
    %c1_120 = arith.constant 1 : index
    %c0_121 = arith.constant 0 : index
    %c0_122 = arith.constant 0 : index
    %c0_123 = arith.constant 0 : index
    %354 = vector.load %arg15[%c1_120, %c0_121, %c0_122, %c0_123] : memref<3x3x2x32xf32, #tpu.memory_space<vmem>>, vector<1x3x2x32xf32>
    %355 = vector.shape_cast %354 : vector<1x3x2x32xf32> to vector<3x2x32xf32>
    %c0_124 = arith.constant 0 : index
    %c0_125 = arith.constant 0 : index
    %c0_126 = arith.constant 0 : index
    %356 = vector.load %arg16[%c0_124, %c0_125, %c0_126] : memref<3x32x3xf32, #tpu.memory_space<vmem>>, vector<1x32x3xf32>
    %357 = vector.shape_cast %356 : vector<1x32x3xf32> to vector<32x3xf32>
    %cst_127 = arith.constant dense<0.000000e+00> : vector<8x3xf32>
    %358 = tpu.matmul %324, %357, %cst_127 {dimension_numbers = #tpu.dot_dimension_numbers<[1], [0], [0], [1], [0, 0, 1, 1], [], []>} : vector<8x32xf32>, vector<32x3xf32>, vector<8x3xf32> -> vector<8x3xf32>
    %c1_128 = arith.constant 1 : index
    %c0_129 = arith.constant 0 : index
    %c0_130 = arith.constant 0 : index
    %359 = vector.load %arg16[%c1_128, %c0_129, %c0_130] : memref<3x32x3xf32, #tpu.memory_space<vmem>>, vector<1x32x3xf32>
    %360 = vector.shape_cast %359 : vector<1x32x3xf32> to vector<32x3xf32>
    %cst_131 = arith.constant dense<0.000000e+00> : vector<8x3xf32>
    %361 = tpu.matmul %325, %360, %cst_131 {dimension_numbers = #tpu.dot_dimension_numbers<[1], [0], [0], [1], [0, 0, 1, 1], [], []>} : vector<8x32xf32>, vector<32x3xf32>, vector<8x3xf32> -> vector<8x3xf32>
    %362 = arith.addf %358, %361 : vector<8x3xf32>
    %c2 = arith.constant 2 : index
    %c0_132 = arith.constant 0 : index
    %c0_133 = arith.constant 0 : index
    %363 = vector.load %arg16[%c2, %c0_132, %c0_133] : memref<3x32x3xf32, #tpu.memory_space<vmem>>, vector<1x32x3xf32>
    %364 = vector.shape_cast %363 : vector<1x32x3xf32> to vector<32x3xf32>
    %cst_134 = arith.constant dense<0.000000e+00> : vector<8x3xf32>
    %365 = tpu.matmul %326, %364, %cst_134 {dimension_numbers = #tpu.dot_dimension_numbers<[1], [0], [0], [1], [0, 0, 1, 1], [], []>} : vector<8x32xf32>, vector<32x3xf32>, vector<8x3xf32> -> vector<8x3xf32>
    %366 = arith.addf %362, %365 : vector<8x3xf32>
    %c0_135 = arith.constant 0 : index
    %c0_136 = arith.constant 0 : index
    %367 = vector.load %arg17[%c0_135, %c0_136] : memref<1x3xf32, #tpu.memory_space<vmem>>, vector<1x3xf32>
    %368 = vector.broadcast %367 : vector<1x3xf32> to vector<8x3xf32>
    %369 = arith.addf %366, %368 : vector<8x3xf32>
    %cst_137 = arith.constant dense<0xFF800000> : vector<8xf32>
    %370 = vector.multi_reduction <maximumf>, %369, %cst_137 [1] : vector<8x3xf32> to vector<8xf32>
    %371 = vector.shape_cast %370 : vector<8xf32> to vector<8x1xf32>
    %372 = vector.broadcast %371 : vector<8x1xf32> to vector<8x3xf32>
    %373 = arith.subf %369, %372 : vector<8x3xf32>
    %374 = math.exp %373 : vector<8x3xf32>
    %cst_138 = arith.constant dense<0.000000e+00> : vector<8xf32>
    %375 = vector.multi_reduction <add>, %374, %cst_138 [1] : vector<8x3xf32> to vector<8xf32>
    %376 = vector.shape_cast %375 : vector<8xf32> to vector<8x1xf32>
    %377 = tpu.reciprocal %376 {approx = true} : vector<8x1xf32> -> vector<8x1xf32>
    %378 = vector.broadcast %377 : vector<8x1xf32> to vector<8x3xf32>
    %379 = arith.mulf %374, %378 : vector<8x3xf32>
    %380 = vector.extract_strided_slice %379 {offsets = [0, 0], sizes = [8, 1], strides = [1, 1]} : vector<8x3xf32> to vector<8x1xf32>
    %381 = vector.broadcast %380 : vector<8x1xf32> to vector<8x32xf32>
    %382 = arith.mulf %381, %324 : vector<8x32xf32>
    %383 = vector.extract_strided_slice %379 {offsets = [0, 1], sizes = [8, 1], strides = [1, 1]} : vector<8x3xf32> to vector<8x1xf32>
    %384 = vector.broadcast %383 : vector<8x1xf32> to vector<8x32xf32>
    %385 = arith.mulf %384, %325 : vector<8x32xf32>
    %386 = arith.addf %382, %385 : vector<8x32xf32>
    %387 = vector.extract_strided_slice %379 {offsets = [0, 2], sizes = [8, 1], strides = [1, 1]} : vector<8x3xf32> to vector<8x1xf32>
    %388 = vector.broadcast %387 : vector<8x1xf32> to vector<8x32xf32>
    %389 = arith.mulf %388, %326 : vector<8x32xf32>
    %390 = arith.addf %386, %389 : vector<8x32xf32>
    %391 = arith.addf %390, %5 : vector<8x32xf32>
    %392 = vector.extract_strided_slice %345 {offsets = [0, 0, 0], sizes = [1, 1, 32], strides = [1, 1, 1]} : vector<3x2x32xf32> to vector<1x1x32xf32>
    %393 = vector.shape_cast %392 : vector<1x1x32xf32> to vector<1x32xf32>
    %394 = vector.extract_strided_slice %345 {offsets = [0, 1, 0], sizes = [1, 1, 32], strides = [1, 1, 1]} : vector<3x2x32xf32> to vector<1x1x32xf32>
    %395 = vector.shape_cast %394 : vector<1x1x32xf32> to vector<1x32xf32>
    %396 = vector.extract_strided_slice %355 {offsets = [0, 0, 0], sizes = [1, 1, 32], strides = [1, 1, 1]} : vector<3x2x32xf32> to vector<1x1x32xf32>
    %397 = vector.shape_cast %396 : vector<1x1x32xf32> to vector<1x32xf32>
    %398 = vector.extract_strided_slice %355 {offsets = [0, 1, 0], sizes = [1, 1, 32], strides = [1, 1, 1]} : vector<3x2x32xf32> to vector<1x1x32xf32>
    %399 = vector.shape_cast %398 : vector<1x1x32xf32> to vector<1x32xf32>
    %cst_139 = arith.constant dense<0.000000e+00> : vector<8x32xf32>
    %400 = tpu.matmul %391, %331, %cst_139 {dimension_numbers = #tpu.dot_dimension_numbers<[1], [0], [0], [1], [0, 0, 1, 1], [], []>} : vector<8x32xf32>, vector<32x32xf32>, vector<8x32xf32> -> vector<8x32xf32>
    %401 = vector.broadcast %333 : vector<1x32xf32> to vector<8x32xf32>
    %402 = arith.addf %400, %401 : vector<8x32xf32>
    %cst_140 = arith.constant dense<0.000000e+00> : vector<8x64xf32>
    %403 = tpu.matmul %391, %335, %cst_140 {dimension_numbers = #tpu.dot_dimension_numbers<[1], [0], [0], [1], [0, 0, 1, 1], [], []>} : vector<8x32xf32>, vector<32x64xf32>, vector<8x64xf32> -> vector<8x64xf32>
    %404 = vector.broadcast %337 : vector<1x64xf32> to vector<8x64xf32>
    %405 = arith.addf %403, %404 : vector<8x64xf32>
    %406 = vector.extract_strided_slice %405 {offsets = [0, 0], sizes = [8, 32], strides = [1, 1]} : vector<8x64xf32> to vector<8x32xf32>
    %407 = vector.extract_strided_slice %405 {offsets = [0, 32], sizes = [8, 32], strides = [1, 1]} : vector<8x64xf32> to vector<8x32xf32>
    %408 = vector.extract_strided_slice %402 {offsets = [0, 0], sizes = [8, 8], strides = [1, 1]} : vector<8x32xf32> to vector<8x8xf32>
    %409 = vector.extract_strided_slice %406 {offsets = [0, 0], sizes = [8, 8], strides = [1, 1]} : vector<8x32xf32> to vector<8x8xf32>
    %410 = vector.extract_strided_slice %407 {offsets = [0, 0], sizes = [8, 8], strides = [1, 1]} : vector<8x32xf32> to vector<8x8xf32>
    %cst_141 = arith.constant dense<0.000000e+00> : vector<8x8xf32>
    %411 = tpu.matmul %408, %409, %cst_141 {dimension_numbers = #tpu.dot_dimension_numbers<[1], [1], [0], [0], [0, 0, 1, 0], [], []>} : vector<8x8xf32>, vector<8x8xf32>, vector<8x8xf32> -> vector<8x8xf32>
    %cst_142 = arith.constant 0.353553385 : f32
    %412 = vector.broadcast %cst_142 : f32 to vector<8x8xf32>
    %413 = arith.mulf %411, %412 : vector<8x8xf32>
    %414 = vector.broadcast %8 : vector<1x8xf32> to vector<8x8xf32>
    %415 = arith.addf %413, %414 : vector<8x8xf32>
    %cst_143 = arith.constant dense<0xFF800000> : vector<8xf32>
    %416 = vector.multi_reduction <maximumf>, %415, %cst_143 [1] : vector<8x8xf32> to vector<8xf32>
    %417 = vector.shape_cast %416 : vector<8xf32> to vector<8x1xf32>
    %418 = vector.broadcast %417 : vector<8x1xf32> to vector<8x8xf32>
    %419 = arith.subf %415, %418 : vector<8x8xf32>
    %420 = math.exp %419 : vector<8x8xf32>
    %cst_144 = arith.constant dense<0.000000e+00> : vector<8xf32>
    %421 = vector.multi_reduction <add>, %420, %cst_144 [1] : vector<8x8xf32> to vector<8xf32>
    %422 = vector.shape_cast %421 : vector<8xf32> to vector<8x1xf32>
    %423 = tpu.reciprocal %422 {approx = true} : vector<8x1xf32> -> vector<8x1xf32>
    %424 = vector.broadcast %423 : vector<8x1xf32> to vector<8x8xf32>
    %425 = arith.mulf %420, %424 : vector<8x8xf32>
    %cst_145 = arith.constant dense<0.000000e+00> : vector<8x8xf32>
    %426 = tpu.matmul %425, %410, %cst_145 {dimension_numbers = #tpu.dot_dimension_numbers<[1], [0], [0], [1], [0, 0, 1, 1], [], []>} : vector<8x8xf32>, vector<8x8xf32>, vector<8x8xf32> -> vector<8x8xf32>
    %427 = vector.extract_strided_slice %339 {offsets = [0, 0], sizes = [8, 32], strides = [1, 1]} : vector<32x32xf32> to vector<8x32xf32>
    %cst_146 = arith.constant dense<0.000000e+00> : vector<8x32xf32>
    %428 = tpu.matmul %426, %427, %cst_146 {dimension_numbers = #tpu.dot_dimension_numbers<[1], [0], [0], [1], [0, 0, 1, 1], [], []>} : vector<8x8xf32>, vector<8x32xf32>, vector<8x32xf32> -> vector<8x32xf32>
    %429 = vector.extract_strided_slice %402 {offsets = [0, 8], sizes = [8, 8], strides = [1, 1]} : vector<8x32xf32> to vector<8x8xf32>
    %430 = vector.extract_strided_slice %406 {offsets = [0, 8], sizes = [8, 8], strides = [1, 1]} : vector<8x32xf32> to vector<8x8xf32>
    %431 = vector.extract_strided_slice %407 {offsets = [0, 8], sizes = [8, 8], strides = [1, 1]} : vector<8x32xf32> to vector<8x8xf32>
    %cst_147 = arith.constant dense<0.000000e+00> : vector<8x8xf32>
    %432 = tpu.matmul %429, %430, %cst_147 {dimension_numbers = #tpu.dot_dimension_numbers<[1], [1], [0], [0], [0, 0, 1, 0], [], []>} : vector<8x8xf32>, vector<8x8xf32>, vector<8x8xf32> -> vector<8x8xf32>
    %cst_148 = arith.constant 0.353553385 : f32
    %433 = vector.broadcast %cst_148 : f32 to vector<8x8xf32>
    %434 = arith.mulf %432, %433 : vector<8x8xf32>
    %435 = vector.broadcast %8 : vector<1x8xf32> to vector<8x8xf32>
    %436 = arith.addf %434, %435 : vector<8x8xf32>
    %cst_149 = arith.constant dense<0xFF800000> : vector<8xf32>
    %437 = vector.multi_reduction <maximumf>, %436, %cst_149 [1] : vector<8x8xf32> to vector<8xf32>
    %438 = vector.shape_cast %437 : vector<8xf32> to vector<8x1xf32>
    %439 = vector.broadcast %438 : vector<8x1xf32> to vector<8x8xf32>
    %440 = arith.subf %436, %439 : vector<8x8xf32>
    %441 = math.exp %440 : vector<8x8xf32>
    %cst_150 = arith.constant dense<0.000000e+00> : vector<8xf32>
    %442 = vector.multi_reduction <add>, %441, %cst_150 [1] : vector<8x8xf32> to vector<8xf32>
    %443 = vector.shape_cast %442 : vector<8xf32> to vector<8x1xf32>
    %444 = tpu.reciprocal %443 {approx = true} : vector<8x1xf32> -> vector<8x1xf32>
    %445 = vector.broadcast %444 : vector<8x1xf32> to vector<8x8xf32>
    %446 = arith.mulf %441, %445 : vector<8x8xf32>
    %cst_151 = arith.constant dense<0.000000e+00> : vector<8x8xf32>
    %447 = tpu.matmul %446, %431, %cst_151 {dimension_numbers = #tpu.dot_dimension_numbers<[1], [0], [0], [1], [0, 0, 1, 1], [], []>} : vector<8x8xf32>, vector<8x8xf32>, vector<8x8xf32> -> vector<8x8xf32>
    %448 = vector.extract_strided_slice %339 {offsets = [8, 0], sizes = [8, 32], strides = [1, 1]} : vector<32x32xf32> to vector<8x32xf32>
    %cst_152 = arith.constant dense<0.000000e+00> : vector<8x32xf32>
    %449 = tpu.matmul %447, %448, %cst_152 {dimension_numbers = #tpu.dot_dimension_numbers<[1], [0], [0], [1], [0, 0, 1, 1], [], []>} : vector<8x8xf32>, vector<8x32xf32>, vector<8x32xf32> -> vector<8x32xf32>
    %450 = arith.addf %428, %449 : vector<8x32xf32>
    %451 = vector.extract_strided_slice %402 {offsets = [0, 16], sizes = [8, 8], strides = [1, 1]} : vector<8x32xf32> to vector<8x8xf32>
    %452 = vector.extract_strided_slice %406 {offsets = [0, 16], sizes = [8, 8], strides = [1, 1]} : vector<8x32xf32> to vector<8x8xf32>
    %453 = vector.extract_strided_slice %407 {offsets = [0, 16], sizes = [8, 8], strides = [1, 1]} : vector<8x32xf32> to vector<8x8xf32>
    %cst_153 = arith.constant dense<0.000000e+00> : vector<8x8xf32>
    %454 = tpu.matmul %451, %452, %cst_153 {dimension_numbers = #tpu.dot_dimension_numbers<[1], [1], [0], [0], [0, 0, 1, 0], [], []>} : vector<8x8xf32>, vector<8x8xf32>, vector<8x8xf32> -> vector<8x8xf32>
    %cst_154 = arith.constant 0.353553385 : f32
    %455 = vector.broadcast %cst_154 : f32 to vector<8x8xf32>
    %456 = arith.mulf %454, %455 : vector<8x8xf32>
    %457 = vector.broadcast %8 : vector<1x8xf32> to vector<8x8xf32>
    %458 = arith.addf %456, %457 : vector<8x8xf32>
    %cst_155 = arith.constant dense<0xFF800000> : vector<8xf32>
    %459 = vector.multi_reduction <maximumf>, %458, %cst_155 [1] : vector<8x8xf32> to vector<8xf32>
    %460 = vector.shape_cast %459 : vector<8xf32> to vector<8x1xf32>
    %461 = vector.broadcast %460 : vector<8x1xf32> to vector<8x8xf32>
    %462 = arith.subf %458, %461 : vector<8x8xf32>
    %463 = math.exp %462 : vector<8x8xf32>
    %cst_156 = arith.constant dense<0.000000e+00> : vector<8xf32>
    %464 = vector.multi_reduction <add>, %463, %cst_156 [1] : vector<8x8xf32> to vector<8xf32>
    %465 = vector.shape_cast %464 : vector<8xf32> to vector<8x1xf32>
    %466 = tpu.reciprocal %465 {approx = true} : vector<8x1xf32> -> vector<8x1xf32>
    %467 = vector.broadcast %466 : vector<8x1xf32> to vector<8x8xf32>
    %468 = arith.mulf %463, %467 : vector<8x8xf32>
    %cst_157 = arith.constant dense<0.000000e+00> : vector<8x8xf32>
    %469 = tpu.matmul %468, %453, %cst_157 {dimension_numbers = #tpu.dot_dimension_numbers<[1], [0], [0], [1], [0, 0, 1, 1], [], []>} : vector<8x8xf32>, vector<8x8xf32>, vector<8x8xf32> -> vector<8x8xf32>
    %470 = vector.extract_strided_slice %339 {offsets = [16, 0], sizes = [8, 32], strides = [1, 1]} : vector<32x32xf32> to vector<8x32xf32>
    %cst_158 = arith.constant dense<0.000000e+00> : vector<8x32xf32>
    %471 = tpu.matmul %469, %470, %cst_158 {dimension_numbers = #tpu.dot_dimension_numbers<[1], [0], [0], [1], [0, 0, 1, 1], [], []>} : vector<8x8xf32>, vector<8x32xf32>, vector<8x32xf32> -> vector<8x32xf32>
    %472 = arith.addf %450, %471 : vector<8x32xf32>
    %473 = vector.extract_strided_slice %402 {offsets = [0, 24], sizes = [8, 8], strides = [1, 1]} : vector<8x32xf32> to vector<8x8xf32>
    %474 = vector.extract_strided_slice %406 {offsets = [0, 24], sizes = [8, 8], strides = [1, 1]} : vector<8x32xf32> to vector<8x8xf32>
    %475 = vector.extract_strided_slice %407 {offsets = [0, 24], sizes = [8, 8], strides = [1, 1]} : vector<8x32xf32> to vector<8x8xf32>
    %cst_159 = arith.constant dense<0.000000e+00> : vector<8x8xf32>
    %476 = tpu.matmul %473, %474, %cst_159 {dimension_numbers = #tpu.dot_dimension_numbers<[1], [1], [0], [0], [0, 0, 1, 0], [], []>} : vector<8x8xf32>, vector<8x8xf32>, vector<8x8xf32> -> vector<8x8xf32>
    %cst_160 = arith.constant 0.353553385 : f32
    %477 = vector.broadcast %cst_160 : f32 to vector<8x8xf32>
    %478 = arith.mulf %476, %477 : vector<8x8xf32>
    %479 = vector.broadcast %8 : vector<1x8xf32> to vector<8x8xf32>
    %480 = arith.addf %478, %479 : vector<8x8xf32>
    %cst_161 = arith.constant dense<0xFF800000> : vector<8xf32>
    %481 = vector.multi_reduction <maximumf>, %480, %cst_161 [1] : vector<8x8xf32> to vector<8xf32>
    %482 = vector.shape_cast %481 : vector<8xf32> to vector<8x1xf32>
    %483 = vector.broadcast %482 : vector<8x1xf32> to vector<8x8xf32>
    %484 = arith.subf %480, %483 : vector<8x8xf32>
    %485 = math.exp %484 : vector<8x8xf32>
    %cst_162 = arith.constant dense<0.000000e+00> : vector<8xf32>
    %486 = vector.multi_reduction <add>, %485, %cst_162 [1] : vector<8x8xf32> to vector<8xf32>
    %487 = vector.shape_cast %486 : vector<8xf32> to vector<8x1xf32>
    %488 = tpu.reciprocal %487 {approx = true} : vector<8x1xf32> -> vector<8x1xf32>
    %489 = vector.broadcast %488 : vector<8x1xf32> to vector<8x8xf32>
    %490 = arith.mulf %485, %489 : vector<8x8xf32>
    %cst_163 = arith.constant dense<0.000000e+00> : vector<8x8xf32>
    %491 = tpu.matmul %490, %475, %cst_163 {dimension_numbers = #tpu.dot_dimension_numbers<[1], [0], [0], [1], [0, 0, 1, 1], [], []>} : vector<8x8xf32>, vector<8x8xf32>, vector<8x8xf32> -> vector<8x8xf32>
    %492 = vector.extract_strided_slice %339 {offsets = [24, 0], sizes = [8, 32], strides = [1, 1]} : vector<32x32xf32> to vector<8x32xf32>
    %cst_164 = arith.constant dense<0.000000e+00> : vector<8x32xf32>
    %493 = tpu.matmul %491, %492, %cst_164 {dimension_numbers = #tpu.dot_dimension_numbers<[1], [0], [0], [1], [0, 0, 1, 1], [], []>} : vector<8x8xf32>, vector<8x32xf32>, vector<8x32xf32> -> vector<8x32xf32>
    %494 = arith.addf %472, %493 : vector<8x32xf32>
    %495 = vector.broadcast %341 : vector<1x32xf32> to vector<8x32xf32>
    %496 = arith.addf %494, %495 : vector<8x32xf32>
    %497 = arith.addf %391, %496 : vector<8x32xf32>
    %498 = vector.extract_strided_slice %343 {offsets = [0, 0], sizes = [1, 32], strides = [1, 1]} : vector<2x32xf32> to vector<1x32xf32>
    %499 = vector.extract_strided_slice %343 {offsets = [1, 0], sizes = [1, 32], strides = [1, 1]} : vector<2x32xf32> to vector<1x32xf32>
    %500 = arith.mulf %497, %497 : vector<8x32xf32>
    %501 = tpu.concatenate %497, %500 in 0 : vector<8x32xf32>, vector<8x32xf32> -> vector<16x32xf32>
    %cst_165 = arith.constant dense<0.000000e+00> : vector<16xf32>
    %502 = vector.multi_reduction <add>, %501, %cst_165 [1] : vector<16x32xf32> to vector<16xf32>
    %503 = vector.shape_cast %502 : vector<16xf32> to vector<16x1xf32>
    %cst_166 = arith.constant 3.125000e-02 : f32
    %504 = vector.broadcast %cst_166 : f32 to vector<16x1xf32>
    %505 = arith.mulf %503, %504 : vector<16x1xf32>
    %506 = vector.extract_strided_slice %505 {offsets = [0, 0], sizes = [8, 1], strides = [1, 1]} : vector<16x1xf32> to vector<8x1xf32>
    %507 = vector.extract_strided_slice %505 {offsets = [8, 0], sizes = [8, 1], strides = [1, 1]} : vector<16x1xf32> to vector<8x1xf32>
    %508 = arith.mulf %506, %506 : vector<8x1xf32>
    %509 = arith.subf %507, %508 : vector<8x1xf32>
    %510 = vector.broadcast %506 : vector<8x1xf32> to vector<8x32xf32>
    %511 = arith.subf %497, %510 : vector<8x32xf32>
    %cst_167 = arith.constant 9.99999974E-6 : f32
    %512 = vector.broadcast %cst_167 : f32 to vector<8x1xf32>
    %513 = arith.addf %509, %512 : vector<8x1xf32>
    %514 = math.rsqrt %513 : vector<8x1xf32>
    %515 = vector.broadcast %514 : vector<8x1xf32> to vector<8x32xf32>
    %516 = arith.mulf %511, %515 : vector<8x32xf32>
    %517 = vector.broadcast %498 : vector<1x32xf32> to vector<8x32xf32>
    %518 = arith.mulf %516, %517 : vector<8x32xf32>
    %519 = vector.broadcast %499 : vector<1x32xf32> to vector<8x32xf32>
    %520 = arith.addf %518, %519 : vector<8x32xf32>
    %521 = arith.addf %391, %520 : vector<8x32xf32>
    %522 = arith.mulf %521, %521 : vector<8x32xf32>
    %523 = tpu.concatenate %521, %522 in 0 : vector<8x32xf32>, vector<8x32xf32> -> vector<16x32xf32>
    %cst_168 = arith.constant dense<0.000000e+00> : vector<16xf32>
    %524 = vector.multi_reduction <add>, %523, %cst_168 [1] : vector<16x32xf32> to vector<16xf32>
    %525 = vector.shape_cast %524 : vector<16xf32> to vector<16x1xf32>
    %cst_169 = arith.constant 3.125000e-02 : f32
    %526 = vector.broadcast %cst_169 : f32 to vector<16x1xf32>
    %527 = arith.mulf %525, %526 : vector<16x1xf32>
    %528 = vector.extract_strided_slice %527 {offsets = [0, 0], sizes = [8, 1], strides = [1, 1]} : vector<16x1xf32> to vector<8x1xf32>
    %529 = vector.extract_strided_slice %527 {offsets = [8, 0], sizes = [8, 1], strides = [1, 1]} : vector<16x1xf32> to vector<8x1xf32>
    %530 = arith.mulf %528, %528 : vector<8x1xf32>
    %531 = arith.subf %529, %530 : vector<8x1xf32>
    %532 = vector.broadcast %528 : vector<8x1xf32> to vector<8x32xf32>
    %533 = arith.subf %521, %532 : vector<8x32xf32>
    %cst_170 = arith.constant 9.99999974E-6 : f32
    %534 = vector.broadcast %cst_170 : f32 to vector<8x1xf32>
    %535 = arith.addf %531, %534 : vector<8x1xf32>
    %536 = math.rsqrt %535 : vector<8x1xf32>
    %537 = vector.broadcast %536 : vector<8x1xf32> to vector<8x32xf32>
    %538 = arith.mulf %533, %537 : vector<8x32xf32>
    %539 = vector.broadcast %393 : vector<1x32xf32> to vector<8x32xf32>
    %540 = arith.mulf %538, %539 : vector<8x32xf32>
    %541 = vector.broadcast %395 : vector<1x32xf32> to vector<8x32xf32>
    %542 = arith.addf %540, %541 : vector<8x32xf32>
    %cst_171 = arith.constant dense<0.000000e+00> : vector<8x64xf32>
    %543 = tpu.matmul %542, %347, %cst_171 {dimension_numbers = #tpu.dot_dimension_numbers<[1], [0], [0], [1], [0, 0, 1, 1], [], []>} : vector<8x32xf32>, vector<32x64xf32>, vector<8x64xf32> -> vector<8x64xf32>
    %544 = vector.broadcast %349 : vector<1x64xf32> to vector<8x64xf32>
    %545 = arith.addf %543, %544 : vector<8x64xf32>
    %cst_172 = arith.constant 0.000000e+00 : f32
    %546 = vector.broadcast %cst_172 : f32 to vector<8x64xf32>
    %547 = arith.maximumf %545, %546 : vector<8x64xf32>
    %cst_173 = arith.constant dense<0.000000e+00> : vector<8x32xf32>
    %548 = tpu.matmul %547, %351, %cst_173 {dimension_numbers = #tpu.dot_dimension_numbers<[1], [0], [0], [1], [0, 0, 1, 1], [], []>} : vector<8x64xf32>, vector<64x32xf32>, vector<8x32xf32> -> vector<8x32xf32>
    %549 = vector.broadcast %353 : vector<1x32xf32> to vector<8x32xf32>
    %550 = arith.addf %548, %549 : vector<8x32xf32>
    %551 = arith.addf %542, %550 : vector<8x32xf32>
    %552 = arith.mulf %551, %551 : vector<8x32xf32>
    %553 = tpu.concatenate %551, %552 in 0 : vector<8x32xf32>, vector<8x32xf32> -> vector<16x32xf32>
    %cst_174 = arith.constant dense<0.000000e+00> : vector<16xf32>
    %554 = vector.multi_reduction <add>, %553, %cst_174 [1] : vector<16x32xf32> to vector<16xf32>
    %555 = vector.shape_cast %554 : vector<16xf32> to vector<16x1xf32>
    %cst_175 = arith.constant 3.125000e-02 : f32
    %556 = vector.broadcast %cst_175 : f32 to vector<16x1xf32>
    %557 = arith.mulf %555, %556 : vector<16x1xf32>
    %558 = vector.extract_strided_slice %557 {offsets = [0, 0], sizes = [8, 1], strides = [1, 1]} : vector<16x1xf32> to vector<8x1xf32>
    %559 = vector.extract_strided_slice %557 {offsets = [8, 0], sizes = [8, 1], strides = [1, 1]} : vector<16x1xf32> to vector<8x1xf32>
    %560 = arith.mulf %558, %558 : vector<8x1xf32>
    %561 = arith.subf %559, %560 : vector<8x1xf32>
    %562 = vector.broadcast %558 : vector<8x1xf32> to vector<8x32xf32>
    %563 = arith.subf %551, %562 : vector<8x32xf32>
    %cst_176 = arith.constant 9.99999974E-6 : f32
    %564 = vector.broadcast %cst_176 : f32 to vector<8x1xf32>
    %565 = arith.addf %561, %564 : vector<8x1xf32>
    %566 = math.rsqrt %565 : vector<8x1xf32>
    %567 = vector.broadcast %566 : vector<8x1xf32> to vector<8x32xf32>
    %568 = arith.mulf %563, %567 : vector<8x32xf32>
    %569 = vector.broadcast %397 : vector<1x32xf32> to vector<8x32xf32>
    %570 = arith.mulf %568, %569 : vector<8x32xf32>
    %571 = vector.broadcast %399 : vector<1x32xf32> to vector<8x32xf32>
    %572 = arith.addf %570, %571 : vector<8x32xf32>
    %c2_177 = arith.constant 2 : index
    %c0_178 = arith.constant 0 : index
    %c0_179 = arith.constant 0 : index
    %573 = vector.load %arg3[%c2_177, %c0_178, %c0_179] : memref<3x32x32xf32, #tpu.memory_space<vmem>>, vector<1x32x32xf32>
    %574 = vector.shape_cast %573 : vector<1x32x32xf32> to vector<32x32xf32>
    %c2_180 = arith.constant 2 : index
    %c0_181 = arith.constant 0 : index
    %c0_182 = arith.constant 0 : index
    %575 = vector.load %arg4[%c2_180, %c0_181, %c0_182] : memref<3x1x32xf32, #tpu.memory_space<vmem>>, vector<1x1x32xf32>
    %576 = vector.shape_cast %575 : vector<1x1x32xf32> to vector<1x32xf32>
    %c2_183 = arith.constant 2 : index
    %c0_184 = arith.constant 0 : index
    %c0_185 = arith.constant 0 : index
    %577 = vector.load %arg5[%c2_183, %c0_184, %c0_185] : memref<3x32x64xf32, #tpu.memory_space<vmem>>, vector<1x32x64xf32>
    %578 = vector.shape_cast %577 : vector<1x32x64xf32> to vector<32x64xf32>
    %c2_186 = arith.constant 2 : index
    %c0_187 = arith.constant 0 : index
    %c0_188 = arith.constant 0 : index
    %579 = vector.load %arg6[%c2_186, %c0_187, %c0_188] : memref<3x1x64xf32, #tpu.memory_space<vmem>>, vector<1x1x64xf32>
    %580 = vector.shape_cast %579 : vector<1x1x64xf32> to vector<1x64xf32>
    %c2_189 = arith.constant 2 : index
    %c0_190 = arith.constant 0 : index
    %c0_191 = arith.constant 0 : index
    %581 = vector.load %arg7[%c2_189, %c0_190, %c0_191] : memref<3x32x32xf32, #tpu.memory_space<vmem>>, vector<1x32x32xf32>
    %582 = vector.shape_cast %581 : vector<1x32x32xf32> to vector<32x32xf32>
    %c2_192 = arith.constant 2 : index
    %c0_193 = arith.constant 0 : index
    %c0_194 = arith.constant 0 : index
    %583 = vector.load %arg8[%c2_192, %c0_193, %c0_194] : memref<3x1x32xf32, #tpu.memory_space<vmem>>, vector<1x1x32xf32>
    %584 = vector.shape_cast %583 : vector<1x1x32xf32> to vector<1x32xf32>
    %c2_195 = arith.constant 2 : index
    %c0_196 = arith.constant 0 : index
    %c0_197 = arith.constant 0 : index
    %585 = vector.load %arg9[%c2_195, %c0_196, %c0_197] : memref<3x2x32xf32, #tpu.memory_space<vmem>>, vector<1x2x32xf32>
    %586 = vector.shape_cast %585 : vector<1x2x32xf32> to vector<2x32xf32>
    %c2_198 = arith.constant 2 : index
    %c0_199 = arith.constant 0 : index
    %c0_200 = arith.constant 0 : index
    %c0_201 = arith.constant 0 : index
    %587 = vector.load %arg10[%c2_198, %c0_199, %c0_200, %c0_201] : memref<3x3x2x32xf32, #tpu.memory_space<vmem>>, vector<1x3x2x32xf32>
    %588 = vector.shape_cast %587 : vector<1x3x2x32xf32> to vector<3x2x32xf32>
    %c2_202 = arith.constant 2 : index
    %c0_203 = arith.constant 0 : index
    %c0_204 = arith.constant 0 : index
    %589 = vector.load %arg11[%c2_202, %c0_203, %c0_204] : memref<3x32x64xf32, #tpu.memory_space<vmem>>, vector<1x32x64xf32>
    %590 = vector.shape_cast %589 : vector<1x32x64xf32> to vector<32x64xf32>
    %c2_205 = arith.constant 2 : index
    %c0_206 = arith.constant 0 : index
    %c0_207 = arith.constant 0 : index
    %591 = vector.load %arg12[%c2_205, %c0_206, %c0_207] : memref<3x1x64xf32, #tpu.memory_space<vmem>>, vector<1x1x64xf32>
    %592 = vector.shape_cast %591 : vector<1x1x64xf32> to vector<1x64xf32>
    %c2_208 = arith.constant 2 : index
    %c0_209 = arith.constant 0 : index
    %c0_210 = arith.constant 0 : index
    %593 = vector.load %arg13[%c2_208, %c0_209, %c0_210] : memref<3x64x32xf32, #tpu.memory_space<vmem>>, vector<1x64x32xf32>
    %594 = vector.shape_cast %593 : vector<1x64x32xf32> to vector<64x32xf32>
    %c2_211 = arith.constant 2 : index
    %c0_212 = arith.constant 0 : index
    %c0_213 = arith.constant 0 : index
    %595 = vector.load %arg14[%c2_211, %c0_212, %c0_213] : memref<3x1x32xf32, #tpu.memory_space<vmem>>, vector<1x1x32xf32>
    %596 = vector.shape_cast %595 : vector<1x1x32xf32> to vector<1x32xf32>
    %c2_214 = arith.constant 2 : index
    %c0_215 = arith.constant 0 : index
    %c0_216 = arith.constant 0 : index
    %c0_217 = arith.constant 0 : index
    %597 = vector.load %arg15[%c2_214, %c0_215, %c0_216, %c0_217] : memref<3x3x2x32xf32, #tpu.memory_space<vmem>>, vector<1x3x2x32xf32>
    %598 = vector.shape_cast %597 : vector<1x3x2x32xf32> to vector<3x2x32xf32>
    %599 = vector.extract_strided_slice %588 {offsets = [0, 0, 0], sizes = [1, 1, 32], strides = [1, 1, 1]} : vector<3x2x32xf32> to vector<1x1x32xf32>
    %600 = vector.shape_cast %599 : vector<1x1x32xf32> to vector<1x32xf32>
    %601 = vector.extract_strided_slice %588 {offsets = [0, 1, 0], sizes = [1, 1, 32], strides = [1, 1, 1]} : vector<3x2x32xf32> to vector<1x1x32xf32>
    %602 = vector.shape_cast %601 : vector<1x1x32xf32> to vector<1x32xf32>
    %603 = vector.extract_strided_slice %598 {offsets = [0, 0, 0], sizes = [1, 1, 32], strides = [1, 1, 1]} : vector<3x2x32xf32> to vector<1x1x32xf32>
    %604 = vector.shape_cast %603 : vector<1x1x32xf32> to vector<1x32xf32>
    %605 = vector.extract_strided_slice %598 {offsets = [0, 1, 0], sizes = [1, 1, 32], strides = [1, 1, 1]} : vector<3x2x32xf32> to vector<1x1x32xf32>
    %606 = vector.shape_cast %605 : vector<1x1x32xf32> to vector<1x32xf32>
    %cst_218 = arith.constant dense<0.000000e+00> : vector<8x32xf32>
    %607 = tpu.matmul %572, %574, %cst_218 {dimension_numbers = #tpu.dot_dimension_numbers<[1], [0], [0], [1], [0, 0, 1, 1], [], []>} : vector<8x32xf32>, vector<32x32xf32>, vector<8x32xf32> -> vector<8x32xf32>
    %608 = vector.broadcast %576 : vector<1x32xf32> to vector<8x32xf32>
    %609 = arith.addf %607, %608 : vector<8x32xf32>
    %cst_219 = arith.constant dense<0.000000e+00> : vector<8x64xf32>
    %610 = tpu.matmul %572, %578, %cst_219 {dimension_numbers = #tpu.dot_dimension_numbers<[1], [0], [0], [1], [0, 0, 1, 1], [], []>} : vector<8x32xf32>, vector<32x64xf32>, vector<8x64xf32> -> vector<8x64xf32>
    %611 = vector.broadcast %580 : vector<1x64xf32> to vector<8x64xf32>
    %612 = arith.addf %610, %611 : vector<8x64xf32>
    %613 = vector.extract_strided_slice %612 {offsets = [0, 0], sizes = [8, 32], strides = [1, 1]} : vector<8x64xf32> to vector<8x32xf32>
    %614 = vector.extract_strided_slice %612 {offsets = [0, 32], sizes = [8, 32], strides = [1, 1]} : vector<8x64xf32> to vector<8x32xf32>
    %615 = vector.extract_strided_slice %609 {offsets = [0, 0], sizes = [8, 8], strides = [1, 1]} : vector<8x32xf32> to vector<8x8xf32>
    %616 = vector.extract_strided_slice %613 {offsets = [0, 0], sizes = [8, 8], strides = [1, 1]} : vector<8x32xf32> to vector<8x8xf32>
    %617 = vector.extract_strided_slice %614 {offsets = [0, 0], sizes = [8, 8], strides = [1, 1]} : vector<8x32xf32> to vector<8x8xf32>
    %cst_220 = arith.constant dense<0.000000e+00> : vector<8x8xf32>
    %618 = tpu.matmul %615, %616, %cst_220 {dimension_numbers = #tpu.dot_dimension_numbers<[1], [1], [0], [0], [0, 0, 1, 0], [], []>} : vector<8x8xf32>, vector<8x8xf32>, vector<8x8xf32> -> vector<8x8xf32>
    %cst_221 = arith.constant 0.353553385 : f32
    %619 = vector.broadcast %cst_221 : f32 to vector<8x8xf32>
    %620 = arith.mulf %618, %619 : vector<8x8xf32>
    %621 = vector.broadcast %8 : vector<1x8xf32> to vector<8x8xf32>
    %622 = arith.addf %620, %621 : vector<8x8xf32>
    %cst_222 = arith.constant dense<0xFF800000> : vector<8xf32>
    %623 = vector.multi_reduction <maximumf>, %622, %cst_222 [1] : vector<8x8xf32> to vector<8xf32>
    %624 = vector.shape_cast %623 : vector<8xf32> to vector<8x1xf32>
    %625 = vector.broadcast %624 : vector<8x1xf32> to vector<8x8xf32>
    %626 = arith.subf %622, %625 : vector<8x8xf32>
    %627 = math.exp %626 : vector<8x8xf32>
    %cst_223 = arith.constant dense<0.000000e+00> : vector<8xf32>
    %628 = vector.multi_reduction <add>, %627, %cst_223 [1] : vector<8x8xf32> to vector<8xf32>
    %629 = vector.shape_cast %628 : vector<8xf32> to vector<8x1xf32>
    %630 = tpu.reciprocal %629 {approx = true} : vector<8x1xf32> -> vector<8x1xf32>
    %631 = vector.broadcast %630 : vector<8x1xf32> to vector<8x8xf32>
    %632 = arith.mulf %627, %631 : vector<8x8xf32>
    %cst_224 = arith.constant dense<0.000000e+00> : vector<8x8xf32>
    %633 = tpu.matmul %632, %617, %cst_224 {dimension_numbers = #tpu.dot_dimension_numbers<[1], [0], [0], [1], [0, 0, 1, 1], [], []>} : vector<8x8xf32>, vector<8x8xf32>, vector<8x8xf32> -> vector<8x8xf32>
    %634 = vector.extract_strided_slice %582 {offsets = [0, 0], sizes = [8, 32], strides = [1, 1]} : vector<32x32xf32> to vector<8x32xf32>
    %cst_225 = arith.constant dense<0.000000e+00> : vector<8x32xf32>
    %635 = tpu.matmul %633, %634, %cst_225 {dimension_numbers = #tpu.dot_dimension_numbers<[1], [0], [0], [1], [0, 0, 1, 1], [], []>} : vector<8x8xf32>, vector<8x32xf32>, vector<8x32xf32> -> vector<8x32xf32>
    %636 = vector.extract_strided_slice %609 {offsets = [0, 8], sizes = [8, 8], strides = [1, 1]} : vector<8x32xf32> to vector<8x8xf32>
    %637 = vector.extract_strided_slice %613 {offsets = [0, 8], sizes = [8, 8], strides = [1, 1]} : vector<8x32xf32> to vector<8x8xf32>
    %638 = vector.extract_strided_slice %614 {offsets = [0, 8], sizes = [8, 8], strides = [1, 1]} : vector<8x32xf32> to vector<8x8xf32>
    %cst_226 = arith.constant dense<0.000000e+00> : vector<8x8xf32>
    %639 = tpu.matmul %636, %637, %cst_226 {dimension_numbers = #tpu.dot_dimension_numbers<[1], [1], [0], [0], [0, 0, 1, 0], [], []>} : vector<8x8xf32>, vector<8x8xf32>, vector<8x8xf32> -> vector<8x8xf32>
    %cst_227 = arith.constant 0.353553385 : f32
    %640 = vector.broadcast %cst_227 : f32 to vector<8x8xf32>
    %641 = arith.mulf %639, %640 : vector<8x8xf32>
    %642 = vector.broadcast %8 : vector<1x8xf32> to vector<8x8xf32>
    %643 = arith.addf %641, %642 : vector<8x8xf32>
    %cst_228 = arith.constant dense<0xFF800000> : vector<8xf32>
    %644 = vector.multi_reduction <maximumf>, %643, %cst_228 [1] : vector<8x8xf32> to vector<8xf32>
    %645 = vector.shape_cast %644 : vector<8xf32> to vector<8x1xf32>
    %646 = vector.broadcast %645 : vector<8x1xf32> to vector<8x8xf32>
    %647 = arith.subf %643, %646 : vector<8x8xf32>
    %648 = math.exp %647 : vector<8x8xf32>
    %cst_229 = arith.constant dense<0.000000e+00> : vector<8xf32>
    %649 = vector.multi_reduction <add>, %648, %cst_229 [1] : vector<8x8xf32> to vector<8xf32>
    %650 = vector.shape_cast %649 : vector<8xf32> to vector<8x1xf32>
    %651 = tpu.reciprocal %650 {approx = true} : vector<8x1xf32> -> vector<8x1xf32>
    %652 = vector.broadcast %651 : vector<8x1xf32> to vector<8x8xf32>
    %653 = arith.mulf %648, %652 : vector<8x8xf32>
    %cst_230 = arith.constant dense<0.000000e+00> : vector<8x8xf32>
    %654 = tpu.matmul %653, %638, %cst_230 {dimension_numbers = #tpu.dot_dimension_numbers<[1], [0], [0], [1], [0, 0, 1, 1], [], []>} : vector<8x8xf32>, vector<8x8xf32>, vector<8x8xf32> -> vector<8x8xf32>
    %655 = vector.extract_strided_slice %582 {offsets = [8, 0], sizes = [8, 32], strides = [1, 1]} : vector<32x32xf32> to vector<8x32xf32>
    %cst_231 = arith.constant dense<0.000000e+00> : vector<8x32xf32>
    %656 = tpu.matmul %654, %655, %cst_231 {dimension_numbers = #tpu.dot_dimension_numbers<[1], [0], [0], [1], [0, 0, 1, 1], [], []>} : vector<8x8xf32>, vector<8x32xf32>, vector<8x32xf32> -> vector<8x32xf32>
    %657 = arith.addf %635, %656 : vector<8x32xf32>
    %658 = vector.extract_strided_slice %609 {offsets = [0, 16], sizes = [8, 8], strides = [1, 1]} : vector<8x32xf32> to vector<8x8xf32>
    %659 = vector.extract_strided_slice %613 {offsets = [0, 16], sizes = [8, 8], strides = [1, 1]} : vector<8x32xf32> to vector<8x8xf32>
    %660 = vector.extract_strided_slice %614 {offsets = [0, 16], sizes = [8, 8], strides = [1, 1]} : vector<8x32xf32> to vector<8x8xf32>
    %cst_232 = arith.constant dense<0.000000e+00> : vector<8x8xf32>
    %661 = tpu.matmul %658, %659, %cst_232 {dimension_numbers = #tpu.dot_dimension_numbers<[1], [1], [0], [0], [0, 0, 1, 0], [], []>} : vector<8x8xf32>, vector<8x8xf32>, vector<8x8xf32> -> vector<8x8xf32>
    %cst_233 = arith.constant 0.353553385 : f32
    %662 = vector.broadcast %cst_233 : f32 to vector<8x8xf32>
    %663 = arith.mulf %661, %662 : vector<8x8xf32>
    %664 = vector.broadcast %8 : vector<1x8xf32> to vector<8x8xf32>
    %665 = arith.addf %663, %664 : vector<8x8xf32>
    %cst_234 = arith.constant dense<0xFF800000> : vector<8xf32>
    %666 = vector.multi_reduction <maximumf>, %665, %cst_234 [1] : vector<8x8xf32> to vector<8xf32>
    %667 = vector.shape_cast %666 : vector<8xf32> to vector<8x1xf32>
    %668 = vector.broadcast %667 : vector<8x1xf32> to vector<8x8xf32>
    %669 = arith.subf %665, %668 : vector<8x8xf32>
    %670 = math.exp %669 : vector<8x8xf32>
    %cst_235 = arith.constant dense<0.000000e+00> : vector<8xf32>
    %671 = vector.multi_reduction <add>, %670, %cst_235 [1] : vector<8x8xf32> to vector<8xf32>
    %672 = vector.shape_cast %671 : vector<8xf32> to vector<8x1xf32>
    %673 = tpu.reciprocal %672 {approx = true} : vector<8x1xf32> -> vector<8x1xf32>
    %674 = vector.broadcast %673 : vector<8x1xf32> to vector<8x8xf32>
    %675 = arith.mulf %670, %674 : vector<8x8xf32>
    %cst_236 = arith.constant dense<0.000000e+00> : vector<8x8xf32>
    %676 = tpu.matmul %675, %660, %cst_236 {dimension_numbers = #tpu.dot_dimension_numbers<[1], [0], [0], [1], [0, 0, 1, 1], [], []>} : vector<8x8xf32>, vector<8x8xf32>, vector<8x8xf32> -> vector<8x8xf32>
    %677 = vector.extract_strided_slice %582 {offsets = [16, 0], sizes = [8, 32], strides = [1, 1]} : vector<32x32xf32> to vector<8x32xf32>
    %cst_237 = arith.constant dense<0.000000e+00> : vector<8x32xf32>
    %678 = tpu.matmul %676, %677, %cst_237 {dimension_numbers = #tpu.dot_dimension_numbers<[1], [0], [0], [1], [0, 0, 1, 1], [], []>} : vector<8x8xf32>, vector<8x32xf32>, vector<8x32xf32> -> vector<8x32xf32>
    %679 = arith.addf %657, %678 : vector<8x32xf32>
    %680 = vector.extract_strided_slice %609 {offsets = [0, 24], sizes = [8, 8], strides = [1, 1]} : vector<8x32xf32> to vector<8x8xf32>
    %681 = vector.extract_strided_slice %613 {offsets = [0, 24], sizes = [8, 8], strides = [1, 1]} : vector<8x32xf32> to vector<8x8xf32>
    %682 = vector.extract_strided_slice %614 {offsets = [0, 24], sizes = [8, 8], strides = [1, 1]} : vector<8x32xf32> to vector<8x8xf32>
    %cst_238 = arith.constant dense<0.000000e+00> : vector<8x8xf32>
    %683 = tpu.matmul %680, %681, %cst_238 {dimension_numbers = #tpu.dot_dimension_numbers<[1], [1], [0], [0], [0, 0, 1, 0], [], []>} : vector<8x8xf32>, vector<8x8xf32>, vector<8x8xf32> -> vector<8x8xf32>
    %cst_239 = arith.constant 0.353553385 : f32
    %684 = vector.broadcast %cst_239 : f32 to vector<8x8xf32>
    %685 = arith.mulf %683, %684 : vector<8x8xf32>
    %686 = vector.broadcast %8 : vector<1x8xf32> to vector<8x8xf32>
    %687 = arith.addf %685, %686 : vector<8x8xf32>
    %cst_240 = arith.constant dense<0xFF800000> : vector<8xf32>
    %688 = vector.multi_reduction <maximumf>, %687, %cst_240 [1] : vector<8x8xf32> to vector<8xf32>
    %689 = vector.shape_cast %688 : vector<8xf32> to vector<8x1xf32>
    %690 = vector.broadcast %689 : vector<8x1xf32> to vector<8x8xf32>
    %691 = arith.subf %687, %690 : vector<8x8xf32>
    %692 = math.exp %691 : vector<8x8xf32>
    %cst_241 = arith.constant dense<0.000000e+00> : vector<8xf32>
    %693 = vector.multi_reduction <add>, %692, %cst_241 [1] : vector<8x8xf32> to vector<8xf32>
    %694 = vector.shape_cast %693 : vector<8xf32> to vector<8x1xf32>
    %695 = tpu.reciprocal %694 {approx = true} : vector<8x1xf32> -> vector<8x1xf32>
    %696 = vector.broadcast %695 : vector<8x1xf32> to vector<8x8xf32>
    %697 = arith.mulf %692, %696 : vector<8x8xf32>
    %cst_242 = arith.constant dense<0.000000e+00> : vector<8x8xf32>
    %698 = tpu.matmul %697, %682, %cst_242 {dimension_numbers = #tpu.dot_dimension_numbers<[1], [0], [0], [1], [0, 0, 1, 1], [], []>} : vector<8x8xf32>, vector<8x8xf32>, vector<8x8xf32> -> vector<8x8xf32>
    %699 = vector.extract_strided_slice %582 {offsets = [24, 0], sizes = [8, 32], strides = [1, 1]} : vector<32x32xf32> to vector<8x32xf32>
    %cst_243 = arith.constant dense<0.000000e+00> : vector<8x32xf32>
    %700 = tpu.matmul %698, %699, %cst_243 {dimension_numbers = #tpu.dot_dimension_numbers<[1], [0], [0], [1], [0, 0, 1, 1], [], []>} : vector<8x8xf32>, vector<8x32xf32>, vector<8x32xf32> -> vector<8x32xf32>
    %701 = arith.addf %679, %700 : vector<8x32xf32>
    %702 = vector.broadcast %584 : vector<1x32xf32> to vector<8x32xf32>
    %703 = arith.addf %701, %702 : vector<8x32xf32>
    %704 = arith.addf %572, %703 : vector<8x32xf32>
    %705 = vector.extract_strided_slice %586 {offsets = [0, 0], sizes = [1, 32], strides = [1, 1]} : vector<2x32xf32> to vector<1x32xf32>
    %706 = vector.extract_strided_slice %586 {offsets = [1, 0], sizes = [1, 32], strides = [1, 1]} : vector<2x32xf32> to vector<1x32xf32>
    %707 = arith.mulf %704, %704 : vector<8x32xf32>
    %708 = tpu.concatenate %704, %707 in 0 : vector<8x32xf32>, vector<8x32xf32> -> vector<16x32xf32>
    %cst_244 = arith.constant dense<0.000000e+00> : vector<16xf32>
    %709 = vector.multi_reduction <add>, %708, %cst_244 [1] : vector<16x32xf32> to vector<16xf32>
    %710 = vector.shape_cast %709 : vector<16xf32> to vector<16x1xf32>
    %cst_245 = arith.constant 3.125000e-02 : f32
    %711 = vector.broadcast %cst_245 : f32 to vector<16x1xf32>
    %712 = arith.mulf %710, %711 : vector<16x1xf32>
    %713 = vector.extract_strided_slice %712 {offsets = [0, 0], sizes = [8, 1], strides = [1, 1]} : vector<16x1xf32> to vector<8x1xf32>
    %714 = vector.extract_strided_slice %712 {offsets = [8, 0], sizes = [8, 1], strides = [1, 1]} : vector<16x1xf32> to vector<8x1xf32>
    %715 = arith.mulf %713, %713 : vector<8x1xf32>
    %716 = arith.subf %714, %715 : vector<8x1xf32>
    %717 = vector.broadcast %713 : vector<8x1xf32> to vector<8x32xf32>
    %718 = arith.subf %704, %717 : vector<8x32xf32>
    %cst_246 = arith.constant 9.99999974E-6 : f32
    %719 = vector.broadcast %cst_246 : f32 to vector<8x1xf32>
    %720 = arith.addf %716, %719 : vector<8x1xf32>
    %721 = math.rsqrt %720 : vector<8x1xf32>
    %722 = vector.broadcast %721 : vector<8x1xf32> to vector<8x32xf32>
    %723 = arith.mulf %718, %722 : vector<8x32xf32>
    %724 = vector.broadcast %705 : vector<1x32xf32> to vector<8x32xf32>
    %725 = arith.mulf %723, %724 : vector<8x32xf32>
    %726 = vector.broadcast %706 : vector<1x32xf32> to vector<8x32xf32>
    %727 = arith.addf %725, %726 : vector<8x32xf32>
    %728 = arith.addf %572, %727 : vector<8x32xf32>
    %729 = arith.mulf %728, %728 : vector<8x32xf32>
    %730 = tpu.concatenate %728, %729 in 0 : vector<8x32xf32>, vector<8x32xf32> -> vector<16x32xf32>
    %cst_247 = arith.constant dense<0.000000e+00> : vector<16xf32>
    %731 = vector.multi_reduction <add>, %730, %cst_247 [1] : vector<16x32xf32> to vector<16xf32>
    %732 = vector.shape_cast %731 : vector<16xf32> to vector<16x1xf32>
    %cst_248 = arith.constant 3.125000e-02 : f32
    %733 = vector.broadcast %cst_248 : f32 to vector<16x1xf32>
    %734 = arith.mulf %732, %733 : vector<16x1xf32>
    %735 = vector.extract_strided_slice %734 {offsets = [0, 0], sizes = [8, 1], strides = [1, 1]} : vector<16x1xf32> to vector<8x1xf32>
    %736 = vector.extract_strided_slice %734 {offsets = [8, 0], sizes = [8, 1], strides = [1, 1]} : vector<16x1xf32> to vector<8x1xf32>
    %737 = arith.mulf %735, %735 : vector<8x1xf32>
    %738 = arith.subf %736, %737 : vector<8x1xf32>
    %739 = vector.broadcast %735 : vector<8x1xf32> to vector<8x32xf32>
    %740 = arith.subf %728, %739 : vector<8x32xf32>
    %cst_249 = arith.constant 9.99999974E-6 : f32
    %741 = vector.broadcast %cst_249 : f32 to vector<8x1xf32>
    %742 = arith.addf %738, %741 : vector<8x1xf32>
    %743 = math.rsqrt %742 : vector<8x1xf32>
    %744 = vector.broadcast %743 : vector<8x1xf32> to vector<8x32xf32>
    %745 = arith.mulf %740, %744 : vector<8x32xf32>
    %746 = vector.broadcast %600 : vector<1x32xf32> to vector<8x32xf32>
    %747 = arith.mulf %745, %746 : vector<8x32xf32>
    %748 = vector.broadcast %602 : vector<1x32xf32> to vector<8x32xf32>
    %749 = arith.addf %747, %748 : vector<8x32xf32>
    %cst_250 = arith.constant dense<0.000000e+00> : vector<8x64xf32>
    %750 = tpu.matmul %749, %590, %cst_250 {dimension_numbers = #tpu.dot_dimension_numbers<[1], [0], [0], [1], [0, 0, 1, 1], [], []>} : vector<8x32xf32>, vector<32x64xf32>, vector<8x64xf32> -> vector<8x64xf32>
    %751 = vector.broadcast %592 : vector<1x64xf32> to vector<8x64xf32>
    %752 = arith.addf %750, %751 : vector<8x64xf32>
    %cst_251 = arith.constant 0.000000e+00 : f32
    %753 = vector.broadcast %cst_251 : f32 to vector<8x64xf32>
    %754 = arith.maximumf %752, %753 : vector<8x64xf32>
    %cst_252 = arith.constant dense<0.000000e+00> : vector<8x32xf32>
    %755 = tpu.matmul %754, %594, %cst_252 {dimension_numbers = #tpu.dot_dimension_numbers<[1], [0], [0], [1], [0, 0, 1, 1], [], []>} : vector<8x64xf32>, vector<64x32xf32>, vector<8x32xf32> -> vector<8x32xf32>
    %756 = vector.broadcast %596 : vector<1x32xf32> to vector<8x32xf32>
    %757 = arith.addf %755, %756 : vector<8x32xf32>
    %758 = arith.addf %749, %757 : vector<8x32xf32>
    %759 = arith.mulf %758, %758 : vector<8x32xf32>
    %760 = tpu.concatenate %758, %759 in 0 : vector<8x32xf32>, vector<8x32xf32> -> vector<16x32xf32>
    %cst_253 = arith.constant dense<0.000000e+00> : vector<16xf32>
    %761 = vector.multi_reduction <add>, %760, %cst_253 [1] : vector<16x32xf32> to vector<16xf32>
    %762 = vector.shape_cast %761 : vector<16xf32> to vector<16x1xf32>
    %cst_254 = arith.constant 3.125000e-02 : f32
    %763 = vector.broadcast %cst_254 : f32 to vector<16x1xf32>
    %764 = arith.mulf %762, %763 : vector<16x1xf32>
    %765 = vector.extract_strided_slice %764 {offsets = [0, 0], sizes = [8, 1], strides = [1, 1]} : vector<16x1xf32> to vector<8x1xf32>
    %766 = vector.extract_strided_slice %764 {offsets = [8, 0], sizes = [8, 1], strides = [1, 1]} : vector<16x1xf32> to vector<8x1xf32>
    %767 = arith.mulf %765, %765 : vector<8x1xf32>
    %768 = arith.subf %766, %767 : vector<8x1xf32>
    %769 = vector.broadcast %765 : vector<8x1xf32> to vector<8x32xf32>
    %770 = arith.subf %758, %769 : vector<8x32xf32>
    %cst_255 = arith.constant 9.99999974E-6 : f32
    %771 = vector.broadcast %cst_255 : f32 to vector<8x1xf32>
    %772 = arith.addf %768, %771 : vector<8x1xf32>
    %773 = math.rsqrt %772 : vector<8x1xf32>
    %774 = vector.broadcast %773 : vector<8x1xf32> to vector<8x32xf32>
    %775 = arith.mulf %770, %774 : vector<8x32xf32>
    %776 = vector.broadcast %604 : vector<1x32xf32> to vector<8x32xf32>
    %777 = arith.mulf %775, %776 : vector<8x32xf32>
    %778 = vector.broadcast %606 : vector<1x32xf32> to vector<8x32xf32>
    %779 = arith.addf %777, %778 : vector<8x32xf32>
    %780 = tpu.concatenate %779, %327, %328, %329 in 1 : vector<8x32xf32>, vector<8x32xf32>, vector<8x32xf32>, vector<8x32xf32> -> vector<8x128xf32>
    %c0_256 = arith.constant 0 : index
    %c0_257 = arith.constant 0 : index
    %c0_258 = arith.constant 0 : index
    %781 = vector.load %arg18[%c0_256, %c0_257, %c0_258] : memref<1x8x128xf32, #tpu.memory_space<vmem>>, vector<1x8x128xf32>
    %782 = vector.shape_cast %781 : vector<1x8x128xf32> to vector<8x128xf32>
    %783 = vector.shape_cast %780 : vector<8x128xf32> to vector<1x8x128xf32>
    tpu.vector_store %arg18[%c0_256, %c0_257, %c0_258], %783 {strides = array<i32>} : memref<1x8x128xf32, #tpu.memory_space<vmem>>, vector<1x8x128xf32>,
    return
  }
  func.func @transform_0(%arg0: i32) -> (i32, i32, i32) {
    %c0_i32 = arith.constant 0 : i32
    %c0_i32_0 = arith.constant 0 : i32
    %c0_i32_1 = arith.constant 0 : i32
    return %arg0, %c0_i32, %c0_i32_0 : i32, i32, i32
  }
  func.func @transform_1(%arg0: i32) -> (i32, i32, i32) {
    %c0_i32 = arith.constant 0 : i32
    %c0_i32_0 = arith.constant 0 : i32
    %c0_i32_1 = arith.constant 0 : i32
    return %arg0, %c0_i32, %c0_i32_0 : i32, i32, i32
  }
  func.func @transform_2(%arg0: i32) -> (i32, i32, i32) {
    %c0_i32 = arith.constant 0 : i32
    %c0_i32_0 = arith.constant 0 : i32
    %c0_i32_1 = arith.constant 0 : i32
    %c0_i32_2 = arith.constant 0 : i32
    return %c0_i32, %c0_i32_0, %c0_i32_1 : i32, i32, i32
  }
  func.func @transform_3(%arg0: i32) -> (i32, i32, i32) {
    %c0_i32 = arith.constant 0 : i32
    %c0_i32_0 = arith.constant 0 : i32
    %c0_i32_1 = arith.constant 0 : i32
    %c0_i32_2 = arith.constant 0 : i32
    return %c0_i32, %c0_i32_0, %c0_i32_1 : i32, i32, i32
  }
  func.func @transform_4(%arg0: i32) -> (i32, i32, i32) {
    %c0_i32 = arith.constant 0 : i32
    %c0_i32_0 = arith.constant 0 : i32
    %c0_i32_1 = arith.constant 0 : i32
    %c0_i32_2 = arith.constant 0 : i32
    return %c0_i32, %c0_i32_0, %c0_i32_1 : i32, i32, i32
  }
  func.func @transform_5(%arg0: i32) -> (i32, i32, i32) {
    %c0_i32 = arith.constant 0 : i32
    %c0_i32_0 = arith.constant 0 : i32
    %c0_i32_1 = arith.constant 0 : i32
    %c0_i32_2 = arith.constant 0 : i32
    return %c0_i32, %c0_i32_0, %c0_i32_1 : i32, i32, i32
  }
  func.func @transform_6(%arg0: i32) -> (i32, i32, i32) {
    %c0_i32 = arith.constant 0 : i32
    %c0_i32_0 = arith.constant 0 : i32
    %c0_i32_1 = arith.constant 0 : i32
    %c0_i32_2 = arith.constant 0 : i32
    return %c0_i32, %c0_i32_0, %c0_i32_1 : i32, i32, i32
  }
  func.func @transform_7(%arg0: i32) -> (i32, i32, i32) {
    %c0_i32 = arith.constant 0 : i32
    %c0_i32_0 = arith.constant 0 : i32
    %c0_i32_1 = arith.constant 0 : i32
    %c0_i32_2 = arith.constant 0 : i32
    return %c0_i32, %c0_i32_0, %c0_i32_1 : i32, i32, i32
  }
  func.func @transform_8(%arg0: i32) -> (i32, i32, i32) {
    %c0_i32 = arith.constant 0 : i32
    %c0_i32_0 = arith.constant 0 : i32
    %c0_i32_1 = arith.constant 0 : i32
    %c0_i32_2 = arith.constant 0 : i32
    return %c0_i32, %c0_i32_0, %c0_i32_1 : i32, i32, i32
  }
  func.func @transform_9(%arg0: i32) -> (i32, i32, i32, i32) {
    %c0_i32 = arith.constant 0 : i32
    %c0_i32_0 = arith.constant 0 : i32
    %c0_i32_1 = arith.constant 0 : i32
    %c0_i32_2 = arith.constant 0 : i32
    %c0_i32_3 = arith.constant 0 : i32
    return %c0_i32, %c0_i32_0, %c0_i32_1, %c0_i32_2 : i32, i32, i32, i32
  }
  func.func @transform_10(%arg0: i32) -> (i32, i32, i32) {
    %c0_i32 = arith.constant 0 : i32
    %c0_i32_0 = arith.constant 0 : i32
    %c0_i32_1 = arith.constant 0 : i32
    %c0_i32_2 = arith.constant 0 : i32
    return %c0_i32, %c0_i32_0, %c0_i32_1 : i32, i32, i32
  }
  func.func @transform_11(%arg0: i32) -> (i32, i32, i32) {
    %c0_i32 = arith.constant 0 : i32
    %c0_i32_0 = arith.constant 0 : i32
    %c0_i32_1 = arith.constant 0 : i32
    %c0_i32_2 = arith.constant 0 : i32
    return %c0_i32, %c0_i32_0, %c0_i32_1 : i32, i32, i32
  }
  func.func @transform_12(%arg0: i32) -> (i32, i32, i32) {
    %c0_i32 = arith.constant 0 : i32
    %c0_i32_0 = arith.constant 0 : i32
    %c0_i32_1 = arith.constant 0 : i32
    %c0_i32_2 = arith.constant 0 : i32
    return %c0_i32, %c0_i32_0, %c0_i32_1 : i32, i32, i32
  }
  func.func @transform_13(%arg0: i32) -> (i32, i32, i32) {
    %c0_i32 = arith.constant 0 : i32
    %c0_i32_0 = arith.constant 0 : i32
    %c0_i32_1 = arith.constant 0 : i32
    %c0_i32_2 = arith.constant 0 : i32
    return %c0_i32, %c0_i32_0, %c0_i32_1 : i32, i32, i32
  }
  func.func @transform_14(%arg0: i32) -> (i32, i32, i32, i32) {
    %c0_i32 = arith.constant 0 : i32
    %c0_i32_0 = arith.constant 0 : i32
    %c0_i32_1 = arith.constant 0 : i32
    %c0_i32_2 = arith.constant 0 : i32
    %c0_i32_3 = arith.constant 0 : i32
    return %c0_i32, %c0_i32_0, %c0_i32_1, %c0_i32_2 : i32, i32, i32, i32
  }
  func.func @transform_15(%arg0: i32) -> (i32, i32, i32) {
    %c0_i32 = arith.constant 0 : i32
    %c0_i32_0 = arith.constant 0 : i32
    %c0_i32_1 = arith.constant 0 : i32
    %c0_i32_2 = arith.constant 0 : i32
    return %c0_i32, %c0_i32_0, %c0_i32_1 : i32, i32, i32
  }
  func.func @transform_16(%arg0: i32) -> (i32, i32) {
    %c0_i32 = arith.constant 0 : i32
    %c0_i32_0 = arith.constant 0 : i32
    %c0_i32_1 = arith.constant 0 : i32
    return %c0_i32, %c0_i32_0 : i32, i32
  }
  func.func @transform_17(%arg0: i32) -> (i32, i32, i32) {
    %c0_i32 = arith.constant 0 : i32
    %c0_i32_0 = arith.constant 0 : i32
    %c0_i32_1 = arith.constant 0 : i32
    return %arg0, %c0_i32, %c0_i32_0 : i32, i32, i32
  }
}

</mosaic_0001>

<bundles_post_ra>
// kernel: multi_level_encoder_forward.1
= control target key start
LH: loop header
LB: loop body
LE: loop exit
PB: predicated region body
PF: predicated region fallthrough
CT: control target
= control target key end

     0   :  { %s7809_s24 = smov 0   ;;  %s9239_s0 = inlined_call_operand.vmem [shape: f32[2,8,128], index: 0, kind: input, shape index: {}]   ;;  %s9240_s1 = inlined_call_operand.vmem [shape: f32[2,3,8], index: 1, kind: input, shape index: {}]   ;;  %s9241_s2 = inlined_call_operand.vmem [shape: f32[3,32,32], index: 2, kind: input, shape index: {}]   ;;  %s9242_s3 = inlined_call_operand.vmem [shape: f32[3,1,32], index: 3, kind: input, shape index: {}]   ;;  %s9243_s4 = inlined_call_operand.vmem [shape: f32[3,32,64], index: 4, kind: input, shape index: {}]   ;;  %s9244_s5 = inlined_call_operand.vmem [shape: f32[3,1,64], index: 5, kind: input, shape index: {}]   ;;  %s9245_s6 = inlined_call_operand.vmem [shape: f32[3,32,32], index: 6, kind: input, shape index: {}]   ;;  %s9246_s7 = inlined_call_operand.vmem [shape: f32[3,1,32], index: 7, kind: input, shape index: {}]   ;;  %s9247_s8 = inlined_call_operand.vmem [shape: f32[3,2,32], index: 8, kind: input, shape index: {}]   ;;  %s9248_s9 = inlined_call_operand.vmem [shape: f32[3,3,2,32], index: 9, kind: input, shape index: {}]   ;;  %s9249_s10 = inlined_call_operand.vmem [shape: f32[3,32,64], index: 10, kind: input, shape index: {}]   ;;  %s9250_s11 = inlined_call_operand.vmem [shape: f32[3,1,64], index: 11, kind: input, shape index: {}]   ;;  %s9251_s12 = inlined_call_operand.vmem [shape: f32[3,64,32], index: 12, kind: input, shape index: {}]   ;;  %s9252_s13 = inlined_call_operand.vmem [shape: f32[3,1,32], index: 13, kind: input, shape index: {}]   ;;  %s9253_s14 = inlined_call_operand.vmem [shape: f32[3,3,2,32], index: 14, kind: input, shape index: {}]   ;;  %s9254_s15 = inlined_call_operand.vmem [shape: f32[3,32,3], index: 15, kind: input, shape index: {}]   ;;  %s9255_s16 = inlined_call_operand.vmem [shape: f32[1,3], index: 16, kind: input, shape index: {}]   ;;  %s9256_s17 = inlined_call_operand.vmem [shape: f32[2,8,128], index: 17, kind: output, shape index: {}]  }
   0x1   :  { %9269 = sst [smem:[#allocation2_spill]] %s9239_s0 }
   0x2   :  { %9270 = sst [smem:[#allocation3_spill]] %s9240_s1 }
   0x3 LB: > { %s6460_s25 = sadd.s32 4294967295, %s7700_s24   ;;  %p6464_p0 = scmp.ge.s32.totalorder %s7700_s24, 1  ;;  %s7700_s24 = sphi %s7809_s24, %s27_s24  }
   0x4   : > { %p495_p1 = scmp.lt.s32.totalorder %s7700_s24, 3 }
   0x6   : > { %p496_p2 = pnand %p6464_p0, %p495_p1 }
   0x7   : > { %p549_p3 = scmp.lt.s32.totalorder (!%p496_p2), %s6460_s25, 1  ;;  %s9271_s28 = sld [smem:[#allocation2_spill]] (!%p496_p2) }
   0x8   : > { %499 = sbr.rel (%p496_p2) target bundleno = 11507 (0x2cf3), region = 88  ;;  %s7702_s1 = smov (!%p496_p2), 96  }
   0x9   : > { %s9258_s20 = smov (!%p496_p2), 32   ;;  %s9259_s21 = smov (!%p496_p2), 64  }
   0xa   : > { %s7705_s30 = smov (!%p496_p2), 8   ;;  %s7706_s18 = smov (!%p496_p2), 16  }
   0xb   : > { %s7707_s19 = smov (!%p496_p2), 24   ;;  %s9264_s26 = smov (!%p496_p2), 80  }
   0xc   : > { %s9260_s27 = smov (!%p496_p2), 72  }
   0xd   : > { %v566_v0 = vld [vmem:[%s9241_s2 + $0x18] sm:$0xff]  ;;  %v565_v2 = vld [vmem:[%s9241_s2 + $0x10] sm:$0xff]  ;;  %s9282_s25 = smov (!%p549_p3, %s6460_s25), 1  ;;  %v564_v4 = vld [vmem:[%s9241_s2 + $0x8] sm:$0xff]  ;;  %vm702_vm0 = vcmask 261120   ;;  %vm608_vm1 = vcmask 64512   ;;  %v614_v37 = vlaneseq }
   0xe   : > { %v571_v1 = vld [vmem:[%s9243_s4 + $0x18] sm:$0xff]  ;;  %6972 = vmatprep.subr.mxu0 %v566_v0  ;;  %v570_v3 = vld [vmem:[%s9243_s4 + $0x10] sm:$0xff]  ;;  %v569_v5 = vld [vmem:[%s9243_s4 + $0x8] sm:$0xff]  ;;  %s9257_s23 = sshll.u32 %s9282_s25, 3  ;;  %s6466_s22 = sshll.u32 %s9282_s25, 2  ;;  %vm610_vm2 = vcmask 130048  }
   0xf   : > { %6989 = vmatprep.subr.mxu1 %v571_v1  ;;  %6973 = vmatpush3.msra.mxu0 %v566_v0  ;;  %s7843_s29 = scalar_lea.vmem %s9271_s28, %s9257_s23  ;;  %v563_v6 = vld [vmem:[%s9241_s2] sm:$0xff]  ;;  %s9272_s28 = sld [smem:[#allocation3_spill]]  ;;  %v7940_v40 = vshrl.u32 %v614_v37, 7  ;;  %vm612_vm3 = vcmask 195584   ;;  %vm3070_vm4 = vcmask 523264   ;;  %vm7715_vm5 = vmmov 0  }
  0x10   : > { %6990 = vmatpush3.msra.mxu1 %v571_v1  ;;  %6974 = vmatprep.subr.mxu0 %v565_v2  ;;  %v568_v7 = vld [vmem:[%s9243_s4] sm:$0xff]  ;;  %s7708_s23 = smov 120   ;;  %vm3579_vm6 = vcmask 23552   ;;  %vm6392_vm7 = vcmask 785408  }
  0x11   : > { %6991 = vmatprep.subr.mxu1 %v570_v3  ;;  %6975 = vmatpush3.msra.mxu0 %v565_v2  ;;  %v561_v8 = vld [vmem:[%s7843_s29] sm:$0xff]  ;;  %v7944_v43 = vsub.s32 0, %v7940_v40 }
  0x12   : > { %6992 = vmatpush3.msra.mxu1 %v570_v3  ;;  %6976 = vmatprep.subr.mxu0 %v564_v4  ;;  %v6468_v17 = vld [vmem:[%s9242_s3] ss:$0 sm:$0xff] }
  0x13   : > { %6993 = vmatprep.subr.mxu1 %v569_v5  ;;  %6977 = vmatpush3.msra.mxu0 %v564_v4  ;;  %v6475_v21 = vld [vmem:[%s9244_s5] ss:$0 sm:$0xff] }
  0x14   : > { %6994 = vmatpush3.msra.mxu1 %v569_v5  ;;  %600 = vrot.lane.b32.xlu0 %v561_v8, %s7702_s1 }
  0x15   : > { %606 = vrot.lane.b32.xlu1 %v561_v8, %s9258_s20  ;;  %6978 = vmatprep.subr.mxu0 %v563_v6  ;;  %s7882_s0 = scalar_lea.vmem %s9272_s28, %s6466_s22  ;;  %s9266_s20 = smov 88  }
  0x16   : > { %6995 = vmatprep.subr.mxu1 %v568_v7  ;;  %6979 = vmatpush3.msra.mxu0 %v563_v6  ;;  %v562_v12 = vld [vmem:[%s7882_s0] sm:$0x7]  ;;  %s9275_s22 = smov 72  }
  0x17   : > { %6996 = vmatpush3.msra.mxu1 %v568_v7  ;;  %6980 = vmatprep.mubr.msk.f32.mxu0 %vm702_vm0, %v561_v8  ;;  %v619_v13 = vrot.slane %v562_v12, 1  ;;  %v630_v14 = vrot.slane %v562_v12, 2  ;;  %v609_v41 = vsel %vm608_vm1, %v562_v12, -1e+30 }
  0x18   : > { %6997 = vmatprep.mubr.msk.f32.mxu1 %vm702_vm0, %v561_v8  ;;  %603 = vrot.lane.b32.xlu0 %v561_v8, %s9259_s21  ;;  %v611_v44 = vsel %vm610_vm2, %v609_v41, -1e+30 }
  0x19   : > { %620 = vrot.lane.b32.xlu1 %v619_v13, %s7705_s30  ;;  %v613_v48 = vsel %vm612_vm3, %v611_v44, -1e+30  ;;  %s9267_s30 = smov 112  }
  0x1a   : > { %v7950_v53 = vrot.slane %v613_v48, %v7944_v43 }
  0x1c   : > { %631 = vrot.lane.b32.xlu0 %v630_v14, %s7706_s18  ;;  %s9262_s18 = smov 104  }
  0x1d   : > { %640 = vrot.lane.b32.xlu1 %v630_v14, %s7707_s19 }
  0x86   : > { %v7857_v9 = vpop.permute.xlu0 %600 }
  0x87   : > { %6981 = vmatmul.mubr.msk.f32.vlgmr.msra.gmra.mxu0 %vm702_vm0, %v7857_v9  ;;  %6998 = vmatmul.mubr.msk.f32.vlgmr.msra.gmra.mxu1 %vm702_vm0, %v7857_v9  ;;  %v7863_v10 = vpop.permute.xlu1 %606 }
  0x8a   : > { %v7865_v11 = vpop.permute.xlu0 %603 }
  0x8b   : > { %6983 = vmatprep.mubr.msk.f32.mxu0 %vm702_vm0, %v7865_v11  ;;  %7000 = vmatprep.mubr.msk.f32.mxu1 %vm702_vm0, %v7865_v11  ;;  %v621_v38 = vpop.permute.xlu1 %620 }
  0x8c   : > { %6984 = vmatmul.mubr.msk.f32.gmra.mxu0 %vm702_vm0, %v561_v8  ;;  %7001 = vmatmul.mubr.msk.f32.gmra.mxu1 %vm702_vm0, %v7863_v10  ;;  %v623_v39 = vsel %vm608_vm1, -1e+30, %v621_v38 }
  0x8d   : > { %6986 = vmatprep.mubr.msk.f32.mxu0 %vm702_vm0, %v7857_v9  ;;  %v624_v42 = vsel %vm610_vm2, %v623_v39, -1e+30 }
  0x8e   : > { %v625_v45 = vsel %vm612_vm3, %v624_v42, -1e+30  ;;  %v632_v46 = vpop.permute.xlu0 %631 }
  0x8f   : > { %v641_v47 = vpop.permute.xlu1 %640  ;;  %v7947_v49 = vrot.slane %v625_v45, %v7944_v43  ;;  %v634_v50 = vsel %vm610_vm2, -1e+30, %v632_v46 }
  0x90   : > { %6987 = vmatmul.mubr.msk.f32.gmra.mxu0 %vm702_vm0, %v7865_v11  ;;  %v643_v52 = vsel %vm612_vm3, -1e+30, %v641_v47  ;;  %v635_v56 = vsel %vm612_vm3, %v634_v50, -1e+30 }
  0x91   : > { %v7953_v58 = vrot.slane %v643_v52, %v7944_v43  ;;  %v7958_v63 = vrot.slane %v635_v56, %v7944_v43 }
 0x147   : > { %v6982_v15 = vpop.f32.mrf.mxu0  ;;  %v6999_v16 = vpop.f32.mrf.mxu1 }
 0x148   : > { %v7905_v26 = vadd.f32 %v6999_v16, %v6475_v21  ;;  %v7921_v32 = vadd.f32 %v6982_v15, %v6468_v17 }
 0x149   : > { %v775_v18 = vpop.f32.mrf.mxu0  ;;  %v878_v19 = vpop.f32.mrf.mxu1 }
 0x14a   : > { %v7888_v20 = vadd.f32 %v6468_v17, %v775_v18  ;;  %v7911_v28 = vadd.f32 %v6475_v21, %v878_v19 }
 0x14c   : > { %v7002_v22 = vpop.f32.mrf.mxu1  ;;  %7011 = vmatprep.mubr.msk.f32.mxu0 %vm608_vm1, %v7888_v20  ;;  %v6985_v27 = vpop.f32.mrf.mxu0 }
 0x14d   : > { %v7895_v23 = vadd.f32 %v7002_v22, %v6475_v21  ;;  %v7923_v33 = vadd.f32 %v6985_v27, %v6468_v17 }
 0x14e   : > { %v888_v24 = vpop.f32.mrf.mxu1  ;;  %v785_v29 = vpop.f32.mrf.mxu0 }
 0x14f   : > { %v7897_v25 = vadd.f32 %v6475_v21, %v888_v24  ;;  %7003 = vmatprep.subr.msk.mxu0 %vm608_vm1, %v7895_v23  ;;  %v7917_v31 = vadd.f32 %v6468_v17, %v785_v29 }
 0x150   : > { %7004 = vmatpush3.xpose.msk.msra.mxu0 %vm608_vm1, %v7895_v23  ;;  %v6988_v30 = vpop.f32.mrf.mxu0 }
 0x151   : > { %7005 = vmatprep.subr.msk.mxu0 %vm608_vm1, %v7897_v25  ;;  %v7935_v36 = vadd.f32 %v6988_v30, %v6468_v17 }
 0x152   : > { %v795_v34 = vpop.f32.mrf.mxu0 }
 0x153   : > { %v7929_v35 = vadd.f32 %v6468_v17, %v795_v34 }
 0x154   : > { %7006 = vmatpush3.xpose.msk.msra.mxu0 %vm608_vm1, %v7897_v25 }
 0x155   : > { %7007 = vmatprep.subr.msk.mxu0 %vm608_vm1, %v7905_v26 }
 0x158   : > { %7008 = vmatpush3.xpose.msk.msra.mxu0 %vm608_vm1, %v7905_v26 }
 0x159   : > { %7009 = vmatprep.subr.msk.mxu0 %vm608_vm1, %v7911_v28 }
 0x15c   : > { %7010 = vmatpush3.xpose.msk.msra.mxu0 %vm608_vm1, %v7911_v28 }
 0x15f   : > { %7012 = vmatmul.mubr.msk.f32.vlgmr.msra.gmra.mxu0 %vm608_vm1, %v7921_v32 }
 0x160   : > { %7014 = vmatprep.mubr.msk.f32.mxu0 %vm608_vm1, %v7917_v31 }
 0x163   : > { %7015 = vmatmul.mubr.msk.f32.gmra.mxu0 %vm608_vm1, %v7923_v33 }
 0x164   : > { %7017 = vmatprep.mubr.msk.f32.mxu0 %vm608_vm1, %v7929_v35 }
 0x167   : > { %7018 = vmatmul.mubr.msk.f32.gmra.mxu0 %vm608_vm1, %v7935_v36 }
 0x21f   : > { %v7013_v51 = vpop.f32.mrf.mxu0 }
 0x220   : > { %v1023_v54 = vmul.f32 0.35355338, %v7013_v51 }
 0x221   : > { %v993_v55 = vpop.f32.mrf.mxu0 }
 0x222   : > { %v1022_v57 = vmul.f32 0.35355338, %v993_v55  ;;  %v1029_v59 = vadd.f32 %v1023_v54, %v7947_v49 }
 0x223   : > { %v7016_v60 = vpop.f32.mrf.mxu0 }
 0x224   : > { %v1025_v61 = vmul.f32 0.35355338, %v7016_v60  ;;  %v1037_v62 = vsel %vm702_vm0, %v1029_v59, -inf  ;;  %v1028_v0 = vadd.f32 %v1022_v57, %v7950_v53 }
 0x225   : > { %1038 = vmax.xlane.f32.xlu1 %v1037_v62  ;;  %v1003_v1 = vpop.f32.mrf.mxu0 }
 0x226   : > { %v1024_v2 = vmul.f32 0.35355338, %v1003_v1  ;;  %v1034_v3 = vsel %vm702_vm0, %v1028_v0, -inf  ;;  %v7963_v4 = vadd.f32 %v1025_v61, %v7953_v58 }
 0x227   : > { %1035 = vmax.xlane.f32.xlu0 %v1034_v3  ;;  %v7019_v5 = vpop.f32.mrf.mxu0 }
 0x228   : > { %v1043_v6 = vsel %vm702_vm0, %v7963_v4, -inf  ;;  %v1030_v7 = vadd.f32 %v1024_v2, %v7958_v63  ;;  %v1027_v12 = vmul.f32 0.35355338, %v7019_v5 }
 0x229   : > { %v1013_v8 = vpop.f32.mrf.mxu0 }
 0x22a   : > { %v1026_v13 = vmul.f32 0.35355338, %v1013_v8  ;;  %v1040_v14 = vsel %vm702_vm0, %v1030_v7, -inf  ;;  %v7972_v17 = vadd.f32 %v1027_v12, %v7953_v58 }
 0x22b   : > { %1044 = vmax.xlane.f32.xlu0 %v1043_v6 }
 0x22c   : > { %v1032_v15 = vadd.f32 %v1026_v13, %v7953_v58  ;;  %v1049_v18 = vsel %vm702_vm0, %v7972_v17, -inf }
 0x22e   : > { %v1046_v16 = vsel %vm702_vm0, %v1032_v15, -inf }
 0x22f   : > { %1041 = vmax.xlane.f32.xlu0 %v1040_v14  ;;  %1047 = vmax.xlane.f32.xlu1 %v1046_v16 }
 0x233   : > { %1050 = vmax.xlane.f32.xlu0 %v1049_v18 }
 0x240   : > { %1106 = vrot.lane.b32.xlu1 %v7895_v23, %s7702_s1 }
 0x244   : > { %1102 = vrot.lane.b32.xlu1 %v7905_v26, %s7702_s1 }
 0x248   : > { %1100 = vrot.lane.b32.xlu1 %v7911_v28, %s7702_s1 }
 0x249   : > { %1104 = vrot.lane.b32.xlu0 %v7897_v25, %s7702_s1 }
 0x24c   : > { %1241 = vrot.lane.b32.xlu1 %v7897_v25, %s7708_s23 }
 0x24d   : > { %1243 = vrot.lane.b32.xlu0 %v7895_v23, %s7708_s23 }
 0x250   : > { %1237 = vrot.lane.b32.xlu1 %v7911_v28, %s7708_s23 }
 0x2ae   : > { %v1039_v19 = vpop.xlane.xlu1 %1038 }
 0x2af   : > { %v1053_v21 = vsub.f32 %v1029_v59, %v1039_v19 }
 0x2b0   : > { %v1036_v22 = vpop.xlane.xlu0 %1035 }
 0x2b1   : > { %v1060_v24 = vmul.f32 1.442695, %v1053_v21  ;;  %v1052_v27 = vsub.f32 %v1028_v0, %v1036_v22 }
 0x2b3   : > { %7511 = vpow2.f32 %v1060_v24  ;;  %v1058_v29 = vmul.f32 1.442695, %v1052_v27 }
 0x2b4   : > { %v1045_v30 = vpop.xlane.xlu0 %1044 }
 0x2b5   : > { %7513 = vpow2.f32 %v1058_v29  ;;  %v1055_v61 = vsub.f32 %v7963_v4, %v1045_v30 }
 0x2b7   : > { %v1064_v62 = vmul.f32 1.442695, %v1055_v61 }
 0x2b8   : > { %v1042_v34 = vpop.xlane.xlu0 %1041  ;;  %v1048_v37 = vpop.xlane.xlu1 %1047 }
 0x2b9   : > { %v1054_v38 = vsub.f32 %v1030_v7, %v1042_v34  ;;  %v1056_v39 = vsub.f32 %v1032_v15, %v1048_v37 }
 0x2bb   : > { %v1062_v41 = vmul.f32 1.442695, %v1054_v38  ;;  %v1066_v42 = vmul.f32 1.442695, %v1056_v39 }
 0x2bc   : > { %v1051_v44 = vpop.xlane.xlu0 %1050  ;;  %v1107_v45 = vpop.permute.xlu1 %1106 }
 0x2bd   : > { %7515 = vpow2.f32 %v1062_v41  ;;  %7020 = vmatprep.subr.mxu1 %v1107_v45  ;;  %v1057_v0 = vsub.f32 %v7972_v17, %v1051_v44 }
 0x2be   : > { %7021 = vmatpush3.msra.mxu1 %v1107_v45  ;;  %7517 = vpow2.f32 %v1066_v42 }
 0x2bf   : > { %7519 = vpow2.f32 %v1064_v62  ;;  %v1068_v1 = vmul.f32 1.442695, %v1057_v0 }
 0x2c0   : > { %v7512_v46 = vpop.eup %7511  ;;  %v1105_v47 = vpop.permute.xlu0 %1104 }
 0x2c1   : > { %v1103_v48 = vpop.permute.xlu1 %1102  ;;  %7022 = vmatprep.subr.mxu1 %v1105_v47  ;;  %v1073_v50 = vsel %vm702_vm0, %v7512_v46, 0.0  ;;  %7521 = vpow2.f32 %v1068_v1 }
 0x2c2   : > { %v7514_v51 = vpop.eup %7513  ;;  %1074 = vadd.xlane.f32.xlu0 %v1073_v50  ;;  %7023 = vmatpush3.msra.mxu1 %v1105_v47 }
 0x2c3   : > { %7024 = vmatprep.subr.mxu1 %v1103_v48  ;;  %v1070_v52 = vsel %vm702_vm0, %v7514_v51, 0.0 }
 0x2c4   : > { %1071 = vadd.xlane.f32.xlu1 %v1070_v52  ;;  %7025 = vmatpush3.msra.mxu1 %v1103_v48  ;;  %v1244_v55 = vpop.permute.xlu0 %1243 }
 0x2c5   : > { %v1101_v54 = vpop.permute.xlu1 %1100 }
 0x2c6   : > { %7026 = vmatprep.subr.mxu1 %v1101_v54 }
 0x2c7   : > { %7027 = vmatpush3.msra.mxu1 %v1101_v54 }
 0x2c8   : > { %7037 = vmatprep.subr.msk.mxu1 %vm608_vm1, %v1244_v55 }
 0x2c9   : > { %v1242_v6 = vpop.permute.xlu1 %1241 }
 0x2ca   : > { %v7516_v56 = vpop.eup %7515 }
 0x2cb   : > { %v1076_v57 = vsel %vm702_vm0, %v7516_v56, 0.0  ;;  %v7518_v59 = vpop.eup %7517 }
 0x2cc   : > { %1077 = vadd.xlane.f32.xlu1 %v1076_v57  ;;  %v1082_v60 = vsel %vm702_vm0, %v7518_v59, 0.0  ;;  %v7520_v2 = vpop.eup %7519 }
 0x2cd   : > { %v1079_v3 = vsel %vm702_vm0, %v7520_v2, 0.0  ;;  %v1238_v7 = vpop.permute.xlu1 %1237 }
 0x2ce   : > { %v7522_v5 = vpop.eup %7521 }
 0x2cf   : > { %v1085_v4 = vsel %vm702_vm0, %v7522_v5, 0.0 }
 0x2d0   : > { %1083 = vadd.xlane.f32.xlu1 %v1082_v60 }
 0x2d8   : > { %1239 = vrot.lane.b32.xlu0 %v7905_v26, %s7708_s23 }
 0x2e1   : > { %1227 = vrot.lane.b32.xlu1 %v7921_v32, %s7708_s23 }
 0x2e5   : > { %1231 = vrot.lane.b32.xlu1 %v7923_v33, %s7708_s23 }
 0x2e9   : > { %1235 = vrot.lane.b32.xlu1 %v7935_v36, %s7708_s23 }
 0x2f7   : > { %1080 = vadd.xlane.f32.xlu0 %v1079_v3 }
 0x2fb   : > { %1086 = vadd.xlane.f32.xlu0 %v1085_v4 }
 0x311   : > { %1225 = vrot.lane.b32.xlu0 %v7888_v20, %s7708_s23 }
 0x315   : > { %1229 = vrot.lane.b32.xlu0 %v7917_v31, %s7708_s23 }
 0x319   : > { %1233 = vrot.lane.b32.xlu0 %v7929_v35, %s7708_s23 }
 0x34b   : > { %v1075_v8 = vpop.xlane.xlu0 %1074 }
 0x34c   : > { %7523 = vrcp.f32 %v1075_v8 }
 0x34d   : > { %v1072_v12 = vpop.xlane.xlu1 %1071 }
 0x34e   : > { %7525 = vrcp.f32 %v1072_v12 }
 0x34f   : > { %v1240_v19 = vpop.permute.xlu0 %1239 }
 0x355   : > { %v1078_v13 = vpop.xlane.xlu1 %1077 }
 0x356   : > { %7527 = vrcp.f32 %v1078_v13 }
 0x359   : > { %v7524_v14 = vpop.eup %7523  ;;  %v1084_v22 = vpop.xlane.xlu1 %1083 }
 0x35a   : > { %v1095_v17 = vmul.f32 %v7524_v14, %v7512_v46  ;;  %7529 = vrcp.f32 %v1084_v22 }
 0x35b   : > { %v7526_v15 = vpop.eup %7525 }
 0x35c   : > { %v1094_v16 = vmul.f32 %v7526_v15, %v7514_v51 }
 0x35d   : > { %v1228_v42 = vpop.permute.xlu1 %1227 }
 0x35e   : > { %7028 = vmatprep.mubr.msk.f32.mxu1 %vm702_vm0, %v1094_v16 }
 0x35f   : > { %7029 = vmatmul.mubr.msk.f32.vlgmr.msra.gmra.mxu1 %vm702_vm0, %v1095_v17 }
 0x360   : > { %7038 = vmatpush3.xpose.msk.msra.mxu1 %vm608_vm1, %v1244_v55 }
 0x361   : > { %7039 = vmatprep.subr.msk.mxu1 %vm608_vm1, %v1242_v6  ;;  %v1232_v45 = vpop.permute.xlu1 %1231 }
 0x363   : > { %v7528_v18 = vpop.eup %7527 }
 0x364   : > { %7040 = vmatpush3.xpose.msk.msra.mxu1 %vm608_vm1, %v1242_v6  ;;  %v1096_v21 = vmul.f32 %v7528_v18, %v7516_v56 }
 0x365   : > { %7041 = vmatprep.subr.msk.mxu1 %vm608_vm1, %v1240_v19  ;;  %v1236_v47 = vpop.permute.xlu1 %1235 }
 0x366   : > { %7031 = vmatprep.mubr.msk.f32.mxu1 %vm702_vm0, %v1096_v21 }
 0x367   : > { %v7530_v29 = vpop.eup %7529 }
 0x368   : > { %7042 = vmatpush3.xpose.msk.msra.mxu1 %vm608_vm1, %v1240_v19  ;;  %v1098_v37 = vmul.f32 %v7530_v29, %v7518_v59 }
 0x369   : > { %7043 = vmatprep.subr.msk.mxu1 %vm608_vm1, %v1238_v7 }
 0x36c   : > { %7044 = vmatpush3.xpose.msk.msra.mxu1 %vm608_vm1, %v1238_v7 }
 0x380   : > { %v1081_v24 = vpop.xlane.xlu0 %1080 }
 0x381   : > { %7531 = vrcp.f32 %v1081_v24 }
 0x384   : > { %v1087_v27 = vpop.xlane.xlu0 %1086 }
 0x385   : > { %7533 = vrcp.f32 %v1087_v27 }
 0x388   : > { %v1226_v38 = vpop.permute.xlu0 %1225 }
 0x38c   : > { %v1230_v44 = vpop.permute.xlu0 %1229 }
 0x38e   : > { %v7532_v30 = vpop.eup %7531 }
 0x38f   : > { %v1097_v34 = vmul.f32 %v7532_v30, %v7520_v2 }
 0x390   : > { %v1234_v46 = vpop.permute.xlu0 %1233 }
 0x391   : > { %7032 = vmatmul.mubr.msk.f32.gmra.mxu1 %vm702_vm0, %v1097_v34 }
 0x392   : > { %v7534_v39 = vpop.eup %7533  ;;  %7034 = vmatprep.mubr.msk.f32.mxu1 %vm702_vm0, %v1098_v37 }
 0x393   : > { %v1099_v41 = vmul.f32 %v7534_v39, %v7522_v5 }
 0x395   : > { %7035 = vmatmul.mubr.msk.f32.gmra.mxu1 %vm702_vm0, %v1099_v41 }
 0x396   : > { %7045 = vmatprep.mubr.msk.f32.mxu1 %vm608_vm1, %v1226_v38 }
 0x399   : > { %7046 = vmatmul.mubr.msk.f32.vlgmr.msra.gmra.mxu1 %vm608_vm1, %v1228_v42 }
 0x39a   : > { %7048 = vmatprep.mubr.msk.f32.mxu1 %vm608_vm1, %v1230_v44 }
 0x39d   : > { %7049 = vmatmul.mubr.msk.f32.gmra.mxu1 %vm608_vm1, %v1232_v45 }
 0x39e   : > { %7051 = vmatprep.mubr.msk.f32.mxu1 %vm608_vm1, %v1234_v46 }
 0x3a1   : > { %7052 = vmatmul.mubr.msk.f32.gmra.mxu1 %vm608_vm1, %v1236_v47 }
 0x41f   : > { %v8032_v48 = vpop.f32.mrf.mxu1 }
 0x421   : > { %v8034_v50 = vpop.f32.mrf.mxu1 }
 0x451   : > { %v8036_v51 = vpop.f32.mrf.mxu1 }
 0x453   : > { %v8038_v52 = vpop.f32.mrf.mxu1 }
 0x455   : > { %v8040_v54 = vpop.f32.mrf.mxu1 }
 0x457   : > { %v8042_v55 = vpop.f32.mrf.mxu1 }
 0x459   : > { %v7047_v56 = vpop.f32.mrf.mxu1 }
 0x45a   : > { %v1361_v57 = vmul.f32 0.35355338, %v7047_v56 }
 0x45b   : > { %v1331_v59 = vpop.f32.mrf.mxu1 }
 0x45c   : > { %v1360_v60 = vmul.f32 0.35355338, %v1331_v59  ;;  %v1367_v61 = vadd.f32 %v1361_v57, %v7947_v49 }
 0x45d   : > { %v7050_v62 = vpop.f32.mrf.mxu1 }
 0x45e   : > { %v1375_v0 = vsel %vm702_vm0, %v1367_v61, -inf  ;;  %v1366_v1 = vadd.f32 %v1360_v60, %v7950_v53  ;;  %v1363_v3 = vmul.f32 0.35355338, %v7050_v62 }
 0x45f   : > { %1376 = vmax.xlane.f32.xlu1 %v1375_v0  ;;  %v1341_v2 = vpop.f32.mrf.mxu1 }
 0x460   : > { %v1362_v5 = vmul.f32 0.35355338, %v1341_v2  ;;  %v1372_v4 = vsel %vm702_vm0, %v1366_v1, -inf  ;;  %v1369_v15 = vadd.f32 %v1363_v3, %v7953_v58 }
 0x461   : > { %1373 = vmax.xlane.f32.xlu0 %v1372_v4  ;;  %v7053_v6 = vpop.f32.mrf.mxu1 }
 0x462   : > { %v1368_v7 = vadd.f32 %v1362_v5, %v7958_v63  ;;  %v1365_v12 = vmul.f32 0.35355338, %v7053_v6  ;;  %v1381_v17 = vsel %vm702_vm0, %v1369_v15, -inf  ;;  %v574_v6 = vld [vmem:[%s9245_s6 + $0x8] sm:$0xff] }
 0x463   : > { %v1351_v8 = vpop.f32.mrf.mxu1  ;;  %7071 = vmatprep.subr.mxu1 %v574_v6 }
 0x464   : > { %v1364_v13 = vmul.f32 0.35355338, %v1351_v8  ;;  %v1378_v14 = vsel %vm702_vm0, %v1368_v7, -inf  ;;  %v1371_v19 = vadd.f32 %v1365_v12, %v7953_v58  ;;  %7072 = vmatpush3.msra.mxu1 %v574_v6 }
 0x465   : > { %1379 = vmax.xlane.f32.xlu0 %v1378_v14 }
 0x466   : > { %v1370_v16 = vadd.f32 %v1364_v13, %v7953_v58  ;;  %v1387_v21 = vsel %vm702_vm0, %v1371_v19, -inf }
 0x468   : > { %v1384_v18 = vsel %vm702_vm0, %v1370_v16, -inf }
 0x469   : > { %1382 = vmax.xlane.f32.xlu0 %v1381_v17  ;;  %1385 = vmax.xlane.f32.xlu1 %v1384_v18 }
 0x46d   : > { %1388 = vmax.xlane.f32.xlu0 %v1387_v21 }
 0x47a   : > { %1444 = vrot.lane.b32.xlu1 %v7895_v23, %s9266_s20 }
 0x4e8   : > { %v1377_v22 = vpop.xlane.xlu1 %1376 }
 0x4e9   : > { %v1391_v24 = vsub.f32 %v1367_v61, %v1377_v22 }
 0x4ea   : > { %v1374_v27 = vpop.xlane.xlu0 %1373 }
 0x4eb   : > { %v1398_v29 = vmul.f32 1.442695, %v1391_v24  ;;  %v1390_v30 = vsub.f32 %v1366_v1, %v1374_v27 }
 0x4ed   : > { %7535 = vpow2.f32 %v1398_v29  ;;  %v1396_v34 = vmul.f32 1.442695, %v1390_v30  ;;  %v573_v29 = vld [vmem:[%s9245_s6] sm:$0xff] }
 0x4ee   : > { %v1380_v37 = vpop.xlane.xlu0 %1379 }
 0x4ef   : > { %7537 = vpow2.f32 %v1396_v34  ;;  %v1392_v38 = vsub.f32 %v1368_v7, %v1380_v37 }
 0x4f1   : > { %v1400_v39 = vmul.f32 1.442695, %v1392_v38 }
 0x4f2   : > { %v1383_v41 = vpop.xlane.xlu0 %1382  ;;  %v1386_v42 = vpop.xlane.xlu1 %1385 }
 0x4f3   : > { %7539 = vpow2.f32 %v1400_v39  ;;  %v1393_v44 = vsub.f32 %v1369_v15, %v1383_v41  ;;  %v1394_v7 = vsub.f32 %v1370_v16, %v1386_v42 }
 0x4f5   : > { %v1402_v45 = vmul.f32 1.442695, %v1393_v44  ;;  %v1404_v8 = vmul.f32 1.442695, %v1394_v7 }
 0x4f6   : > { %v1389_v46 = vpop.xlane.xlu0 %1388  ;;  %v1445_v47 = vpop.permute.xlu1 %1444 }
 0x4f7   : > { %7541 = vpow2.f32 %v1402_v45  ;;  %v1395_v56 = vsub.f32 %v1371_v19, %v1389_v46  ;;  %7054 = vmatprep.subr.mxu0 %v1445_v47 }
 0x4f8   : > { %7055 = vmatpush3.msra.mxu0 %v1445_v47 }
 0x4f9   : > { %v1406_v57 = vmul.f32 1.442695, %v1395_v56 }
 0x4fa   : > { %v8058_v59 = vpop.eup %7535 }
 0x4fb   : > { %7543 = vpow2.f32 %v1406_v57  ;;  %v1411_v60 = vsel %vm702_vm0, %v8058_v59, 0.0 }
 0x4fc   : > { %v7538_v61 = vpop.eup %7537  ;;  %1412 = vadd.xlane.f32.xlu0 %v1411_v60  ;;  %7545 = vpow2.f32 %v1404_v8 }
 0x4fd   : > { %v1408_v62 = vsel %vm702_vm0, %v7538_v61, 0.0 }
 0x4fe   : > { %1409 = vadd.xlane.f32.xlu1 %v1408_v62 }
 0x500   : > { %v8063_v0 = vpop.eup %7539 }
 0x501   : > { %v1414_v1 = vsel %vm702_vm0, %v8063_v0, 0.0 }
 0x502   : > { %1415 = vadd.xlane.f32.xlu1 %v1414_v1 }
 0x504   : > { %v8067_v2 = vpop.eup %7541 }
 0x505   : > { %v1417_v3 = vsel %vm702_vm0, %v8067_v2, 0.0 }
 0x506   : > { %1418 = vadd.xlane.f32.xlu0 %v1417_v3 }
 0x508   : > { %v8071_v5 = vpop.eup %7543 }
 0x509   : > { %v1423_v4 = vsel %vm702_vm0, %v8071_v5, 0.0  ;;  %v7546_v12 = vpop.eup %7545 }
 0x50a   : > { %1424 = vadd.xlane.f32.xlu0 %v1423_v4  ;;  %v1420_v13 = vsel %vm702_vm0, %v7546_v12, 0.0 }
 0x513   : > { %1440 = vrot.lane.b32.xlu1 %v7905_v26, %s9266_s20 }
 0x520   : > { %1442 = vrot.lane.b32.xlu0 %v7897_v25, %s9266_s20 }
 0x524   : > { %1807 = vrot.lane.b32.xlu0 %v7895_v23, %s9267_s30 }
 0x528   : > { %1803 = vrot.lane.b32.xlu0 %v7905_v26, %s9267_s30 }
 0x52c   : > { %1789 = vrot.lane.b32.xlu0 %v7888_v20, %s9267_s30 }
 0x530   : > { %1793 = vrot.lane.b32.xlu0 %v7917_v31, %s9267_s30 }
 0x534   : > { %1797 = vrot.lane.b32.xlu0 %v7929_v35, %s9267_s30 }
 0x537   : > { %1421 = vadd.xlane.f32.xlu1 %v1420_v13 }
 0x538   : > { %2264 = vrot.lane.b32.xlu0 %v7895_v23, %s9262_s18 }
 0x53c   : > { %2260 = vrot.lane.b32.xlu0 %v7905_v26, %s9262_s18 }
 0x540   : > { %2246 = vrot.lane.b32.xlu0 %v7888_v20, %s9262_s18 }
 0x544   : > { %2250 = vrot.lane.b32.xlu0 %v7917_v31, %s9262_s18 }
 0x548   : > { %1438 = vrot.lane.b32.xlu1 %v7911_v28, %s9266_s20 }
 0x54c   : > { %1805 = vrot.lane.b32.xlu1 %v7897_v25, %s9267_s30 }
 0x550   : > { %1801 = vrot.lane.b32.xlu1 %v7911_v28, %s9267_s30 }
 0x554   : > { %1791 = vrot.lane.b32.xlu1 %v7921_v32, %s9267_s30 }
 0x558   : > { %1795 = vrot.lane.b32.xlu1 %v7923_v33, %s9267_s30 }
 0x55c   : > { %1799 = vrot.lane.b32.xlu1 %v7935_v36, %s9267_s30 }
 0x560   : > { %2262 = vrot.lane.b32.xlu1 %v7897_v25, %s9262_s18 }
 0x564   : > { %2258 = vrot.lane.b32.xlu1 %v7911_v28, %s9262_s18 }
 0x568   : > { %2248 = vrot.lane.b32.xlu1 %v7921_v32, %s9262_s18 }
 0x56c   : > { %2252 = vrot.lane.b32.xlu1 %v7923_v33, %s9262_s18 }
 0x585   : > { %v1413_v31 = vpop.xlane.xlu0 %1412 }
 0x587   : > { %v1410_v20 = vpop.xlane.xlu1 %1409 }
 0x588   : > { %7547 = vrcp.f32 %v1410_v20 }
 0x589   : > { %7549 = vrcp.f32 %v1413_v31 }
 0x58b   : > { %v1416_v15 = vpop.xlane.xlu1 %1415 }
 0x58c   : > { %7551 = vrcp.f32 %v1416_v15 }
 0x58f   : > { %v1419_v14 = vpop.xlane.xlu0 %1418  ;;  %v1441_v21 = vpop.permute.xlu1 %1440 }
 0x590   : > { %7553 = vrcp.f32 %v1419_v14 }
 0x593   : > { %v1425_v16 = vpop.xlane.xlu0 %1424 }
 0x594   : > { %7555 = vrcp.f32 %v1425_v16 }
 0x595   : > { %v7548_v17 = vpop.eup %7547 }
 0x596   : > { %v1432_v18 = vmul.f32 %v7548_v17, %v7538_v61  ;;  %v7550_v33 = vpop.eup %7549 }
 0x597   : > { %v1443_v19 = vpop.permute.xlu0 %1442  ;;  %v1433_v30 = vmul.f32 %v7550_v33, %v8058_v59 }
 0x598   : > { %7056 = vmatprep.subr.mxu0 %v1443_v19  ;;  %7062 = vmatprep.mubr.msk.f32.mxu0 %vm702_vm0, %v1432_v18 }
 0x599   : > { %7057 = vmatpush3.msra.mxu0 %v1443_v19  ;;  %v7552_v24 = vpop.eup %7551 }
 0x59a   : > { %7058 = vmatprep.subr.mxu0 %v1441_v21  ;;  %v1434_v37 = vmul.f32 %v7552_v24, %v8063_v0 }
 0x59b   : > { %v1808_v22 = vpop.permute.xlu0 %1807  ;;  %7059 = vmatpush3.msra.mxu0 %v1441_v21 }
 0x59c   : > { %7093 = vmatprep.subr.msk.mxu1 %vm608_vm1, %v1808_v22 }
 0x59d   : > { %v7554_v34 = vpop.eup %7553 }
 0x59e   : > { %v1435_v38 = vmul.f32 %v7554_v34, %v8067_v2 }
 0x59f   : > { %v1804_v46 = vpop.permute.xlu0 %1803 }
 0x5a1   : > { %v7556_v39 = vpop.eup %7555 }
 0x5a2   : > { %v1437_v44 = vmul.f32 %v7556_v39, %v8071_v5 }
 0x5a3   : > { %v1790_v56 = vpop.permute.xlu0 %1789 }
 0x5c0   : > { %v1422_v32 = vpop.xlane.xlu1 %1421 }
 0x5c1   : > { %7557 = vrcp.f32 %v1422_v32 }
 0x5c4   : > { %v1439_v27 = vpop.permute.xlu1 %1438 }
 0x5c5   : > { %7060 = vmatprep.subr.mxu0 %v1439_v27 }
 0x5c6   : > { %7061 = vmatpush3.msra.mxu0 %v1439_v27 }
 0x5c7   : > { %7063 = vmatmul.mubr.msk.f32.vlgmr.msra.gmra.mxu0 %vm702_vm0, %v1433_v30  ;;  %7082 = vmatprep.subr.mxu0 %v573_v29 }
 0x5c8   : > { %7065 = vmatprep.mubr.msk.f32.mxu0 %vm702_vm0, %v1434_v37  ;;  %7083 = vmatpush3.msra.mxu0 %v573_v29  ;;  %v1806_v45 = vpop.permute.xlu1 %1805 }
 0x5cb   : > { %7066 = vmatmul.mubr.msk.f32.gmra.mxu0 %vm702_vm0, %v1435_v38 }
 0x5cc   : > { %v1802_v47 = vpop.permute.xlu1 %1801 }
 0x5ce   : > { %v7558_v41 = vpop.eup %7557 }
 0x5cf   : > { %v1436_v42 = vmul.f32 %v7558_v41, %v7546_v12 }
 0x5d0   : > { %v1792_v59 = vpop.permute.xlu1 %1791 }
 0x5d1   : > { %7068 = vmatprep.mubr.msk.f32.mxu0 %vm702_vm0, %v1436_v42 }
 0x5d2   : > { %7069 = vmatmul.mubr.msk.f32.gmra.mxu0 %vm702_vm0, %v1437_v44 }
 0x5d3   : > { %7084 = vmatprep.mubr.msk.f32.mxu0 %vm608_vm1, %v8034_v50 }
 0x5d6   : > { %7085 = vmatmul.mubr.msk.f32.vlgmr.msra.gmra.mxu0 %vm608_vm1, %v8032_v48  ;;  %v1794_v48 = vpop.permute.xlu0 %1793 }
 0x5d7   : > { %7087 = vmatprep.mubr.msk.f32.mxu0 %vm608_vm1, %v8038_v52 }
 0x5da   : > { %7088 = vmatmul.mubr.msk.f32.gmra.mxu0 %vm608_vm1, %v8036_v51 }
 0x5db   : > { %7090 = vmatprep.mubr.msk.f32.mxu0 %vm608_vm1, %v8042_v55  ;;  %v1798_v55 = vpop.permute.xlu0 %1797 }
 0x5de   : > { %7091 = vmatmul.mubr.msk.f32.gmra.mxu0 %vm608_vm1, %v8040_v54  ;;  %v1796_v54 = vpop.permute.xlu1 %1795 }
 0x5df   : > { %v2265_v0 = vpop.permute.xlu0 %2264 }
 0x5e2   : > { %v1800_v62 = vpop.permute.xlu1 %1799 }
 0x5e3   : > { %v2261_v2 = vpop.permute.xlu0 %2260 }
 0x5e6   : > { %v2263_v1 = vpop.permute.xlu1 %2262 }
 0x5e7   : > { %v2247_v5 = vpop.permute.xlu0 %2246 }
 0x5ea   : > { %v2259_v3 = vpop.permute.xlu1 %2258 }
 0x5eb   : > { %v2251_v6 = vpop.permute.xlu0 %2250 }
 0x5ee   : > { %v2249_v4 = vpop.permute.xlu1 %2248 }
 0x5f2   : > { %v2253_v7 = vpop.permute.xlu1 %2252 }
 0x687   : > { %v7064_v50 = vpop.f32.mrf.mxu0 }
 0x689   : > { %v1534_v57 = vpop.f32.mrf.mxu0 }
 0x68a   : > { %7073 = vmatprep.mubr.msk.f32.mxu1 %vm608_vm1, %v1534_v57 }
 0x68b   : > { %v7067_v52 = vpop.f32.mrf.mxu0  ;;  %7074 = vmatmul.mubr.msk.f32.vlgmr.msra.gmra.mxu1 %vm608_vm1, %v7064_v50 }
 0x68c   : > { %7094 = vmatpush3.xpose.msk.msra.mxu1 %vm608_vm1, %v1808_v22 }
 0x68d   : > { %7095 = vmatprep.subr.msk.mxu1 %vm608_vm1, %v1806_v45  ;;  %v1544_v51 = vpop.f32.mrf.mxu0 }
 0x68e   : > { %7076 = vmatprep.mubr.msk.f32.mxu1 %vm608_vm1, %v1544_v51 }
 0x68f   : > { %7077 = vmatmul.mubr.msk.f32.gmra.mxu1 %vm608_vm1, %v7067_v52 }
 0x690   : > { %7096 = vmatpush3.xpose.msk.msra.mxu1 %vm608_vm1, %v1806_v45 }
 0x691   : > { %7097 = vmatprep.subr.msk.mxu1 %vm608_vm1, %v1804_v46 }
 0x692   : > { %v7070_v60 = vpop.f32.mrf.mxu0 }
 0x694   : > { %7098 = vmatpush3.xpose.msk.msra.mxu1 %vm608_vm1, %v1804_v46  ;;  %v1554_v61 = vpop.f32.mrf.mxu0 }
 0x695   : > { %7099 = vmatprep.subr.msk.mxu1 %vm608_vm1, %v1802_v47  ;;  %7079 = vmatprep.mubr.msk.f32.mxu1 %vm608_vm1, %v1554_v61 }
 0x696   : > { %7080 = vmatmul.mubr.msk.f32.gmra.mxu1 %vm608_vm1, %v7070_v60 }
 0x697   : > { %7101 = vmatprep.mubr.msk.f32.mxu1 %vm608_vm1, %v1790_v56 }
 0x698   : > { %7100 = vmatpush3.xpose.msk.msra.mxu1 %vm608_vm1, %v1802_v47 }
 0x699   : > { %7138 = vmatprep.subr.msk.mxu1 %vm608_vm1, %v2265_v0 }
 0x69b   : > { %7102 = vmatmul.mubr.msk.f32.vlgmr.msra.gmra.mxu1 %vm608_vm1, %v1792_v59 }
 0x69c   : > { %7104 = vmatprep.mubr.msk.f32.mxu1 %vm608_vm1, %v1794_v48  ;;  %7139 = vmatpush3.xpose.msk.msra.mxu1 %vm608_vm1, %v2265_v0 }
 0x69d   : > { %7140 = vmatprep.subr.msk.mxu1 %vm608_vm1, %v2263_v1 }
 0x69f   : > { %7105 = vmatmul.mubr.msk.f32.gmra.mxu1 %vm608_vm1, %v1796_v54 }
 0x6a0   : > { %7107 = vmatprep.mubr.msk.f32.mxu1 %vm608_vm1, %v1798_v55  ;;  %7141 = vmatpush3.xpose.msk.msra.mxu1 %vm608_vm1, %v2263_v1 }
 0x6a1   : > { %7142 = vmatprep.subr.msk.mxu1 %vm608_vm1, %v2261_v2 }
 0x6a3   : > { %7108 = vmatmul.mubr.msk.f32.gmra.mxu1 %vm608_vm1, %v1800_v62 }
 0x6a4   : > { %7143 = vmatpush3.xpose.msk.msra.mxu1 %vm608_vm1, %v2261_v2  ;;  %7146 = vmatprep.mubr.msk.f32.mxu1 %vm608_vm1, %v2247_v5 }
 0x6a5   : > { %7144 = vmatprep.subr.msk.mxu1 %vm608_vm1, %v2259_v3 }
 0x6a8   : > { %7145 = vmatpush3.xpose.msk.msra.mxu1 %vm608_vm1, %v2259_v3 }
 0x6ab   : > { %7147 = vmatmul.mubr.msk.f32.vlgmr.msra.gmra.mxu1 %vm608_vm1, %v2249_v4 }
 0x6ac   : > { %7149 = vmatprep.mubr.msk.f32.mxu1 %vm608_vm1, %v2251_v6 }
 0x6af   : > { %7150 = vmatmul.mubr.msk.f32.gmra.mxu1 %vm608_vm1, %v2253_v7 }
 0x74b   : > { %v8178_v8 = vpop.f32.mrf.mxu1 }
 0x74d   : > { %v8180_v12 = vpop.f32.mrf.mxu1 }
 0x74f   : > { %v8182_v13 = vpop.f32.mrf.mxu1 }
 0x751   : > { %v8184_v20 = vpop.f32.mrf.mxu1 }
 0x756   : > { %v8186_v31 = vpop.f32.mrf.mxu1 }
 0x758   : > { %v8188_v14 = vpop.f32.mrf.mxu1 }
 0x75b   : > { %v7103_v15 = vpop.f32.mrf.mxu1 }
 0x75c   : > { %v1925_v16 = vmul.f32 0.35355338, %v7103_v15 }
 0x75d   : > { %v1895_v17 = vpop.f32.mrf.mxu1 }
 0x75e   : > { %v1924_v18 = vmul.f32 0.35355338, %v1895_v17  ;;  %v1931_v19 = vadd.f32 %v1925_v16, %v7947_v49 }
 0x75f   : > { %v7106_v21 = vpop.f32.mrf.mxu1 }
 0x760   : > { %v1939_v22 = vsel %vm702_vm0, %v1931_v19, -inf  ;;  %v1930_v32 = vadd.f32 %v1924_v18, %v7950_v53  ;;  %v1927_v24 = vmul.f32 0.35355338, %v7106_v21 }
 0x761   : > { %1940 = vmax.xlane.f32.xlu1 %v1939_v22  ;;  %v1905_v33 = vpop.f32.mrf.mxu1 }
 0x762   : > { %v1926_v27 = vmul.f32 0.35355338, %v1905_v33  ;;  %v1936_v29 = vsel %vm702_vm0, %v1930_v32, -inf  ;;  %v1933_v42 = vadd.f32 %v1927_v24, %v7953_v58 }
 0x763   : > { %1937 = vmax.xlane.f32.xlu0 %v1936_v29  ;;  %v7109_v30 = vpop.f32.mrf.mxu1 }
 0x764   : > { %v1932_v34 = vadd.f32 %v1926_v27, %v7958_v63  ;;  %v1929_v38 = vmul.f32 0.35355338, %v7109_v30  ;;  %v1945_v45 = vsel %vm702_vm0, %v1933_v42, -inf }
 0x765   : > { %v1915_v37 = vpop.f32.mrf.mxu1 }
 0x766   : > { %v1928_v39 = vmul.f32 0.35355338, %v1915_v37  ;;  %v1942_v41 = vsel %vm702_vm0, %v1932_v34, -inf  ;;  %v1935_v47 = vadd.f32 %v1929_v38, %v7953_v58 }
 0x767   : > { %1943 = vmax.xlane.f32.xlu0 %v1942_v41 }
 0x768   : > { %v1934_v44 = vadd.f32 %v1928_v39, %v7953_v58  ;;  %v1951_v56 = vsel %vm702_vm0, %v1935_v47, -inf }
 0x76a   : > { %v1948_v46 = vsel %vm702_vm0, %v1934_v44, -inf }
 0x76b   : > { %1946 = vmax.xlane.f32.xlu0 %v1945_v45  ;;  %1949 = vmax.xlane.f32.xlu1 %v1948_v46  ;;  %v7148_v27 = vpop.f32.mrf.mxu1 }
 0x76d   : > { %v2352_v29 = vpop.f32.mrf.mxu1 }
 0x76e   : > { %v2381_v37 = vmul.f32 0.35355338, %v2352_v29 }
 0x76f   : > { %1952 = vmax.xlane.f32.xlu0 %v1951_v56 }
 0x77c   : > { %2008 = vrot.lane.b32.xlu1 %v7895_v23, %s9264_s26 }
 0x7ea   : > { %v1941_v50 = vpop.xlane.xlu1 %1940 }
 0x7eb   : > { %v1955_v57 = vsub.f32 %v1931_v19, %v1941_v50 }
 0x7ec   : > { %v1938_v59 = vpop.xlane.xlu0 %1937 }
 0x7ed   : > { %v1962_v48 = vmul.f32 1.442695, %v1955_v57  ;;  %v1954_v52 = vsub.f32 %v1930_v32, %v1938_v59 }
 0x7ef   : > { %7559 = vpow2.f32 %v1962_v48  ;;  %v1960_v51 = vmul.f32 1.442695, %v1954_v52 }
 0x7f0   : > { %v1944_v54 = vpop.xlane.xlu0 %1943 }
 0x7f1   : > { %7561 = vpow2.f32 %v1960_v51  ;;  %v1956_v55 = vsub.f32 %v1932_v34, %v1944_v54  ;;  %v7151_v34 = vpop.f32.mrf.mxu1 }
 0x7f3   : > { %v1964_v60 = vmul.f32 1.442695, %v1956_v55  ;;  %v2362_v39 = vpop.f32.mrf.mxu1 }
 0x7f4   : > { %v1947_v61 = vpop.xlane.xlu0 %1946  ;;  %v1950_v62 = vpop.xlane.xlu1 %1949  ;;  %v2383_v41 = vmul.f32 0.35355338, %v2362_v39 }
 0x7f5   : > { %7563 = vpow2.f32 %v1964_v60  ;;  %v1957_v0 = vsub.f32 %v1933_v42, %v1947_v61  ;;  %v1958_v33 = vsub.f32 %v1934_v44, %v1950_v62  ;;  %v2387_v42 = vadd.f32 %v2381_v37, %v7950_v53 }
 0x7f6   : > { %v2384_v44 = vmul.f32 0.35355338, %v7151_v34  ;;  %v8232_v46 = vadd.f32 %v2383_v41, %v7958_v63  ;;  %v2382_v53 = vmul.f32 0.35355338, %v7148_v27 }
 0x7f7   : > { %v1966_v1 = vmul.f32 1.442695, %v1957_v0  ;;  %v1968_v24 = vmul.f32 1.442695, %v1958_v33  ;;  %v2393_v45 = vsel %vm702_vm0, %v2387_v42, -inf  ;;  %v575_v0 = vld [vmem:[%s9245_s6 + $0x10] sm:$0xff] }
 0x7f8   : > { %v1953_v2 = vpop.xlane.xlu0 %1952  ;;  %v2009_v3 = vpop.permute.xlu1 %2008  ;;  %v8237_v56 = vadd.f32 %v2384_v44, %v7953_v58  ;;  %v8246_v63 = vadd.f32 %v2382_v53, %v7947_v49 }
 0x7f9   : > { %7565 = vpow2.f32 %v1966_v1  ;;  %v1959_v5 = vsub.f32 %v1935_v47, %v1953_v2  ;;  %7110 = vmatprep.subr.mxu0 %v2009_v3  ;;  %v2399_v47 = vsel %vm702_vm0, %v8232_v46, -inf }
 0x7fa   : > { %7111 = vmatpush3.msra.mxu0 %v2009_v3  ;;  %v2402_v50 = vsel %vm702_vm0, %v8237_v56, -inf  ;;  %v2396_v57 = vsel %vm702_vm0, %v8246_v63, -inf }
 0x7fb   : > { %v1970_v4 = vmul.f32 1.442695, %v1959_v5 }
 0x7fc   : > { %v8204_v6 = vpop.eup %7559 }
 0x7fd   : > { %7567 = vpow2.f32 %v1970_v4  ;;  %v1975_v7 = vsel %vm702_vm0, %v8204_v6, 0.0 }
 0x7fe   : > { %v7562_v15 = vpop.eup %7561  ;;  %1976 = vadd.xlane.f32.xlu0 %v1975_v7  ;;  %7569 = vpow2.f32 %v1968_v24 }
 0x7ff   : > { %v1972_v16 = vsel %vm702_vm0, %v7562_v15, 0.0 }
 0x800   : > { %1973 = vadd.xlane.f32.xlu1 %v1972_v16 }
 0x802   : > { %v8209_v17 = vpop.eup %7563 }
 0x803   : > { %v1978_v18 = vsel %vm702_vm0, %v8209_v17, 0.0 }
 0x804   : > { %1979 = vadd.xlane.f32.xlu1 %v1978_v18 }
 0x806   : > { %v8213_v19 = vpop.eup %7565 }
 0x807   : > { %v1981_v21 = vsel %vm702_vm0, %v8213_v19, 0.0 }
 0x808   : > { %1982 = vadd.xlane.f32.xlu0 %v1981_v21 }
 0x80a   : > { %v8217_v22 = vpop.eup %7567 }
 0x80b   : > { %v1987_v32 = vsel %vm702_vm0, %v8217_v22, 0.0  ;;  %v8225_v30 = vpop.eup %7569 }
 0x80c   : > { %1988 = vadd.xlane.f32.xlu0 %v1987_v32  ;;  %v1984_v38 = vsel %vm702_vm0, %v8225_v30, 0.0 }
 0x815   : > { %2004 = vrot.lane.b32.xlu1 %v7905_v26, %s9264_s26 }
 0x822   : > { %2006 = vrot.lane.b32.xlu0 %v7897_v25, %s9264_s26 }
 0x839   : > { %1985 = vadd.xlane.f32.xlu1 %v1984_v38 }
 0x841   : > { %2394 = vmax.xlane.f32.xlu0 %v2393_v45 }
 0x845   : > { %2400 = vmax.xlane.f32.xlu0 %v2399_v47 }
 0x849   : > { %2403 = vmax.xlane.f32.xlu0 %v2402_v50 }
 0x84a   : > { %2002 = vrot.lane.b32.xlu1 %v7911_v28, %s9264_s26  ;;  %s9274_s26 = smov 104  }
 0x85f   : > { %2256 = vrot.lane.b32.xlu0 %v7935_v36, %s9262_s18 }
 0x86e   : > { %2397 = vmax.xlane.f32.xlu1 %v2396_v57 }
 0x87f   : > { %2254 = vrot.lane.b32.xlu1 %v7929_v35, %s9262_s18  ;;  %s9273_s18 = smov 80  }
 0x883   : > { %2465 = vrot.lane.b32.xlu1 %v7895_v23, %s9260_s27 }
 0x887   : > { %v1977_v48 = vpop.xlane.xlu0 %1976 }
 0x889   : > { %v1974_v59 = vpop.xlane.xlu1 %1973 }
 0x88a   : > { %7571 = vrcp.f32 %v1974_v59 }
 0x88b   : > { %7573 = vrcp.f32 %v1977_v48 }
 0x88d   : > { %v1980_v36 = vpop.xlane.xlu1 %1979 }
 0x88e   : > { %7575 = vrcp.f32 %v1980_v36 }
 0x891   : > { %v1983_v52 = vpop.xlane.xlu0 %1982  ;;  %v2005_v60 = vpop.permute.xlu1 %2004 }
 0x892   : > { %7577 = vrcp.f32 %v1983_v52 }
 0x895   : > { %v1989_v51 = vpop.xlane.xlu0 %1988 }
 0x896   : > { %7579 = vrcp.f32 %v1989_v51 }
 0x897   : > { %v7572_v54 = vpop.eup %7571 }
 0x898   : > { %v1996_v49 = vmul.f32 %v7572_v54, %v7562_v15  ;;  %v7574_v35 = vpop.eup %7573 }
 0x899   : > { %v2007_v55 = vpop.permute.xlu0 %2006  ;;  %v1997_v1 = vmul.f32 %v7574_v35, %v8204_v6 }
 0x89a   : > { %7112 = vmatprep.subr.mxu0 %v2007_v55  ;;  %7118 = vmatprep.mubr.msk.f32.mxu0 %vm702_vm0, %v1996_v49 }
 0x89b   : > { %7113 = vmatpush3.msra.mxu0 %v2007_v55  ;;  %v7576_v61 = vpop.eup %7575 }
 0x89c   : > { %7114 = vmatprep.subr.mxu0 %v2005_v60  ;;  %v1998_v3 = vmul.f32 %v7576_v61, %v8209_v17 }
 0x89d   : > { %7115 = vmatpush3.msra.mxu0 %v2005_v60 }
 0x89f   : > { %v7578_v2 = vpop.eup %7577 }
 0x8a0   : > { %v1999_v7 = vmul.f32 %v7578_v2, %v8213_v19 }
 0x8a3   : > { %v7580_v16 = vpop.eup %7579 }
 0x8a4   : > { %v2001_v17 = vmul.f32 %v7580_v16, %v8217_v22 }
 0x8c2   : > { %v1986_v23 = vpop.xlane.xlu1 %1985 }
 0x8c3   : > { %7581 = vrcp.f32 %v1986_v23 }
 0x8c6   : > { %v2003_v62 = vpop.permute.xlu1 %2002 }
 0x8c7   : > { %7116 = vmatprep.subr.mxu0 %v2003_v62 }
 0x8c8   : > { %7117 = vmatpush3.msra.mxu0 %v2003_v62 }
 0x8c9   : > { %7119 = vmatmul.mubr.msk.f32.vlgmr.msra.gmra.mxu0 %vm702_vm0, %v1997_v1  ;;  %7127 = vmatprep.subr.mxu0 %v575_v0 }
 0x8ca   : > { %v2395_v5 = vpop.xlane.xlu0 %2394  ;;  %7121 = vmatprep.mubr.msk.f32.mxu0 %vm702_vm0, %v1998_v3  ;;  %7128 = vmatpush3.msra.mxu0 %v575_v0 }
 0x8cb   : > { %v2411_v4 = vsub.f32 %v2387_v42, %v2395_v5 }
 0x8cd   : > { %v2417_v15 = vmul.f32 1.442695, %v2411_v4  ;;  %7122 = vmatmul.mubr.msk.f32.gmra.mxu0 %vm702_vm0, %v1999_v7 }
 0x8ce   : > { %v2401_v33 = vpop.xlane.xlu0 %2400 }
 0x8cf   : > { %7583 = vpow2.f32 %v2417_v15  ;;  %v2413_v22 = vsub.f32 %v8232_v46, %v2401_v33 }
 0x8d0   : > { %v7582_v6 = vpop.eup %7581 }
 0x8d1   : > { %v2000_v18 = vmul.f32 %v7582_v6, %v8225_v30  ;;  %v2421_v39 = vmul.f32 1.442695, %v2413_v22 }
 0x8d2   : > { %v2404_v19 = vpop.xlane.xlu0 %2403 }
 0x8d3   : > { %7124 = vmatprep.mubr.msk.f32.mxu0 %vm702_vm0, %v2000_v18  ;;  %v2414_v24 = vsub.f32 %v8237_v56, %v2404_v19  ;;  %v7086_v56 = vpop.f32.mrf.mxu0  ;;  %v576_v19 = vld [vmem:[%s9245_s6 + $0x18] sm:$0xff] }
 0x8d4   : > { %7125 = vmatmul.mubr.msk.f32.gmra.mxu0 %vm702_vm0, %v2001_v17  ;;  %7172 = vmatprep.subr.mxu1 %v576_v19 }
 0x8d5   : > { %v2423_v30 = vmul.f32 1.442695, %v2414_v24  ;;  %v8283_v50 = vpop.f32.mrf.mxu0  ;;  %7173 = vmatpush3.msra.mxu1 %v576_v19  ;;  %v1766_v24 = vadd.f32 %v7086_v56, %v8178_v8 }
 0x8d6   : > { %v2257_v38 = vpop.permute.xlu0 %2256 }
 0x8d7   : > { %v8285_v53 = vpop.f32.mrf.mxu0 }
 0x8dc   : > { %v7584_v21 = vpop.eup %7583 }
 0x8dd   : > { %v2429_v32 = vsel %vm702_vm0, %v7584_v21, 0.0 }
 0x8de   : > { %2430 = vadd.xlane.f32.xlu1 %v2429_v32 }
 0x8ef   : > { %2461 = vrot.lane.b32.xlu1 %v7905_v26, %s9260_s27 }
 0x8f7   : > { %v2398_v27 = vpop.xlane.xlu1 %2397 }
 0x8f8   : > { %v2412_v29 = vsub.f32 %v8246_v63, %v2398_v27  ;;  %v8287_v63 = vpop.f32.mrf.mxu0 }
 0x8f9   : > { %v1771_v8 = vadd.f32 %v8287_v63, %v8184_v20 }
 0x8fa   : > { %v2419_v34 = vmul.f32 1.442695, %v2412_v29  ;;  %v8289_v57 = vpop.f32.mrf.mxu0 }
 0x8fb   : > { %v2255_v37 = vpop.permute.xlu1 %2254 }
 0x8fc   : > { %7585 = vpow2.f32 %v2419_v34  ;;  %7152 = vmatprep.mubr.msk.f32.mxu1 %vm608_vm1, %v2255_v37  ;;  %v8291_v48 = vpop.f32.mrf.mxu0 }
 0x8fd   : > { %7153 = vmatmul.mubr.msk.f32.gmra.mxu1 %vm608_vm1, %v2257_v38  ;;  %7587 = vpow2.f32 %v2423_v30  ;;  %v1761_v30 = vadd.f32 %v8283_v50, %v8180_v12  ;;  %v1786_v12 = vadd.f32 %v8289_v57, %v8186_v31  ;;  %v1781_v50 = vadd.f32 %v8291_v48, %v8188_v14 }
 0x8fe   : > { %7589 = vpow2.f32 %v2421_v39  ;;  %v1776_v39 = vadd.f32 %v8285_v53, %v8182_v13 }
 0x8ff   : > { %v2466_v26 = vpop.permute.xlu1 %2465 }
 0x900   : > { %7155 = vmatprep.subr.mxu0 %v2466_v26 }
 0x909   : > { %v7586_v41 = vpop.eup %7585 }
 0x90a   : > { %v2432_v42 = vsel %vm702_vm0, %v7586_v41, 0.0  ;;  %v7588_v44 = vpop.eup %7587 }
 0x90b   : > { %2433 = vadd.xlane.f32.xlu0 %v2432_v42  ;;  %v2438_v45 = vsel %vm702_vm0, %v7588_v44, 0.0  ;;  %v7590_v46 = vpop.eup %7589 }
 0x90c   : > { %v2435_v47 = vsel %vm702_vm0, %v7590_v46, 0.0 }
 0x90f   : > { %2439 = vadd.xlane.f32.xlu0 %v2438_v45 }
 0x913   : > { %2436 = vadd.xlane.f32.xlu1 %v2435_v47 }
 0x924   : > { %2459 = vrot.lane.b32.xlu1 %v7911_v28, %s9260_s27 }
 0x925   : > { %2463 = vrot.lane.b32.xlu0 %v7897_v25, %s9260_s27  ;;  %s9277_s27 = smov 88  }
 0x967   : > { %v2431_v59 = vpop.xlane.xlu1 %2430 }
 0x968   : > { %7591 = vrcp.f32 %v2431_v59 }
 0x96b   : > { %v2462_v23 = vpop.permute.xlu1 %2461 }
 0x975   : > { %v7592_v51 = vpop.eup %7591 }
 0x976   : > { %v2453_v60 = vmul.f32 %v7592_v51, %v7584_v21 }
 0x989   : > { %v7120_v52 = vpop.f32.mrf.mxu0 }
 0x98b   : > { %v2098_v36 = vpop.f32.mrf.mxu0 }
 0x98c   : > { %7129 = vmatprep.mubr.msk.f32.mxu0 %vm608_vm1, %v2098_v36 }
 0x98d   : > { %v7123_v28 = vpop.f32.mrf.mxu0  ;;  %7130 = vmatmul.mubr.msk.f32.vlgmr.msra.gmra.mxu0 %vm608_vm1, %v7120_v52 }
 0x98e   : > { %7156 = vmatpush3.msra.mxu0 %v2466_v26 }
 0x98f   : > { %v2108_v25 = vpop.f32.mrf.mxu0 }
 0x990   : > { %7132 = vmatprep.mubr.msk.f32.mxu0 %vm608_vm1, %v2108_v25 }
 0x991   : > { %7133 = vmatmul.mubr.msk.f32.gmra.mxu0 %vm608_vm1, %v7123_v28 }
 0x994   : > { %v7126_v54 = vpop.f32.mrf.mxu0  ;;  %v2434_v49 = vpop.xlane.xlu0 %2433 }
 0x995   : > { %7593 = vrcp.f32 %v2434_v49 }
 0x996   : > { %v2118_v55 = vpop.f32.mrf.mxu0 }
 0x997   : > { %7135 = vmatprep.mubr.msk.f32.mxu0 %vm608_vm1, %v2118_v55 }
 0x998   : > { %7136 = vmatmul.mubr.msk.f32.gmra.mxu0 %vm608_vm1, %v7126_v54  ;;  %v2440_v35 = vpop.xlane.xlu0 %2439 }
 0x999   : > { %7163 = vmatprep.mubr.msk.f32.mxu0 %vm702_vm0, %v2453_v60  ;;  %7595 = vrcp.f32 %v2440_v35  ;;  %v8336_v60 = vld [vmem:[%s9246_s7] ss:$0 sm:$0xff] }
 0x99c   : > { %v2464_v61 = vpop.permute.xlu0 %2463  ;;  %v2437_v62 = vpop.xlane.xlu1 %2436 }
 0x99d   : > { %7597 = vrcp.f32 %v2437_v62  ;;  %7157 = vmatprep.subr.mxu0 %v2464_v61 }
 0x99e   : > { %7158 = vmatpush3.msra.mxu0 %v2464_v61 }
 0x99f   : > { %7159 = vmatprep.subr.mxu0 %v2462_v23 }
 0x9a0   : > { %7160 = vmatpush3.msra.mxu0 %v2462_v23  ;;  %v2460_v0 = vpop.permute.xlu1 %2459 }
 0x9a1   : > { %7161 = vmatprep.subr.mxu0 %v2460_v0 }
 0x9a2   : > { %v7594_v1 = vpop.eup %7593  ;;  %7162 = vmatpush3.msra.mxu0 %v2460_v0 }
 0x9a3   : > { %v2454_v2 = vmul.f32 %v7594_v1, %v7586_v41 }
 0x9a5   : > { %7164 = vmatmul.mubr.msk.f32.vlgmr.msra.gmra.mxu0 %vm702_vm0, %v2454_v2 }
 0x9a6   : > { %v7596_v3 = vpop.eup %7595 }
 0x9a7   : > { %v2456_v7 = vmul.f32 %v7596_v3, %v7588_v44  ;;  %v8344_v3 = vld [vmem:[%s7843_s29] sm:$0xff] }
 0x9aa   : > { %v7598_v5 = vpop.eup %7597 }
 0x9ab   : > { %v2455_v4 = vmul.f32 %v7598_v5, %v7590_v46 }
 0x9ad   : > { %7166 = vmatprep.mubr.msk.f32.mxu0 %vm702_vm0, %v2455_v4 }
 0x9ae   : > { %7167 = vmatmul.mubr.msk.f32.gmra.mxu0 %vm702_vm0, %v2456_v7 }
 0x9bd   : > { %v7154_v15 = vpop.f32.mrf.mxu1 }
 0x9be   : > { %v2386_v16 = vmul.f32 0.35355338, %v7154_v15 }
 0x9bf   : > { %v2372_v6 = vpop.f32.mrf.mxu1 }
 0x9c0   : > { %v2385_v18 = vmul.f32 0.35355338, %v2372_v6  ;;  %v2392_v17 = vadd.f32 %v2386_v16, %v7953_v58 }
 0x9c2   : > { %v2408_v21 = vsel %vm702_vm0, %v2392_v17, -inf  ;;  %v2391_v32 = vadd.f32 %v2385_v18, %v7953_v58 }
 0x9c3   : > { %2409 = vmax.xlane.f32.xlu1 %v2408_v21 }
 0x9c4   : > { %v2405_v33 = vsel %vm702_vm0, %v2391_v32, -inf }
 0x9c5   : > { %2406 = vmax.xlane.f32.xlu0 %v2405_v33 }
 0xa4c   : > { %v2410_v27 = vpop.xlane.xlu1 %2409 }
 0xa4d   : > { %v2416_v29 = vsub.f32 %v2392_v17, %v2410_v27  ;;  %v7131_v22 = vpop.f32.mrf.mxu0 }
 0xa4e   : > { %v2241_v34 = vadd.f32 %v7131_v22, %v1766_v24  ;;  %v2407_v58 = vpop.xlane.xlu0 %2406 }
 0xa4f   : > { %v2415_v37 = vsub.f32 %v2391_v32, %v2407_v58  ;;  %v2211_v38 = vpop.f32.mrf.mxu0  ;;  %v2427_v41 = vmul.f32 1.442695, %v2416_v29 }
 0xa50   : > { %v2240_v26 = vadd.f32 %v2211_v38, %v1761_v30 }
 0xa51   : > { %v2425_v42 = vmul.f32 1.442695, %v2415_v37  ;;  %v7134_v44 = vpop.f32.mrf.mxu0 }
 0xa52   : > { %v2243_v45 = vadd.f32 %v7134_v44, %v1776_v39 }
 0xa53   : > { %7599 = vpow2.f32 %v2425_v42  ;;  %v2221_v46 = vpop.f32.mrf.mxu0 }
 0xa54   : > { %v2242_v47 = vadd.f32 %v2221_v46, %v1771_v8  ;;  %7601 = vpow2.f32 %v2427_v41 }
 0xa58   : > { %v7137_v56 = vpop.f32.mrf.mxu0 }
 0xa59   : > { %v8321_v13 = vadd.f32 %v7137_v56, %v1786_v12 }
 0xa5a   : > { %v2231_v53 = vpop.f32.mrf.mxu0 }
 0xa5b   : > { %v8323_v59 = vadd.f32 %v2231_v53, %v1781_v50 }
 0xa60   : > { %v7600_v52 = vpop.eup %7599 }
 0xa61   : > { %v2441_v20 = vsel %vm702_vm0, %v7600_v52, 0.0  ;;  %v7602_v63 = vpop.eup %7601 }
 0xa62   : > { %2442 = vadd.xlane.f32.xlu0 %v2441_v20  ;;  %v2444_v28 = vsel %vm702_vm0, %v7602_v63, 0.0 }
 0xa65   : > { %v7165_v36 = vpop.f32.mrf.mxu0 }
 0xa66   : > { %2445 = vadd.xlane.f32.xlu0 %v2444_v28 }
 0xa67   : > { %v2555_v25 = vpop.f32.mrf.mxu0 }
 0xa68   : > { %7174 = vmatprep.mubr.msk.f32.mxu1 %vm608_vm1, %v2555_v25 }
 0xa69   : > { %7175 = vmatmul.mubr.msk.f32.vlgmr.msra.gmra.mxu1 %vm608_vm1, %v7165_v36 }
 0xa6e   : > { %v7168_v31 = vpop.f32.mrf.mxu0 }
 0xa70   : > { %v2565_v14 = vpop.f32.mrf.mxu0 }
 0xa71   : > { %7177 = vmatprep.mubr.msk.f32.mxu1 %vm608_vm1, %v2565_v14 }
 0xa72   : > { %7178 = vmatmul.mubr.msk.f32.gmra.mxu1 %vm608_vm1, %v7168_v31 }
 0xaeb   : > { %v2443_v57 = vpop.xlane.xlu0 %2442 }
 0xaec   : > { %7603 = vrcp.f32 %v2443_v57 }
 0xaef   : > { %v2446_v48 = vpop.xlane.xlu0 %2445 }
 0xaf0   : > { %7605 = vrcp.f32 %v2446_v48 }
 0xaf9   : > { %v7604_v51 = vpop.eup %7603 }
 0xafa   : > { %v2457_v54 = vmul.f32 %v7604_v51, %v7600_v52 }
 0xafc   : > { %7169 = vmatprep.mubr.msk.f32.mxu0 %vm702_vm0, %v2457_v54 }
 0xafd   : > { %v7606_v49 = vpop.eup %7605 }
 0xafe   : > { %v2458_v55 = vmul.f32 %v7606_v49, %v7602_v63 }
 0xb00   : > { %7170 = vmatmul.mubr.msk.f32.gmra.mxu0 %vm702_vm0, %v2458_v55 }
 0xb29   : > { %v7176_v23 = vpop.f32.mrf.mxu1 }
 0xb2a   : > { %v2698_v35 = vadd.f32 %v7176_v23, %v2241_v34 }
 0xb2b   : > { %v2668_v61 = vpop.f32.mrf.mxu1 }
 0xb2c   : > { %v2710_v62 = vadd.f32 %v8336_v60, %v2698_v35  ;;  %v2697_v0 = vadd.f32 %v2668_v61, %v2240_v26 }
 0xb2e   : > { %v8340_v1 = vadd.f32 %v2710_v62, %v7857_v9  ;;  %v2709_v2 = vadd.f32 %v8336_v60, %v2697_v0  ;;  %v578_v62 = vld [vmem:[%s9247_s8] sm:$0x3]  ;;  %v8383_v0 = vsub.s32 1, %v7940_v40 }
 0xb30   : > { %v8347_v5 = vadd.f32 %v8344_v3, %v2709_v2  ;;  %v2730_v4 = vsel %vm702_vm0, %v8340_v1, 0.0  ;;  %v2722_v7 = vmul.f32 %v8340_v1, %v8340_v1 }
 0xb31   : > { %2731 = vadd.xlane.f32.xlu0 %v2730_v4  ;;  %v8387_v4 = vrot.slane %v578_v62, %v7944_v43 }
 0xb32   : > { %v7179_v15 = vpop.f32.mrf.mxu1  ;;  %v2727_v16 = vsel %vm702_vm0, %v8347_v5, 0.0  ;;  %v2721_v6 = vmul.f32 %v8347_v5, %v8347_v5  ;;  %v2748_v21 = vsel %vm702_vm0, %v2722_v7, 0.0 }
 0xb33   : > { %v2700_v18 = vadd.f32 %v7179_v15, %v2243_v45  ;;  %2728 = vadd.xlane.f32.xlu1 %v2727_v16 }
 0xb34   : > { %v2678_v17 = vpop.f32.mrf.mxu1  ;;  %v2745_v19 = vsel %vm702_vm0, %v2721_v6, 0.0  ;;  %v8391_v6 = vrot.slane %v578_v62, %v8383_v0 }
 0xb35   : > { %v2712_v32 = vadd.f32 %v8336_v60, %v2700_v18  ;;  %v2699_v33 = vadd.f32 %v2678_v17, %v2242_v47  ;;  %2749 = vadd.xlane.f32.xlu0 %v2748_v21 }
 0xb37   : > { %v8361_v24 = vadd.f32 %v8344_v3, %v2712_v32  ;;  %v2711_v27 = vadd.f32 %v8336_v60, %v2699_v33  ;;  %2746 = vadd.xlane.f32.xlu1 %v2745_v19 }
 0xb39   : > { %v8365_v29 = vadd.f32 %v2711_v27, %v7865_v11  ;;  %v2736_v22 = vsel %vm702_vm0, %v8361_v24, 0.0  ;;  %v2724_v30 = vmul.f32 %v8361_v24, %v8361_v24 }
 0xb3a   : > { %2737 = vadd.xlane.f32.xlu0 %v2736_v22 }
 0xb3b   : > { %v2733_v34 = vsel %vm702_vm0, %v8365_v29, 0.0  ;;  %v2723_v58 = vmul.f32 %v8365_v29, %v8365_v29  ;;  %v2754_v37 = vsel %vm702_vm0, %v2724_v30, 0.0 }
 0xb3c   : > { %2734 = vadd.xlane.f32.xlu1 %v2733_v34 }
 0xb3d   : > { %v2751_v38 = vsel %vm702_vm0, %v2723_v58, 0.0 }
 0xb3e   : > { %2755 = vadd.xlane.f32.xlu0 %v2754_v37 }
 0xb40   : > { %2752 = vadd.xlane.f32.xlu1 %v2751_v38 }
 0xbba   : > { %v2732_v39 = vpop.xlane.xlu0 %2731 }
 0xbbb   : > { %v2764_v26 = vmul.f32 0.03125, %v2732_v39 }
 0xbbc   : > { %v2729_v41 = vpop.xlane.xlu1 %2728 }
 0xbbd   : > { %v2763_v42 = vmul.f32 0.03125, %v2729_v41  ;;  %v2776_v8 = vmul.f32 %v2764_v26, %v2764_v26  ;;  %v2788_v2 = vsub.f32 %v8340_v1, %v2764_v26 }
 0xbbe   : > { %v2750_v44 = vpop.xlane.xlu0 %2749 }
 0xbbf   : > { %v2770_v45 = vmul.f32 0.03125, %v2750_v44  ;;  %v2775_v12 = vmul.f32 %v2763_v42, %v2763_v42  ;;  %v2787_v15 = vsub.f32 %v8347_v5, %v2763_v42 }
 0xbc0   : > { %v7171_v46 = vpop.f32.mrf.mxu0  ;;  %v2747_v47 = vpop.xlane.xlu1 %2746 }
 0xbc1   : > { %v2782_v56 = vsub.f32 %v2770_v45, %v2776_v8  ;;  %v2769_v50 = vmul.f32 0.03125, %v2747_v47 }
 0xbc2   : > { %v2575_v53 = vpop.f32.mrf.mxu0 }
 0xbc3   : > { %v2794_v52 = vadd.f32 1e-05, %v2782_v56  ;;  %v2781_v20 = vsub.f32 %v2769_v50, %v2775_v12  ;;  %7180 = vmatprep.mubr.msk.f32.mxu1 %vm608_vm1, %v2575_v53  ;;  %v2738_v63 = vpop.xlane.xlu0 %2737 }
 0xbc4   : > { %v2766_v36 = vmul.f32 0.03125, %v2738_v63  ;;  %7181 = vmatmul.mubr.msk.f32.gmra.mxu1 %vm608_vm1, %v7171_v46  ;;  %v583_v63 = vld [vmem:[%s9249_s10 + $0x8] sm:$0xff] }
 0xbc5   : > { %7607 = vrsqrt.f32 %v2794_v52  ;;  %v2793_v28 = vadd.f32 1e-05, %v2781_v20  ;;  %v2735_v25 = vpop.xlane.xlu1 %2734  ;;  %v585_v52 = vld [vmem:[%s9249_s10 + $0x18] sm:$0xff]  ;;  %v584_v20 = vld [vmem:[%s9249_s10 + $0x10] sm:$0xff] }
 0xbc6   : > { %v2765_v31 = vmul.f32 0.03125, %v2735_v25  ;;  %v2778_v57 = vmul.f32 %v2766_v36, %v2766_v36  ;;  %v2790_v19 = vsub.f32 %v8361_v24, %v2766_v36  ;;  %7183 = vmatprep.subr.mxu0 %v585_v52  ;;  %v582_v36 = vld [vmem:[%s9249_s10] sm:$0xff] }
 0xbc7   : > { %7609 = vrsqrt.f32 %v2793_v28  ;;  %v2756_v14 = vpop.xlane.xlu0 %2755  ;;  %7184 = vmatpush3.msra.mxu0 %v585_v52 }
 0xbc8   : > { %v2772_v48 = vmul.f32 0.03125, %v2756_v14  ;;  %v2777_v54 = vmul.f32 %v2765_v31, %v2765_v31  ;;  %v2789_v34 = vsub.f32 %v8365_v29, %v2765_v31  ;;  %7185 = vmatprep.subr.mxu0 %v584_v20 }
 0xbc9   : > { %v2753_v51 = vpop.xlane.xlu1 %2752  ;;  %7186 = vmatpush3.msra.mxu0 %v584_v20 }
 0xbca   : > { %v2784_v49 = vsub.f32 %v2772_v48, %v2778_v57  ;;  %v2771_v55 = vmul.f32 0.03125, %v2753_v51  ;;  %7187 = vmatprep.subr.mxu0 %v583_v63 }
 0xbcb   : > { %7188 = vmatpush3.msra.mxu0 %v583_v63 }
 0xbcc   : > { %v2796_v23 = vadd.f32 1e-05, %v2784_v49  ;;  %v2783_v35 = vsub.f32 %v2771_v55, %v2777_v54  ;;  %7189 = vmatprep.subr.mxu0 %v582_v36 }
 0xbcd   : > { %7190 = vmatpush3.msra.mxu0 %v582_v36 }
 0xbce   : > { %7611 = vrsqrt.f32 %v2796_v23  ;;  %v2795_v61 = vadd.f32 1e-05, %v2783_v35 }
 0xbd0   : > { %7613 = vrsqrt.f32 %v2795_v61 }
 0xbd2   : > { %v7608_v7 = vpop.eup %7607 }
 0xbd3   : > { %v2806_v16 = vmul.f32 %v7608_v7, %v2788_v2 }
 0xbd4   : > { %v7610_v18 = vpop.eup %7609 }
 0xbd5   : > { %v2816_v17 = vmul.f32 %v8387_v4, %v2806_v16  ;;  %v2805_v21 = vmul.f32 %v7610_v18, %v2787_v15 }
 0xbd7   : > { %v2826_v40 = vadd.f32 %v8391_v6, %v2816_v17  ;;  %v2815_v32 = vmul.f32 %v8387_v4, %v2805_v21 }
 0xbd9   : > { %v8397_v1 = vadd.f32 %v2826_v40, %v7857_v9  ;;  %v2825_v33 = vadd.f32 %v8391_v6, %v2815_v32 }
 0xbdb   : > { %v7612_v5 = vpop.eup %7611  ;;  %v2846_v27 = vsel %vm702_vm0, %v8397_v1, 0.0  ;;  %v8404_v22 = vadd.f32 %v8344_v3, %v2825_v33  ;;  %v2838_v30 = vmul.f32 %v8397_v1, %v8397_v1 }
 0xbdc   : > { %2847 = vadd.xlane.f32.xlu0 %v2846_v27  ;;  %v2808_v58 = vmul.f32 %v7612_v5, %v2790_v19 }
 0xbdd   : > { %v7614_v37 = vpop.eup %7613  ;;  %v2843_v38 = vsel %vm702_vm0, %v8404_v22, 0.0  ;;  %v2837_v24 = vmul.f32 %v8404_v22, %v8404_v22  ;;  %v2864_v41 = vsel %vm702_vm0, %v2838_v30, 0.0 }
 0xbde   : > { %2844 = vadd.xlane.f32.xlu1 %v2843_v38  ;;  %v2818_v39 = vmul.f32 %v8387_v4, %v2808_v58  ;;  %v2807_v26 = vmul.f32 %v7614_v37, %v2789_v34  ;;  %v580_v34 = vld [vmem:[%s9248_s9 + $0x2] sm:$0x3]  ;;  %v579_v58 = vld [vmem:[%s9248_s9] sm:$0x3] }
 0xbdf   : > { %v2861_v44 = vsel %vm702_vm0, %v2837_v24, 0.0  ;;  %v655_v24 = vrot.slane %v580_v34, %v7944_v43 }
 0xbe0   : > { %2865 = vadd.xlane.f32.xlu0 %v2864_v41  ;;  %v2828_v42 = vadd.f32 %v8391_v6, %v2818_v39  ;;  %v2817_v29 = vmul.f32 %v8387_v4, %v2807_v26  ;;  %v8457_v41 = vrot.slane %v579_v58, %v7944_v43 }
 0xbe2   : > { %2862 = vadd.xlane.f32.xlu1 %v2861_v44  ;;  %v8419_v8 = vadd.f32 %v8344_v3, %v2828_v42  ;;  %v2827_v45 = vadd.f32 %v8391_v6, %v2817_v29  ;;  %v8460_v29 = vrot.slane %v579_v58, %v8383_v0 }
 0xbe4   : > { %v2852_v46 = vsel %vm702_vm0, %v8419_v8, 0.0  ;;  %v8425_v47 = vadd.f32 %v2827_v45, %v7865_v11  ;;  %v2840_v12 = vmul.f32 %v8419_v8, %v8419_v8  ;;  %v667_v45 = vrot.slane %v580_v34, %v8383_v0 }
 0xbe5   : > { %2853 = vadd.xlane.f32.xlu0 %v2852_v46 }
 0xbe6   : > { %v2849_v56 = vsel %vm702_vm0, %v8425_v47, 0.0  ;;  %v2839_v50 = vmul.f32 %v8425_v47, %v8425_v47  ;;  %v2870_v3 = vsel %vm702_vm0, %v2840_v12, 0.0 }
 0xbe7   : > { %2850 = vadd.xlane.f32.xlu1 %v2849_v56 }
 0xbe8   : > { %v2867_v53 = vsel %vm702_vm0, %v2839_v50, 0.0 }
 0xbe9   : > { %2871 = vadd.xlane.f32.xlu0 %v2870_v3 }
 0xbeb   : > { %2868 = vadd.xlane.f32.xlu1 %v2867_v53 }
 0xc65   : > { %v2848_v28 = vpop.xlane.xlu0 %2847 }
 0xc66   : > { %v2880_v25 = vmul.f32 0.03125, %v2848_v28 }
 0xc67   : > { %v2845_v31 = vpop.xlane.xlu1 %2844 }
 0xc68   : > { %v2879_v14 = vmul.f32 0.03125, %v2845_v31  ;;  %v2892_v48 = vmul.f32 %v2880_v25, %v2880_v25  ;;  %v2904_v37 = vsub.f32 %v8397_v1, %v2880_v25  ;;  %v581_v1 = vld [vmem:[%s9248_s9 + $0x4] sm:$0x3] }
 0xc69   : > { %v2866_v57 = vpop.xlane.xlu0 %2865  ;;  %v659_v63 = vrot.slane %v581_v1, %v7944_v43 }
 0xc6a   : > { %v2886_v51 = vmul.f32 0.03125, %v2866_v57  ;;  %v2891_v49 = vmul.f32 %v2879_v14, %v2879_v14  ;;  %v2903_v39 = vsub.f32 %v8404_v22, %v2879_v14  ;;  %v671_v57 = vrot.slane %v581_v1, %v8383_v0 }
 0xc6b   : > { %v2863_v54 = vpop.xlane.xlu1 %2862 }
 0xc6c   : > { %v2898_v55 = vsub.f32 %v2886_v51, %v2892_v48  ;;  %v2885_v23 = vmul.f32 0.03125, %v2863_v54 }
 0xc6e   : > { %v2910_v35 = vadd.f32 1e-05, %v2898_v55  ;;  %v2897_v61 = vsub.f32 %v2885_v23, %v2891_v49  ;;  %v2854_v62 = vpop.xlane.xlu0 %2853 }
 0xc6f   : > { %v2882_v2 = vmul.f32 0.03125, %v2854_v62 }
 0xc70   : > { %7615 = vrsqrt.f32 %v2910_v35  ;;  %v2909_v7 = vadd.f32 1e-05, %v2897_v61  ;;  %v2851_v15 = vpop.xlane.xlu1 %2850 }
 0xc71   : > { %v2881_v16 = vmul.f32 0.03125, %v2851_v15  ;;  %v2894_v17 = vmul.f32 %v2882_v2, %v2882_v2  ;;  %v2906_v50 = vsub.f32 %v8419_v8, %v2882_v2  ;;  %v594_v2 = vld [vmem:[%s9251_s12 + $0x38] sm:$0xff]  ;;  %v592_v15 = vld [vmem:[%s9251_s12 + $0x28] sm:$0xff] }
 0xc72   : > { %7617 = vrsqrt.f32 %v2909_v7  ;;  %v2872_v18 = vpop.xlane.xlu0 %2871  ;;  %v593_v7 = vld [vmem:[%s9251_s12 + $0x30] sm:$0xff]  ;;  %7200 = vmatprep.subr.mxu1 %v594_v2 }
 0xc73   : > { %v2888_v21 = vmul.f32 0.03125, %v2872_v18  ;;  %v2893_v32 = vmul.f32 %v2881_v16, %v2881_v16  ;;  %v2905_v36 = vsub.f32 %v8425_v47, %v2881_v16  ;;  %7201 = vmatpush3.msra.mxu1 %v594_v2  ;;  %v591_v16 = vld [vmem:[%s9251_s12 + $0x20] sm:$0xff]  ;;  %v590_v18 = vld [vmem:[%s9251_s12 + $0x18] sm:$0xff] }
 0xc74   : > { %v2869_v40 = vpop.xlane.xlu1 %2868  ;;  %7202 = vmatprep.subr.mxu1 %v593_v7 }
 0xc75   : > { %v2900_v33 = vsub.f32 %v2888_v21, %v2894_v17  ;;  %v2887_v19 = vmul.f32 0.03125, %v2869_v40  ;;  %7203 = vmatpush3.msra.mxu1 %v593_v7  ;;  %v589_v17 = vld [vmem:[%s9251_s12 + $0x10] sm:$0xff]  ;;  %v588_v21 = vld [vmem:[%s9251_s12 + $0x8] sm:$0xff]  ;;  %v587_v40 = vld [vmem:[%s9251_s12] sm:$0xff] }
 0xc76   : > { %7204 = vmatprep.subr.mxu1 %v592_v15 }
 0xc77   : > { %v2912_v5 = vadd.f32 1e-05, %v2900_v33  ;;  %v2899_v27 = vsub.f32 %v2887_v19, %v2893_v32  ;;  %7205 = vmatpush3.msra.mxu1 %v592_v15 }
 0xc78   : > { %7206 = vmatprep.subr.mxu1 %v591_v16 }
 0xc79   : > { %7619 = vrsqrt.f32 %v2912_v5  ;;  %v2911_v30 = vadd.f32 1e-05, %v2899_v27  ;;  %7207 = vmatpush3.msra.mxu1 %v591_v16 }
 0xc7a   : > { %7208 = vmatprep.subr.mxu1 %v590_v18 }
 0xc7b   : > { %7621 = vrsqrt.f32 %v2911_v30  ;;  %7209 = vmatpush3.msra.mxu1 %v590_v18 }
 0xc7c   : > { %7210 = vmatprep.subr.mxu1 %v589_v17 }
 0xc7d   : > { %v7616_v38 = vpop.eup %7615  ;;  %7211 = vmatpush3.msra.mxu1 %v589_v17 }
 0xc7e   : > { %v2922_v26 = vmul.f32 %v7616_v38, %v2904_v37  ;;  %7212 = vmatprep.subr.mxu1 %v588_v21 }
 0xc7f   : > { %v7618_v42 = vpop.eup %7617  ;;  %7213 = vmatpush3.msra.mxu1 %v588_v21 }
 0xc80   : > { %v2921_v44 = vmul.f32 %v7618_v42, %v2903_v39  ;;  %v2928_v46 = vmul.f32 %v2922_v26, %v655_v24  ;;  %7214 = vmatprep.subr.mxu1 %v587_v40 }
 0xc81   : > { %7215 = vmatpush3.msra.mxu1 %v587_v40 }
 0xc82   : > { %v2927_v12 = vmul.f32 %v2921_v44, %v8457_v41  ;;  %v8472_v53 = vadd.f32 %v2928_v46, %v667_v45 }
 0xc84   : > { %v7182_v56 = vpop.f32.mrf.mxu1  ;;  %v8468_v22 = vadd.f32 %v2927_v12, %v8460_v29 }
 0xc85   : > { %v2702_v3 = vadd.f32 %v7182_v56, %v8321_v13 }
 0xc86   : > { %v7620_v52 = vpop.eup %7619  ;;  %v2688_v20 = vpop.f32.mrf.mxu1  ;;  %7191 = vmatprep.mubr.msk.f32.mxu0 %vm702_vm0, %v8468_v22 }
 0xc87   : > { %v2714_v28 = vadd.f32 %v8336_v60, %v2702_v3  ;;  %v2701_v25 = vadd.f32 %v2688_v20, %v8323_v59  ;;  %7192 = vmatmul.mubr.msk.f32.vlgmr.msra.gmra.mxu0 %vm702_vm0, %v8472_v53  ;;  %v2924_v8 = vmul.f32 %v7620_v52, %v2906_v50 }
 0xc88   : > { %v7622_v13 = vpop.eup %7621 }
 0xc89   : > { %v8483_v31 = vadd.f32 %v2714_v28, %v7865_v11  ;;  %v2713_v14 = vadd.f32 %v8336_v60, %v2701_v25  ;;  %v2923_v48 = vmul.f32 %v7622_v13, %v2905_v36  ;;  %v2930_v51 = vmul.f32 %v2924_v8, %v8457_v41 }
 0xc8b   : > { %v8489_v47 = vadd.f32 %v2713_v14, %v7857_v9  ;;  %v2742_v59 = vsel %vm702_vm0, %v8483_v31, 0.0  ;;  %v2929_v54 = vmul.f32 %v2923_v48, %v659_v63  ;;  %v2726_v49 = vmul.f32 %v8483_v31, %v8483_v31 }
 0xc8c   : > { %2743 = vadd.xlane.f32.xlu0 %v2742_v59  ;;  %v8502_v35 = vadd.f32 %v2930_v51, %v8460_v29 }
 0xc8d   : > { %v2739_v55 = vsel %vm702_vm0, %v8489_v47, 0.0  ;;  %v8497_v60 = vadd.f32 %v2929_v54, %v671_v57  ;;  %v2725_v23 = vmul.f32 %v8489_v47, %v8489_v47  ;;  %v2760_v61 = vsel %vm702_vm0, %v2726_v49, 0.0 }
 0xc8e   : > { %2740 = vadd.xlane.f32.xlu1 %v2739_v55 }
 0xc8f   : > { %7194 = vmatprep.mubr.msk.f32.mxu0 %vm702_vm0, %v8497_v60  ;;  %v2757_v62 = vsel %vm702_vm0, %v2725_v23, 0.0 }
 0xc90   : > { %2761 = vadd.xlane.f32.xlu0 %v2760_v61  ;;  %7195 = vmatmul.mubr.msk.f32.gmra.mxu0 %vm702_vm0, %v8502_v35 }
 0xc92   : > { %2758 = vadd.xlane.f32.xlu1 %v2757_v62 }
 0xd15   : > { %v2744_v32 = vpop.xlane.xlu0 %2743 }
 0xd16   : > { %v2768_v33 = vmul.f32 0.03125, %v2744_v32 }
 0xd17   : > { %v2741_v19 = vpop.xlane.xlu1 %2740 }
 0xd18   : > { %v2767_v5 = vmul.f32 0.03125, %v2741_v19  ;;  %v2780_v30 = vmul.f32 %v2768_v33, %v2768_v33  ;;  %v2792_v44 = vsub.f32 %v8483_v31, %v2768_v33 }
 0xd19   : > { %v2762_v27 = vpop.xlane.xlu0 %2761 }
 0xd1a   : > { %v2774_v34 = vmul.f32 0.03125, %v2762_v27  ;;  %v2779_v37 = vmul.f32 %v2767_v5, %v2767_v5  ;;  %v2791_v46 = vsub.f32 %v8489_v47, %v2767_v5 }
 0xd1b   : > { %v2759_v58 = vpop.xlane.xlu1 %2758 }
 0xd1c   : > { %v2786_v38 = vsub.f32 %v2774_v34, %v2780_v30  ;;  %v2773_v24 = vmul.f32 0.03125, %v2759_v58 }
 0xd1e   : > { %v2798_v39 = vadd.f32 1e-05, %v2786_v38  ;;  %v2785_v26 = vsub.f32 %v2773_v24, %v2779_v37 }
 0xd20   : > { %7623 = vrsqrt.f32 %v2798_v39  ;;  %v2797_v42 = vadd.f32 1e-05, %v2785_v26 }
 0xd22   : > { %7625 = vrsqrt.f32 %v2797_v42 }
 0xd2d   : > { %v7624_v45 = vpop.eup %7623 }
 0xd2e   : > { %v2810_v12 = vmul.f32 %v7624_v45, %v2792_v44  ;;  %v6576_v44 = vld [vmem:[%s9252_s13] ss:$0 sm:$0xff] }
 0xd2f   : > { %v7626_v1 = vpop.eup %7625 }
 0xd30   : > { %v2820_v56 = vmul.f32 %v8387_v4, %v2810_v12  ;;  %v2809_v50 = vmul.f32 %v7626_v1, %v2791_v46 }
 0xd32   : > { %v2830_v3 = vadd.f32 %v8391_v6, %v2820_v56  ;;  %v2819_v52 = vmul.f32 %v8387_v4, %v2809_v50 }
 0xd34   : > { %v2836_v20 = vadd.f32 %v2830_v3, %v7865_v11  ;;  %v2829_v63 = vadd.f32 %v8391_v6, %v2819_v52  ;;  %v8549_v11 = vld [vmem:[%s9250_s11] ss:$0 sm:$0xff] }
 0xd36   : > { %v2858_v36 = vsel %vm702_vm0, %v2836_v20, 0.0  ;;  %v2835_v28 = vadd.f32 %v2829_v63, %v7857_v9  ;;  %v2842_v25 = vmul.f32 %v2836_v20, %v2836_v20 }
 0xd37   : > { %2859 = vadd.xlane.f32.xlu0 %v2858_v36 }
 0xd38   : > { %v2855_v8 = vsel %vm702_vm0, %v2835_v28, 0.0  ;;  %v2841_v13 = vmul.f32 %v2835_v28, %v2835_v28  ;;  %v2876_v31 = vsel %vm702_vm0, %v2842_v25, 0.0 }
 0xd39   : > { %2856 = vadd.xlane.f32.xlu1 %v2855_v8 }
 0xd3a   : > { %v2873_v14 = vsel %vm702_vm0, %v2841_v13, 0.0 }
 0xd3b   : > { %2877 = vadd.xlane.f32.xlu0 %v2876_v31  ;;  %v7714_v31 = vmov 0.0  }
 0xd3c   : > { %7225 = vmatprep.subr.mxu0 %v7714_v31  ;;  %7247 = vmatprep.subr.mxu1 %v7714_v31 }
 0xd3d   : > { %2874 = vadd.xlane.f32.xlu1 %v2873_v14  ;;  %v6618_v14 = vld [vmem:[%s9254_s15 + $0x38] sm:$0xff] }
 0xd3e   : > { %7226 = vmatpush3.msra.mxu0 %v6618_v14 }
 0xd3f   : > { %7227 = vmatprep.subr.mxu0 %v7714_v31 }
 0xd47   : > { %v7193_v4 = vpop.f32.mrf.mxu0 }
 0xd48   : > { %v3035_v9 = vadd.f32 %v7193_v4, %v8549_v11  ;;  %v6616_v4 = vld [vmem:[%s9254_s15 + $0x28] sm:$0xff] }
 0xd49   : > { %v3029_v6 = vpop.f32.mrf.mxu0 }
 0xd4a   : > { %v3030_v57 = vadd.f32 %v8549_v11, %v3029_v6  ;;  %v3059_v51 = vmax.f32 %v3035_v9, 0.0  ;;  %v6615_v9 = vld [vmem:[%s9254_s15 + $0x20] sm:$0xff]  ;;  %v6624_v6 = vld [vmem:[%s9254_s15 + $0x58] sm:$0xff] }
 0xd4c   : > { %v3058_v48 = vmax.f32 %v3030_v57, 0.0  ;;  %v6623_v57 = vld [vmem:[%s9254_s15 + $0x50] sm:$0xff] }
 0xd4e   : > { %7216 = vmatprep.mubr.msk.f32.mxu1 %vm3070_vm4, %v3058_v48  ;;  %v6622_v48 = vld [vmem:[%s9254_s15 + $0x48] sm:$0xff] }
 0xd4f   : > { %7217 = vmatmul.mubr.msk.f32.vlgmr.msra.gmra.mxu1 %vm3070_vm4, %v3059_v51  ;;  %v6621_v51 = vld [vmem:[%s9254_s15 + $0x40] sm:$0xff] }
 0xd50   : > { %v7196_v47 = vpop.f32.mrf.mxu0  ;;  %7248 = vmatpush3.msra.mxu1 %v6624_v6 }
 0xd51   : > { %v3045_v59 = vadd.f32 %v7196_v47, %v8549_v11  ;;  %7249 = vmatprep.subr.mxu1 %v7714_v31 }
 0xd52   : > { %v3039_v54 = vpop.f32.mrf.mxu0  ;;  %7250 = vmatpush3.msra.mxu1 %v6623_v57 }
 0xd53   : > { %v3040_v49 = vadd.f32 %v8549_v11, %v3039_v54  ;;  %v3061_v23 = vmax.f32 %v3045_v59, 0.0  ;;  %7251 = vmatprep.subr.mxu1 %v7714_v31 }
 0xd54   : > { %7252 = vmatpush3.msra.mxu1 %v6622_v48 }
 0xd55   : > { %v3060_v55 = vmax.f32 %v3040_v49, 0.0  ;;  %7253 = vmatprep.subr.mxu1 %v7714_v31 }
 0xd56   : > { %7254 = vmatpush3.msra.mxu1 %v6621_v51 }
 0xd57   : > { %7219 = vmatprep.mubr.msk.f32.mxu1 %vm3070_vm4, %v3060_v55  ;;  %7269 = vmatprep.subr.mxu1 %v7714_v31 }
 0xd58   : > { %7220 = vmatmul.mubr.msk.f32.gmra.mxu1 %vm3070_vm4, %v3061_v23 }
 0xdc0   : > { %v2860_v61 = vpop.xlane.xlu0 %2859 }
 0xdc1   : > { %v2884_v62 = vmul.f32 0.03125, %v2860_v61 }
 0xdc2   : > { %v2857_v2 = vpop.xlane.xlu1 %2856 }
 0xdc3   : > { %v2883_v7 = vmul.f32 0.03125, %v2857_v2  ;;  %v2896_v16 = vmul.f32 %v2884_v62, %v2884_v62  ;;  %v2908_v27 = vsub.f32 %v2836_v20, %v2884_v62 }
 0xdc4   : > { %v2878_v15 = vpop.xlane.xlu0 %2877 }
 0xdc5   : > { %v2890_v18 = vmul.f32 0.03125, %v2878_v15  ;;  %v2895_v21 = vmul.f32 %v2883_v7, %v2883_v7  ;;  %v2907_v34 = vsub.f32 %v2835_v28, %v2883_v7 }
 0xdc6   : > { %v2875_v17 = vpop.xlane.xlu1 %2874 }
 0xdc7   : > { %v2902_v40 = vsub.f32 %v2890_v18, %v2896_v16  ;;  %v2889_v32 = vmul.f32 0.03125, %v2875_v17 }
 0xdc9   : > { %v2914_v33 = vadd.f32 1e-05, %v2902_v40  ;;  %v2901_v19 = vsub.f32 %v2889_v32, %v2895_v21 }
 0xdcb   : > { %7627 = vrsqrt.f32 %v2914_v33  ;;  %v2913_v5 = vadd.f32 1e-05, %v2901_v19 }
 0xdcd   : > { %7629 = vrsqrt.f32 %v2913_v5 }
 0xdd8   : > { %v7628_v30 = vpop.eup %7627 }
 0xdd9   : > { %v2926_v58 = vmul.f32 %v7628_v30, %v2908_v27 }
 0xdda   : > { %v7630_v37 = vpop.eup %7629 }
 0xddb   : > { %v2925_v38 = vmul.f32 %v7630_v37, %v2907_v34  ;;  %v2932_v24 = vmul.f32 %v2926_v58, %v8457_v41 }
 0xddd   : > { %v2931_v39 = vmul.f32 %v2925_v38, %v8457_v41  ;;  %v8565_v42 = vadd.f32 %v2932_v24, %v8460_v29  ;;  %v597_v38 = vld [vmem:[%s9253_s14 + $0x2] sm:$0x3] }
 0xddf   : > { %v8562_v26 = vadd.f32 %v2931_v39, %v8460_v29 }
 0xde1   : > { %7197 = vmatprep.mubr.msk.f32.mxu0 %vm702_vm0, %v8562_v26 }
 0xde2   : > { %7198 = vmatmul.mubr.msk.f32.gmra.mxu0 %vm702_vm0, %v8565_v42 }
 0xde3   : > { %7233 = vmatprep.mubr.msk.f32.mxu0 %vm7715_vm5, %v7714_v31 }
 0xe0f   : > { %v7218_v45 = vpop.f32.mrf.mxu1 }
 0xe10   : > { %v3161_v46 = vadd.f32 %v7218_v45, %v6576_v44 }
 0xe11   : > { %v3155_v12 = vpop.f32.mrf.mxu1 }
 0xe12   : > { %v8575_v41 = vadd.f32 %v3161_v46, %v8472_v53  ;;  %v3156_v1 = vadd.f32 %v6576_v44, %v3155_v12  ;;  %v691_v12 = vrot.slane %v597_v38, %v8383_v0 }
 0xe14   : > { %v8578_v29 = vadd.f32 %v3156_v1, %v8468_v22  ;;  %v3199_v56 = vsel %vm702_vm0, %v8575_v41, 0.0  ;;  %v3191_v50 = vmul.f32 %v8575_v41, %v8575_v41  ;;  %v596_v1 = vld [vmem:[%s9253_s14] sm:$0x3] }
 0xe15   : > { %3200 = vadd.xlane.f32.xlu1 %v3199_v56 }
 0xe16   : > { %v3217_v3 = vsel %vm702_vm0, %v3191_v50, 0.0  ;;  %v3196_v53 = vsel %vm702_vm0, %v8578_v29, 0.0  ;;  %v3190_v20 = vmul.f32 %v8578_v29, %v8578_v29 }
 0xe17   : > { %3218 = vadd.xlane.f32.xlu0 %v3217_v3 }
 0xe18   : > { %v8585_v52 = vpop.f32.mrf.mxu1  ;;  %v3214_v36 = vsel %vm702_vm0, %v3190_v20, 0.0 }
 0xe19   : > { %3197 = vadd.xlane.f32.xlu1 %v3196_v53  ;;  %v8658_v53 = vrot.slane %v596_v1, %v7944_v43 }
 0xe1a   : > { %v3165_v22 = vpop.f32.mrf.mxu1 }
 0xe1b   : > { %v3166_v63 = vadd.f32 %v6576_v44, %v3165_v22  ;;  %v679_v44 = vrot.slane %v597_v38, %v7944_v43  ;;  %v3339_v22 = vld [vmem:[%s9254_s15 + $0x10] sm:$0xff]  ;;  %v7718_v38 = vmov 2  }
 0xe1d   : > { %v8593_v28 = vadd.f32 %v3166_v63, %v8497_v60  ;;  %3215 = vadd.xlane.f32.xlu1 %v3214_v36  ;;  %v6617_v60 = vld [vmem:[%s9254_s15 + $0x30] sm:$0xff]  ;;  %v8666_v63 = vrot.slane %v596_v1, %v8383_v0  ;;  %v3338_v36 = vld [vmem:[%s9254_s15 + $0x8] sm:$0xff] }
 0xe1e   : > { %7228 = vmatpush3.msra.mxu0 %v6617_v60 }
 0xe1f   : > { %v3202_v25 = vsel %vm702_vm0, %v8593_v28, 0.0  ;;  %v3192_v8 = vmul.f32 %v8593_v28, %v8593_v28  ;;  %7229 = vmatprep.subr.mxu0 %v7714_v31 }
 0xe20   : > { %3203 = vadd.xlane.f32.xlu0 %v3202_v25  ;;  %7230 = vmatpush3.msra.mxu0 %v6616_v4 }
 0xe21   : > { %v3220_v13 = vsel %vm702_vm0, %v3192_v8, 0.0  ;;  %7231 = vmatprep.subr.mxu0 %v7714_v31  ;;  %v598_v8 = vld [vmem:[%s9253_s14 + $0x4] sm:$0x3] }
 0xe22   : > { %7232 = vmatpush3.msra.mxu0 %v6615_v9  ;;  %v683_v4 = vrot.slane %v598_v8, %v7944_v43  ;;  %v695_v57 = vrot.slane %v598_v8, %v8383_v0 }
 0xe23   : > { %7236 = vmatprep.subr.mxu0 %v7714_v31 }
 0xe24   : > { %3221 = vadd.xlane.f32.xlu0 %v3220_v13  ;;  %v3337_v13 = vld [vmem:[%s9254_s15] sm:$0xff] }
 0xe9e   : > { %v3201_v47 = vpop.xlane.xlu1 %3200 }
 0xe9f   : > { %v3233_v59 = vmul.f32 0.03125, %v3201_v47 }
 0xea0   : > { %v3219_v54 = vpop.xlane.xlu0 %3218 }
 0xea1   : > { %v3245_v49 = vmul.f32 %v3233_v59, %v3233_v59  ;;  %v3239_v55 = vmul.f32 0.03125, %v3219_v54  ;;  %v3257_v39 = vsub.f32 %v8575_v41, %v3233_v59  ;;  %v3340_v41 = vld [vmem:[%s9254_s15 + $0x18] sm:$0xff] }
 0xea2   : > { %v7199_v23 = vpop.f32.mrf.mxu0  ;;  %v3198_v61 = vpop.xlane.xlu1 %3197 }
 0xea3   : > { %v3251_v62 = vsub.f32 %v3239_v55, %v3245_v49  ;;  %v3232_v2 = vmul.f32 0.03125, %v3198_v61  ;;  %v3055_v16 = vadd.f32 %v7199_v23, %v8549_v11 }
 0xea4   : > { %v3049_v7 = vpop.f32.mrf.mxu0 }
 0xea5   : > { %v3263_v15 = vadd.f32 1e-05, %v3251_v62  ;;  %v3050_v18 = vadd.f32 %v8549_v11, %v3049_v7  ;;  %v3244_v21 = vmul.f32 %v3232_v2, %v3232_v2  ;;  %v3063_v33 = vmax.f32 %v3055_v16, 0.0  ;;  %v6626_v62 = vld [vmem:[%s9255_s16] ss:$0 sm:$0xff] }
 0xea6   : > { %v3216_v17 = vpop.xlane.xlu1 %3215  ;;  %v3256_v50 = vsub.f32 %v8578_v29, %v3232_v2 }
 0xea7   : > { %7631 = vrsqrt.f32 %v3263_v15  ;;  %v3238_v40 = vmul.f32 0.03125, %v3216_v17  ;;  %v3062_v32 = vmax.f32 %v3050_v18, 0.0 }
 0xea9   : > { %v3250_v19 = vsub.f32 %v3238_v40, %v3244_v21  ;;  %v3204_v5 = vpop.xlane.xlu0 %3203  ;;  %7222 = vmatprep.mubr.msk.f32.mxu1 %vm3070_vm4, %v3062_v32 }
 0xeaa   : > { %v3234_v27 = vmul.f32 0.03125, %v3204_v5  ;;  %7223 = vmatmul.mubr.msk.f32.gmra.mxu1 %vm3070_vm4, %v3063_v33  ;;  %v7716_v33 = vmov 1  }
 0xeab   : > { %v3262_v30 = vadd.f32 1e-05, %v3250_v19  ;;  %7255 = vmatprep.mubr.msk.f32.mxu1 %vm7715_vm5, %v7714_v31  ;;  %7508 = vset.pattern.permute.xlu0 %v7716_v33  ;;  %v7717_v19 = vmov 0  }
 0xeac   : > { %v3246_v11 = vmul.f32 %v3234_v27, %v3234_v27  ;;  %v3258_v60 = vsub.f32 %v8593_v28, %v3234_v27  ;;  %7507 = vset.pattern.permute.xlu1 %v7717_v19 }
 0xead   : > { %7633 = vrsqrt.f32 %v3262_v30  ;;  %v3222_v34 = vpop.xlane.xlu0 %3221 }
 0xeae   : > { %v3240_v58 = vmul.f32 0.03125, %v3222_v34  ;;  %v6586_v34 = vld [vmem:[%s9241_s2 + $0x38] sm:$0xff] }
 0xeb0   : > { %v3252_v37 = vsub.f32 %v3240_v58, %v3246_v11  ;;  %v6591_v11 = vld [vmem:[%s9243_s4 + $0x38] sm:$0xff]  ;;  %v6585_v58 = vld [vmem:[%s9241_s2 + $0x30] sm:$0xff] }
 0xeb2   : > { %v3264_v24 = vadd.f32 1e-05, %v3252_v37  ;;  %v6590_v37 = vld [vmem:[%s9243_s4 + $0x30] sm:$0xff] }
 0xeb4   : > { %v7632_v45 = vpop.eup %7631  ;;  %7635 = vrsqrt.f32 %v3264_v24  ;;  %v6584_v24 = vld [vmem:[%s9241_s2 + $0x28] sm:$0xff] }
 0xeb5   : > { %v3275_v46 = vmul.f32 %v7632_v45, %v3257_v39  ;;  %v6589_v39 = vld [vmem:[%s9243_s4 + $0x28] sm:$0xff]  ;;  %v6588_v45 = vld [vmem:[%s9243_s4 + $0x20] sm:$0xff] }
 0xeb7   : > { %v3281_v56 = vmul.f32 %v3275_v46, %v679_v44  ;;  %v6583_v44 = vld [vmem:[%s9241_s2 + $0x20] sm:$0xff] }
 0xeb9   : > { %v8652_v3 = vadd.f32 %v3281_v56, %v691_v12 }
 0xeba   : > { %v7634_v20 = vpop.eup %7633 }
 0xebb   : > { %7234 = vmatmul.mubr.msk.f32.vlgmr.msra.gmra.mxu0 %vm702_vm0, %v8652_v3  ;;  %v3274_v29 = vmul.f32 %v7634_v20, %v3256_v50 }
 0xebc   : > { %7237 = vmatpush3.msra.mxu0 %v3340_v41  ;;  %7244 = vmatprep.mubr.msk.f32.mxu0 %vm7715_vm5, %v7714_v31 }
 0xebd   : > { %7238 = vmatprep.subr.mxu0 %v7714_v31  ;;  %v3280_v25 = vmul.f32 %v3274_v29, %v8658_v53 }
 0xebe   : > { %7239 = vmatpush3.msra.mxu0 %v3339_v22 }
 0xebf   : > { %7240 = vmatprep.subr.mxu0 %v7714_v31  ;;  %v8683_v14 = vadd.f32 %v3280_v25, %v8666_v63  ;;  %v6627_v25 = vld [vmem:[%s9242_s3 + $0x1] ss:$0 sm:$0xff] }
 0xec0   : > { %7241 = vmatpush3.msra.mxu0 %v3338_v36 }
 0xec1   : > { %v7636_v9 = vpop.eup %7635  ;;  %7242 = vmatprep.subr.mxu0 %v7714_v31 }
 0xec2   : > { %v3276_v6 = vmul.f32 %v7636_v9, %v3258_v60  ;;  %7243 = vmatpush3.msra.mxu0 %v3337_v13 }
 0xec3   : > { %7245 = vmatmul.mubr.msk.f32.vlgmr.msra.gmra.mxu0 %vm702_vm0, %v8683_v14  ;;  %7258 = vmatprep.subr.mxu0 %v7714_v31 }
 0xec4   : > { %v3282_v48 = vmul.f32 %v3276_v6, %v683_v4  ;;  %7266 = vmatprep.mubr.msk.f32.mxu0 %vm7715_vm5, %v7714_v31  ;;  %7259 = vmatpush3.msra.mxu0 %v6586_v34  ;;  %v7692_v4 = vld [vmem:[%s7882_s0] sm:$0x7] }
 0xec5   : > { %7260 = vmatprep.subr.mxu0 %v7714_v31  ;;  %v8772_v9 = vrot.slane %v7692_v4, %v7944_v43 }
 0xec6   : > { %v8694_v28 = vadd.f32 %v3282_v48, %v695_v57  ;;  %7261 = vmatpush3.msra.mxu0 %v6585_v58 }
 0xec7   : > { %7262 = vmatprep.subr.mxu0 %v7714_v31 }
 0xec8   : > { %7256 = vmatmul.mubr.msk.f32.vlgmr.msra.gmra.mxu1 %vm702_vm0, %v8694_v28  ;;  %7263 = vmatpush3.msra.mxu0 %v6584_v24 }
 0xec9   : > { %7277 = vmatprep.mubr.msk.f32.mxu1 %vm7715_vm5, %v7714_v31  ;;  %7270 = vmatpush3.msra.mxu1 %v6591_v11 }
 0xeca   : > { %7271 = vmatprep.subr.mxu1 %v7714_v31  ;;  %7264 = vmatprep.subr.mxu0 %v7714_v31 }
 0xecb   : > { %7272 = vmatpush3.msra.mxu1 %v6590_v37  ;;  %7265 = vmatpush3.msra.mxu0 %v6583_v44 }
 0xecc   : > { %7273 = vmatprep.subr.mxu1 %v7714_v31  ;;  %7280 = vmatprep.subr.mxu0 %v7714_v31 }
 0xecd   : > { %7274 = vmatpush3.msra.mxu1 %v6589_v39 }
 0xece   : > { %7275 = vmatprep.subr.mxu1 %v7714_v31 }
 0xecf   : > { %7276 = vmatpush3.msra.mxu1 %v6588_v45  ;;  %v6593_v45 = vld [vmem:[%s9245_s6 + $0x20] sm:$0xff] }
 0xed0   : > { %7295 = vmatprep.subr.mxu1 %v7714_v31 }
 0xf6a   : > { %v8700_v59 = vpop.f32.mrf.mxu1 }
 0xf6c   : > { %v8702_v55 = vpop.f32.mrf.mxu1 }
 0xf7b   : > { %v3415_v51 = vpop.f32.mrf.mxu0 }
 0xf7d   : > { %v7235_v47 = vpop.f32.mrf.mxu0 }
 0xf83   : > { %v3488_v54 = vpop.f32.mrf.mxu0 }
 0xf84   : > { %v3489_v23 = vadd.f32 %v3488_v54, %v3415_v51 }
 0xf85   : > { %v7246_v49 = vpop.f32.mrf.mxu0 }
 0xf88   : > { %v3566_v61 = vpop.f32.mrf.mxu1 }
 0xf89   : > { %v3570_v2 = vadd.f32 %v3566_v61, %v3489_v23 }
 0xf8a   : > { %v7257_v7 = vpop.f32.mrf.mxu1 }
 0xf8b   : > { %v3578_v15 = vadd.f32 %v6626_v62, %v3570_v2 }
 0xf8d   : > { %v3580_v16 = vsel %vm3579_vm6, %v3578_v15, -inf }
 0xf8e   : > { %3581 = vmax.xlane.f32.xlu1 %v3580_v16 }
0x1017   : > { %v3582_v18 = vpop.xlane.xlu1 %3581 }
0x1018   : > { %v3583_v17 = vsub.f32 %v3578_v15, %v3582_v18 }
0x101a   : > { %v3584_v21 = vmul.f32 1.442695, %v3583_v17 }
0x101c   : > { %7637 = vpow2.f32 %v3584_v21 }
0x1029   : > { %v7638_v40 = vpop.eup %7637 }
0x102a   : > { %v3586_v32 = vsel %vm3579_vm6, %v7638_v40, 0.0 }
0x102b   : > { %3587 = vadd.xlane.f32.xlu0 %v3586_v32 }
0x10b4   : > { %v3588_v5 = vpop.xlane.xlu0 %3587 }
0x10b5   : > { %7639 = vrcp.f32 %v3588_v5 }
0x10c2   : > { %v7640_v27 = vpop.eup %7639 }
0x10c3   : > { %v3590_v30 = vmul.f32 %v7640_v27, %v7638_v40 }
0x10c5   : > { %3598 = vperm.xlu0 %7508, %v3590_v30   ;;  %3593 = vperm.xlu1 %7507, %v3590_v30  }
0x10c9   : > { %7509 = vset.pattern.permute.xlu1 %v7718_v38  ;;  %7510 = vset.pattern.permute.xlu0 %v7718_v38  ;;  %v6594_v38 = vld [vmem:[%s9245_s6 + $0x28] sm:$0xff] }
0x10ca   : > { %3604 = vperm.xlu1 %7509, %v3590_v30  }
0x1140   : > { %v3599_v46 = vpop.permute.xlu0 %3598  ;;  %v3594_v12 = vpop.permute.xlu1 %3593 }
0x1141   : > { %v3601_v1 = vmul.f32 %v3599_v46, %v8652_v3  ;;  %v3596_v56 = vmul.f32 %v3594_v12, %v8683_v14  ;;  %v6629_v3 = vld [vmem:[%s9244_s5 + $0x1] ss:$0 sm:$0xff] }
0x1143   : > { %v3602_v41 = vadd.f32 %v3601_v1, %v3596_v56 }
0x1145   : > { %v3605_v50 = vpop.permute.xlu1 %3604 }
0x1146   : > { %v3607_v20 = vmul.f32 %v3605_v50, %v8694_v28 }
0x1148   : > { %v3608_v22 = vadd.f32 %v3607_v20, %v3602_v41 }
0x114a   : > { %v8743_v29 = vadd.f32 %v3608_v22, %v7863_v10 }
0x114c   : > { %7267 = vmatmul.mubr.msk.f32.vlgmr.msra.gmra.mxu0 %vm702_vm0, %v8743_v29  ;;  %7278 = vmatmul.mubr.msk.f32.vlgmr.msra.gmra.mxu1 %vm702_vm0, %v8743_v29 }
0x114d   : > { %7282 = vmatprep.mubr.msk.f32.mxu0 %vm7715_vm5, %v7714_v31  ;;  %7297 = vmatprep.mubr.msk.f32.mxu1 %vm7715_vm5, %v7714_v31 }
0x120c   : > { %v3686_v36 = vpop.f32.mrf.mxu0  ;;  %v3762_v10 = vpop.f32.mrf.mxu1 }
0x120d   : > { %v8759_v8 = vadd.f32 %v6629_v3, %v3762_v10  ;;  %v8763_v60 = vadd.f32 %v6627_v25, %v3686_v36 }
0x120e   : > { %v7268_v13 = vpop.f32.mrf.mxu0  ;;  %v7279_v14 = vpop.f32.mrf.mxu1 }
0x120f   : > { %7281 = vmatpush3.xpose.msk.msra.mxu0 %vm608_vm1, %v8759_v8 }
0x1210   : > { %7285 = vmatprep.subr.mxu0 %v7714_v31 }
0x1212   : > { %7283 = vmatmul.mubr.msk.f32.vlgmr.msra.gmra.mxu0 %vm608_vm1, %v8763_v60 }
0x1213   : > { %7287 = vmatprep.mubr.msk.f32.mxu0 %vm7715_vm5, %v7714_v31 }
0x12d2   : > { %v3838_v6 = vpop.f32.mrf.mxu0 }
0x12d3   : > { %v3842_v57 = vmul.f32 0.35355338, %v3838_v6 }
0x12d4   : > { %v7284_v48 = vpop.f32.mrf.mxu0 }
0x12d5   : > { %v3847_v28 = vadd.f32 %v8772_v9, %v3842_v57 }
0x12d7   : > { %v3848_v51 = vsel %vm608_vm1, %v3847_v28, -inf }
0x12d8   : > { %3849 = vmax.xlane.f32.xlu1 %v3848_v51 }
0x12e9   : > { %3859 = vrot.lane.b32.xlu1 %v8759_v8, %s7702_s1 }
0x12ed   : > { %3937 = vrot.lane.b32.xlu1 %v8759_v8, %s7708_s23 }
0x1361   : > { %v3850_v47 = vpop.xlane.xlu1 %3849 }
0x1362   : > { %v3851_v54 = vsub.f32 %v3847_v28, %v3850_v47 }
0x1364   : > { %v3852_v49 = vmul.f32 1.442695, %v3851_v54 }
0x1365   : > { %v3860_v23 = vpop.permute.xlu1 %3859 }
0x1366   : > { %7641 = vpow2.f32 %v3852_v49  ;;  %7286 = vmatpush3.msra.mxu0 %v3860_v23  ;;  %v6595_v23 = vld [vmem:[%s9245_s6 + $0x30] sm:$0xff] }
0x1367   : > { %7290 = vmatprep.subr.mxu0 %v7714_v31 }
0x1369   : > { %v3938_v16 = vpop.permute.xlu1 %3937 }
0x1373   : > { %v7642_v61 = vpop.eup %7641 }
0x1374   : > { %v3854_v62 = vsel %vm608_vm1, %v7642_v61, 0.0 }
0x1375   : > { %3855 = vadd.xlane.f32.xlu0 %v3854_v62 }
0x138b   : > { %3935 = vrot.lane.b32.xlu0 %v8763_v60, %s7708_s23 }
0x13fe   : > { %v3856_v2 = vpop.xlane.xlu0 %3855 }
0x13ff   : > { %7643 = vrcp.f32 %v3856_v2 }
0x1402   : > { %v3936_v18 = vpop.permute.xlu0 %3935 }
0x140c   : > { %v7644_v7 = vpop.eup %7643 }
0x140d   : > { %v3858_v15 = vmul.f32 %v7644_v7, %v7642_v61 }
0x140f   : > { %7288 = vmatmul.mubr.msk.f32.vlgmr.msra.gmra.mxu0 %vm608_vm1, %v3858_v15 }
0x1410   : > { %7291 = vmatpush3.xpose.msk.msra.mxu0 %vm608_vm1, %v3938_v16  ;;  %7292 = vmatprep.mubr.msk.f32.mxu0 %vm7715_vm5, %v7714_v31 }
0x1411   : > { %7300 = vmatprep.subr.mxu0 %v7714_v31 }
0x1413   : > { %7293 = vmatmul.mubr.msk.f32.vlgmr.msra.gmra.mxu0 %vm608_vm1, %v3936_v18 }
0x1414   : > { %7302 = vmatprep.mubr.msk.f32.mxu0 %vm7715_vm5, %v7714_v31  ;;  %7301 = vmatpush3.msra.mxu0 %v6594_v38 }
0x1415   : > { %7310 = vmatprep.subr.mxu0 %v7714_v31 }
0x14cf   : > { %v3931_v17 = vpop.f32.mrf.mxu0 }
0x14d1   : > { %v7289_v21 = vpop.f32.mrf.mxu0 }
0x14d3   : > { %v4009_v40 = vpop.f32.mrf.mxu0 }
0x14d4   : > { %v4013_v32 = vmul.f32 0.35355338, %v4009_v40 }
0x14d5   : > { %v7294_v33 = vpop.f32.mrf.mxu0 }
0x14d6   : > { %v4014_v19 = vadd.f32 %v4013_v32, %v8772_v9 }
0x14d8   : > { %v4015_v5 = vsel %vm608_vm1, %v4014_v19, -inf }
0x14d9   : > { %4016 = vmax.xlane.f32.xlu1 %v4015_v5 }
0x14ea   : > { %4026 = vrot.lane.b32.xlu1 %v8759_v8, %s9266_s20 }
0x14ee   : > { %4248 = vrot.lane.b32.xlu1 %v8763_v60, %s9267_s30 }
0x1562   : > { %v4017_v27 = vpop.xlane.xlu1 %4016 }
0x1563   : > { %v4018_v30 = vsub.f32 %v4014_v19, %v4017_v27 }
0x1565   : > { %v4019_v34 = vmul.f32 1.442695, %v4018_v30  ;;  %v6596_v30 = vld [vmem:[%s9245_s6 + $0x38] sm:$0xff] }
0x1566   : > { %v4027_v11 = vpop.permute.xlu1 %4026 }
0x1567   : > { %7645 = vpow2.f32 %v4019_v34  ;;  %7296 = vmatpush3.msra.mxu1 %v4027_v11 }
0x1568   : > { %7305 = vmatprep.subr.mxu1 %v7714_v31 }
0x156a   : > { %v4249_v56 = vpop.permute.xlu1 %4248 }
0x1574   : > { %v7646_v58 = vpop.eup %7645 }
0x1575   : > { %v4021_v37 = vsel %vm608_vm1, %v7646_v58, 0.0 }
0x1576   : > { %4022 = vadd.xlane.f32.xlu0 %v4021_v37 }
0x158c   : > { %4250 = vrot.lane.b32.xlu0 %v8759_v8, %s9267_s30 }
0x15ff   : > { %v4023_v24 = vpop.xlane.xlu0 %4022 }
0x1600   : > { %7647 = vrcp.f32 %v4023_v24 }
0x1603   : > { %v4251_v12 = vpop.permute.xlu0 %4250 }
0x160d   : > { %v7648_v39 = vpop.eup %7647 }
0x160e   : > { %v4025_v44 = vmul.f32 %v7648_v39, %v7646_v58  ;;  %v6647_v39 = vld [vmem:[%s9246_s7 + $0x1] ss:$0 sm:$0xff] }
0x1610   : > { %7298 = vmatmul.mubr.msk.f32.vlgmr.msra.gmra.mxu1 %vm608_vm1, %v4025_v44 }
0x1611   : > { %7306 = vmatpush3.msra.mxu1 %v6593_v45  ;;  %7307 = vmatprep.mubr.msk.f32.mxu1 %vm7715_vm5, %v7714_v31 }
0x1612   : > { %7315 = vmatprep.subr.mxu1 %v7714_v31 }
0x1614   : > { %7308 = vmatmul.mubr.msk.f32.vlgmr.msra.gmra.mxu1 %vm608_vm1, %v3931_v17 }
0x1615   : > { %7317 = vmatprep.mubr.msk.f32.mxu1 %vm7715_vm5, %v7714_v31 }
0x16d0   : > { %v4098_v46 = vpop.f32.mrf.mxu1 }
0x16d1   : > { %7303 = vmatmul.mubr.msk.f32.vlgmr.msra.gmra.mxu0 %vm608_vm1, %v4098_v46 }
0x16d2   : > { %7311 = vmatpush3.xpose.msk.msra.mxu0 %vm608_vm1, %v4251_v12  ;;  %v7299_v1 = vpop.f32.mrf.mxu1  ;;  %7312 = vmatprep.mubr.msk.f32.mxu0 %vm7715_vm5, %v7714_v31 }
0x16d3   : > { %7320 = vmatprep.subr.mxu0 %v7714_v31 }
0x16d4   : > { %v4244_v50 = vpop.f32.mrf.mxu1 }
0x16d5   : > { %7313 = vmatmul.mubr.msk.f32.vlgmr.msra.gmra.mxu0 %vm608_vm1, %v4249_v56 }
0x16d6   : > { %v7309_v41 = vpop.f32.mrf.mxu1  ;;  %7322 = vmatprep.mubr.msk.f32.mxu0 %vm7715_vm5, %v7714_v31  ;;  %7321 = vmatpush3.msra.mxu0 %v6595_v23 }
0x16d7   : > { %7330 = vmatprep.subr.mxu0 %v7714_v31 }
0x1791   : > { %v4171_v20 = vpop.f32.mrf.mxu0 }
0x1792   : > { %v4245_v5 = vadd.f32 %v4244_v50, %v4171_v20 }
0x1793   : > { %v7304_v22 = vpop.f32.mrf.mxu0 }
0x1795   : > { %v4322_v3 = vpop.f32.mrf.mxu0 }
0x1796   : > { %v4326_v36 = vmul.f32 0.35355338, %v4322_v3 }
0x1797   : > { %v7314_v10 = vpop.f32.mrf.mxu0 }
0x1798   : > { %v4327_v25 = vadd.f32 %v4326_v36, %v8772_v9 }
0x179a   : > { %v4328_v13 = vsel %vm608_vm1, %v4327_v25, -inf }
0x179b   : > { %4329 = vmax.xlane.f32.xlu1 %v4328_v13 }
0x17ac   : > { %4339 = vrot.lane.b32.xlu1 %v8759_v8, %s9273_s18 }
0x17b0   : > { %4489 = vrot.lane.b32.xlu1 %v8763_v60, %s9274_s26 }
0x1824   : > { %v4330_v14 = vpop.xlane.xlu1 %4329 }
0x1825   : > { %v4331_v4 = vsub.f32 %v4327_v25, %v4330_v14  ;;  %v6598_v14 = vld [vmem:[%s9247_s8 + $0x2] sm:$0x3] }
0x1827   : > { %v4332_v6 = vmul.f32 1.442695, %v4331_v4 }
0x1828   : > { %v4340_v57 = vpop.permute.xlu1 %4339 }
0x1829   : > { %7649 = vpow2.f32 %v4332_v6  ;;  %7316 = vmatpush3.msra.mxu1 %v4340_v57  ;;  %v4756_v6 = vrot.slane %v6598_v14, %v7944_v43 }
0x182a   : > { %7325 = vmatprep.subr.mxu1 %v7714_v31 }
0x182c   : > { %v4490_v49 = vpop.permute.xlu1 %4489 }
0x1836   : > { %v7650_v48 = vpop.eup %7649 }
0x1837   : > { %v4334_v28 = vsel %vm608_vm1, %v7650_v48, 0.0 }
0x1838   : > { %4335 = vadd.xlane.f32.xlu0 %v4334_v28  ;;  %v4761_v28 = vrot.slane %v6598_v14, %v8383_v0  ;;  %v6655_v14 = vld [vmem:[%s9241_s2 + $0x58] sm:$0xff] }
0x184e   : > { %4491 = vrot.lane.b32.xlu0 %v8759_v8, %s9274_s26 }
0x18c1   : > { %v4336_v51 = vpop.xlane.xlu0 %4335 }
0x18c2   : > { %7651 = vrcp.f32 %v4336_v51 }
0x18c5   : > { %v4492_v60 = vpop.permute.xlu0 %4491 }
0x18cf   : > { %v7652_v47 = vpop.eup %7651 }
0x18d0   : > { %v4338_v54 = vmul.f32 %v7652_v47, %v7650_v48 }
0x18d2   : > { %7318 = vmatmul.mubr.msk.f32.vlgmr.msra.gmra.mxu1 %vm608_vm1, %v4338_v54 }
0x18d3   : > { %7326 = vmatpush3.xpose.msk.msra.mxu1 %vm608_vm1, %v4492_v60  ;;  %7327 = vmatprep.mubr.msk.f32.mxu1 %vm7715_vm5, %v7714_v31 }
0x18d4   : > { %7335 = vmatprep.subr.mxu1 %v7714_v31 }
0x18d6   : > { %7328 = vmatmul.mubr.msk.f32.vlgmr.msra.gmra.mxu1 %vm608_vm1, %v4490_v49 }
0x18d7   : > { %7337 = vmatprep.mubr.msk.f32.mxu1 %vm7715_vm5, %v7714_v31  ;;  %7336 = vmatpush3.msra.mxu1 %v6596_v30  ;;  %v6599_v30 = vld [vmem:[%s9248_s9 + $0x6] sm:$0x3] }
0x18d8   : > { %7351 = vmatprep.subr.mxu1 %v7714_v31 }
0x1992   : > { %v4411_v61 = vpop.f32.mrf.mxu1 }
0x1993   : > { %7323 = vmatmul.mubr.msk.f32.vlgmr.msra.gmra.mxu0 %vm608_vm1, %v4411_v61  ;;  %v6603_v61 = vld [vmem:[%s9249_s10 + $0x38] sm:$0xff] }
0x1994   : > { %v7319_v62 = vpop.f32.mrf.mxu1  ;;  %7332 = vmatprep.mubr.msk.f32.mxu0 %vm7715_vm5, %v7714_v31 }
0x1995   : > { %v6602_v62 = vld [vmem:[%s9249_s10 + $0x30] sm:$0xff] }
0x1996   : > { %v4563_v2 = vpop.f32.mrf.mxu1 }
0x1997   : > { %v4567_v7 = vmul.f32 0.35355338, %v4563_v2  ;;  %v6600_v2 = vld [vmem:[%s9249_s10 + $0x20] sm:$0xff] }
0x1998   : > { %v7329_v15 = vpop.f32.mrf.mxu1 }
0x1999   : > { %v4568_v16 = vadd.f32 %v4567_v7, %v8772_v9  ;;  %v6612_v7 = vld [vmem:[%s9251_s12 + $0x78] sm:$0xff]  ;;  %v6611_v15 = vld [vmem:[%s9251_s12 + $0x70] sm:$0xff] }
0x199b   : > { %v4569_v18 = vsel %vm608_vm1, %v4568_v16, -inf }
0x199c   : > { %4570 = vmax.xlane.f32.xlu1 %v4569_v18  ;;  %v6609_v18 = vld [vmem:[%s9251_s12 + $0x60] sm:$0xff] }
0x19ad   : > { %4580 = vrot.lane.b32.xlu1 %v8759_v8, %s9275_s22 }
0x1a25   : > { %v4571_v17 = vpop.xlane.xlu1 %4570 }
0x1a26   : > { %v4572_v21 = vsub.f32 %v4568_v16, %v4571_v17  ;;  %v6610_v16 = vld [vmem:[%s9251_s12 + $0x68] sm:$0xff]  ;;  %v6608_v17 = vld [vmem:[%s9251_s12 + $0x58] sm:$0xff] }
0x1a28   : > { %v4573_v40 = vmul.f32 1.442695, %v4572_v21 }
0x1a29   : > { %v4581_v32 = vpop.permute.xlu1 %4580 }
0x1a2a   : > { %7653 = vpow2.f32 %v4573_v40  ;;  %7331 = vmatpush3.msra.mxu0 %v4581_v32 }
0x1a2b   : > { %7340 = vmatprep.subr.mxu0 %v7714_v31 }
0x1a37   : > { %v7654_v33 = vpop.eup %7653 }
0x1a38   : > { %v4575_v19 = vsel %vm608_vm1, %v7654_v33, 0.0 }
0x1a39   : > { %4576 = vadd.xlane.f32.xlu0 %v4575_v19 }
0x1a53   : > { %v4484_v27 = vpop.f32.mrf.mxu0 }
0x1a54   : > { %v4488_v34 = vadd.f32 %v4484_v27, %v4245_v5 }
0x1a55   : > { %v7324_v8 = vpop.f32.mrf.mxu0 }
0x1a56   : > { %v4782_v8 = vrot.slane %v6599_v30, %v7944_v43 }
0x1ac2   : > { %v4577_v11 = vpop.xlane.xlu0 %4576 }
0x1ac3   : > { %7655 = vrcp.f32 %v4577_v11 }
0x1ad0   : > { %v7656_v58 = vpop.eup %7655 }
0x1ad1   : > { %v4579_v37 = vmul.f32 %v7656_v58, %v7654_v33 }
0x1ad3   : > { %7333 = vmatmul.mubr.msk.f32.vlgmr.msra.gmra.mxu0 %vm608_vm1, %v4579_v37  ;;  %v4787_v37 = vrot.slane %v6599_v30, %v8383_v0 }
0x1ad4   : > { %7348 = vmatprep.mubr.msk.f32.mxu0 %vm7715_vm5, %v7714_v31  ;;  %7341 = vmatpush3.msra.mxu0 %v6603_v61 }
0x1ad5   : > { %7342 = vmatprep.subr.mxu0 %v7714_v31 }
0x1ad6   : > { %7343 = vmatpush3.msra.mxu0 %v6602_v62 }
0x1ad7   : > { %7344 = vmatprep.subr.mxu0 %v7714_v31 }
0x1b93   : > { %v4652_v38 = vpop.f32.mrf.mxu0 }
0x1b94   : > { %7338 = vmatmul.mubr.msk.f32.vlgmr.msra.gmra.mxu1 %vm608_vm1, %v4652_v38 }
0x1b95   : > { %v7334_v24 = vpop.f32.mrf.mxu0  ;;  %7367 = vmatprep.mubr.msk.f32.mxu1 %vm7715_vm5, %v7714_v31  ;;  %7352 = vmatpush3.msra.mxu1 %v6612_v7 }
0x1b96   : > { %7353 = vmatprep.subr.mxu1 %v7714_v31 }
0x1b97   : > { %7354 = vmatpush3.msra.mxu1 %v6611_v15 }
0x1b98   : > { %7355 = vmatprep.subr.mxu1 %v7714_v31 }
0x1b99   : > { %7356 = vmatpush3.msra.mxu1 %v6610_v16 }
0x1b9a   : > { %7357 = vmatprep.subr.mxu1 %v7714_v31 }
0x1b9b   : > { %7358 = vmatpush3.msra.mxu1 %v6609_v18  ;;  %v6660_v18 = vld [vmem:[%s9243_s4 + $0x58] sm:$0xff] }
0x1b9c   : > { %7359 = vmatprep.subr.mxu1 %v7714_v31 }
0x1b9d   : > { %7360 = vmatpush3.msra.mxu1 %v6608_v17  ;;  %v6659_v17 = vld [vmem:[%s9243_s4 + $0x50] sm:$0xff] }
0x1b9e   : > { %7361 = vmatprep.subr.mxu1 %v7714_v31 }
0x1c54   : > { %v4725_v44 = vpop.f32.mrf.mxu1 }
0x1c55   : > { %v4729_v45 = vadd.f32 %v4725_v44, %v4488_v34  ;;  %v6606_v44 = vld [vmem:[%s9251_s12 + $0x48] sm:$0xff] }
0x1c56   : > { %v7339_v46 = vpop.f32.mrf.mxu1 }
0x1c57   : > { %v4736_v12 = vadd.f32 %v6647_v39, %v4729_v45  ;;  %v6607_v39 = vld [vmem:[%s9251_s12 + $0x50] sm:$0xff]  ;;  %v6605_v45 = vld [vmem:[%s9251_s12 + $0x40] sm:$0xff] }
0x1c58   : > { %7362 = vmatpush3.msra.mxu1 %v6607_v39  ;;  %v6648_v46 = vld [vmem:[%s9250_s11 + $0x1] ss:$0 sm:$0xff] }
0x1c59   : > { %v4737_v1 = vadd.f32 %v4736_v12, %v8743_v29  ;;  %7363 = vmatprep.subr.mxu1 %v7714_v31 }
0x1c5a   : > { %7364 = vmatpush3.msra.mxu1 %v6606_v44 }
0x1c5b   : > { %v4739_v56 = vsel %vm702_vm0, %v4737_v1, 0.0  ;;  %v4738_v50 = vmul.f32 %v4737_v1, %v4737_v1  ;;  %7365 = vmatprep.subr.mxu1 %v7714_v31 }
0x1c5c   : > { %4740 = vadd.xlane.f32.xlu0 %v4739_v56  ;;  %7366 = vmatpush3.msra.mxu1 %v6605_v45 }
0x1c5d   : > { %v4742_v41 = vsel %vm702_vm0, %v4738_v50, 0.0  ;;  %7392 = vmatprep.subr.mxu1 %v7714_v31 }
0x1c60   : > { %4743 = vadd.xlane.f32.xlu0 %v4742_v41  ;;  %v6650_v41 = vld [vmem:[%s9252_s13 + $0x1] ss:$0 sm:$0xff] }
0x1ce5   : > { %v4741_v20 = vpop.xlane.xlu0 %4740 }
0x1ce6   : > { %v4745_v22 = vmul.f32 0.03125, %v4741_v20 }
0x1ce8   : > { %v4747_v36 = vmul.f32 %v4745_v22, %v4745_v22  ;;  %v4749_v4 = vsub.f32 %v4737_v1, %v4745_v22 }
0x1ce9   : > { %v4744_v3 = vpop.xlane.xlu0 %4743 }
0x1cea   : > { %v4746_v10 = vmul.f32 0.03125, %v4744_v3 }
0x1cec   : > { %v4748_v25 = vsub.f32 %v4746_v10, %v4747_v36 }
0x1cee   : > { %v4750_v13 = vadd.f32 1e-05, %v4748_v25 }
0x1cf0   : > { %7657 = vrsqrt.f32 %v4750_v13 }
0x1cfd   : > { %v7658_v57 = vpop.eup %7657 }
0x1cfe   : > { %v4752_v48 = vmul.f32 %v7658_v57, %v4749_v4  ;;  %v6654_v4 = vld [vmem:[%s9241_s2 + $0x50] sm:$0xff]  ;;  %v6652_v57 = vld [vmem:[%s9241_s2 + $0x40] sm:$0xff] }
0x1d00   : > { %v4757_v51 = vmul.f32 %v4756_v6, %v4752_v48  ;;  %v6653_v6 = vld [vmem:[%s9241_s2 + $0x48] sm:$0xff] }
0x1d02   : > { %v4762_v47 = vadd.f32 %v4761_v28, %v4757_v51 }
0x1d04   : > { %v4763_v54 = vadd.f32 %v4762_v47, %v8743_v29  ;;  %v6601_v29 = vld [vmem:[%s9249_s10 + $0x28] sm:$0xff] }
0x1d05   : > { %7345 = vmatpush3.msra.mxu0 %v6601_v29 }
0x1d06   : > { %v4765_v60 = vsel %vm702_vm0, %v4763_v54, 0.0  ;;  %v4764_v49 = vmul.f32 %v4763_v54, %v4763_v54  ;;  %7346 = vmatprep.subr.mxu0 %v7714_v31 }
0x1d07   : > { %4766 = vadd.xlane.f32.xlu0 %v4765_v60  ;;  %7347 = vmatpush3.msra.mxu0 %v6600_v2 }
0x1d08   : > { %v4768_v23 = vsel %vm702_vm0, %v4764_v49, 0.0  ;;  %7370 = vmatprep.subr.mxu0 %v7714_v31 }
0x1d09   : > { %4769 = vadd.xlane.f32.xlu1 %v4768_v23  ;;  %v6614_v23 = vld [vmem:[%s9253_s14 + $0x6] sm:$0x3] }
0x1d0a   : > { %v4967_v62 = vrot.slane %v6614_v23, %v7944_v43  ;;  %v4972_v7 = vrot.slane %v6614_v23, %v8383_v0 }
0x1d90   : > { %v4767_v21 = vpop.xlane.xlu0 %4766 }
0x1d91   : > { %v4771_v40 = vmul.f32 0.03125, %v4767_v21  ;;  %v6658_v21 = vld [vmem:[%s9243_s4 + $0x48] sm:$0xff] }
0x1d92   : > { %v4770_v32 = vpop.xlane.xlu1 %4769 }
0x1d93   : > { %v4773_v33 = vmul.f32 %v4771_v40, %v4771_v40  ;;  %v4772_v19 = vmul.f32 0.03125, %v4770_v32  ;;  %v4775_v34 = vsub.f32 %v4763_v54, %v4771_v40  ;;  %v6657_v40 = vld [vmem:[%s9243_s4 + $0x40] sm:$0xff] }
0x1d95   : > { %v4774_v5 = vsub.f32 %v4772_v19, %v4773_v33  ;;  %v6686_v19 = vld [vmem:[%s9244_s5 + $0x2] ss:$0 sm:$0xff] }
0x1d97   : > { %v4776_v27 = vadd.f32 1e-05, %v4774_v5 }
0x1d99   : > { %7659 = vrsqrt.f32 %v4776_v27  ;;  %v6684_v27 = vld [vmem:[%s9242_s3 + $0x2] ss:$0 sm:$0xff] }
0x1da6   : > { %v7660_v11 = vpop.eup %7659 }
0x1da7   : > { %v4778_v58 = vmul.f32 %v7660_v11, %v4775_v34 }
0x1da9   : > { %v4783_v38 = vmul.f32 %v4782_v8, %v4778_v58 }
0x1dab   : > { %v4788_v24 = vadd.f32 %v4787_v37, %v4783_v38 }
0x1dad   : > { %7349 = vmatmul.mubr.msk.f32.vlgmr.msra.gmra.mxu0 %vm702_vm0, %v4788_v24 }
0x1dae   : > { %7378 = vmatprep.mubr.msk.f32.mxu0 %vm7715_vm5, %v7714_v31  ;;  %7371 = vmatpush3.msra.mxu0 %v6655_v14 }
0x1daf   : > { %7372 = vmatprep.subr.mxu0 %v7714_v31 }
0x1db0   : > { %7373 = vmatpush3.msra.mxu0 %v6654_v4 }
0x1db1   : > { %7374 = vmatprep.subr.mxu0 %v7714_v31 }
0x1db2   : > { %7375 = vmatpush3.msra.mxu0 %v6653_v6 }
0x1db3   : > { %7376 = vmatprep.subr.mxu0 %v7714_v31 }
0x1db4   : > { %7377 = vmatpush3.msra.mxu0 %v6652_v57 }
0x1db5   : > { %7381 = vmatprep.subr.mxu0 %v7714_v31 }
0x1e6d   : > { %v4864_v12 = vpop.f32.mrf.mxu0 }
0x1e6e   : > { %v4865_v1 = vadd.f32 %v6648_v46, %v4864_v12 }
0x1e6f   : > { %v7350_v56 = vpop.f32.mrf.mxu0 }
0x1e70   : > { %v4868_v50 = vmax.f32 %v4865_v1, 0.0 }
0x1e72   : > { %7368 = vmatmul.mubr.msk.f32.vlgmr.msra.gmra.mxu1 %vm3070_vm4, %v4868_v50 }
0x1e73   : > { %7394 = vmatprep.mubr.msk.f32.mxu1 %vm7715_vm5, %v7714_v31 }
0x1f32   : > { %v4944_v20 = vpop.f32.mrf.mxu1 }
0x1f33   : > { %v4945_v22 = vadd.f32 %v6650_v41, %v4944_v20 }
0x1f34   : > { %v7369_v3 = vpop.f32.mrf.mxu1 }
0x1f35   : > { %v4948_v36 = vadd.f32 %v4945_v22, %v4788_v24 }
0x1f37   : > { %v4950_v10 = vsel %vm702_vm0, %v4948_v36, 0.0  ;;  %v4949_v25 = vmul.f32 %v4948_v36, %v4948_v36 }
0x1f38   : > { %4951 = vadd.xlane.f32.xlu0 %v4950_v10 }
0x1f39   : > { %v4953_v13 = vsel %vm702_vm0, %v4949_v25, 0.0 }
0x1f3c   : > { %4954 = vadd.xlane.f32.xlu0 %v4953_v13 }
0x1fc1   : > { %v4952_v48 = vpop.xlane.xlu0 %4951 }
0x1fc2   : > { %v4956_v28 = vmul.f32 0.03125, %v4952_v48 }
0x1fc4   : > { %v4958_v47 = vmul.f32 %v4956_v28, %v4956_v28  ;;  %v4960_v61 = vsub.f32 %v4948_v36, %v4956_v28  ;;  %v6663_v28 = vld [vmem:[%s9245_s6 + $0x48] sm:$0xff] }
0x1fc5   : > { %v4955_v51 = vpop.xlane.xlu0 %4954 }
0x1fc6   : > { %v4957_v54 = vmul.f32 0.03125, %v4955_v51 }
0x1fc8   : > { %v4959_v60 = vsub.f32 %v4957_v54, %v4958_v47 }
0x1fca   : > { %v4961_v49 = vadd.f32 1e-05, %v4959_v60 }
0x1fcc   : > { %7661 = vrsqrt.f32 %v4961_v49  ;;  %v6662_v49 = vld [vmem:[%s9245_s6 + $0x40] sm:$0xff] }
0x1fd9   : > { %v7662_v29 = vpop.eup %7661 }
0x1fda   : > { %v4963_v2 = vmul.f32 %v7662_v29, %v4960_v61 }
0x1fdc   : > { %v4968_v15 = vmul.f32 %v4967_v62, %v4963_v2 }
0x1fde   : > { %v8967_v16 = vadd.f32 %v4972_v7, %v4968_v15 }
0x1fe0   : > { %7379 = vmatmul.mubr.msk.f32.vlgmr.msra.gmra.mxu0 %vm702_vm0, %v8967_v16 }
0x1fe1   : > { %7382 = vmatpush3.msra.mxu0 %v6660_v18  ;;  %7389 = vmatprep.mubr.msk.f32.mxu0 %vm7715_vm5, %v7714_v31 }
0x1fe2   : > { %7383 = vmatprep.subr.mxu0 %v7714_v31 }
0x1fe3   : > { %7384 = vmatpush3.msra.mxu0 %v6659_v17 }
0x1fe4   : > { %7385 = vmatprep.subr.mxu0 %v7714_v31 }
0x1fe5   : > { %7386 = vmatpush3.msra.mxu0 %v6658_v21 }
0x1fe6   : > { %7387 = vmatprep.subr.mxu0 %v7714_v31 }
0x1fe7   : > { %7388 = vmatpush3.msra.mxu0 %v6657_v40 }
0x1fe8   : > { %7390 = vmatmul.mubr.msk.f32.vlgmr.msra.gmra.mxu0 %vm702_vm0, %v8967_v16  ;;  %7402 = vmatprep.subr.mxu0 %v7714_v31 }
0x1fe9   : > { %7404 = vmatprep.mubr.msk.f32.mxu0 %vm7715_vm5, %v7714_v31 }
0x20a0   : > { %v5094_v32 = vpop.f32.mrf.mxu0 }
0x20a1   : > { %v9005_v8 = vadd.f32 %v6684_v27, %v5094_v32 }
0x20a2   : > { %v7380_v33 = vpop.f32.mrf.mxu0 }
0x20a8   : > { %v5170_v5 = vpop.f32.mrf.mxu0 }
0x20a9   : > { %v8999_v30 = vadd.f32 %v6686_v19, %v5170_v5 }
0x20aa   : > { %v7391_v34 = vpop.f32.mrf.mxu0 }
0x20ab   : > { %5341 = vrot.lane.b32.xlu0 %v8999_v30, %s7708_s23  ;;  %7393 = vmatpush3.xpose.msk.msra.mxu1 %vm608_vm1, %v8999_v30 }
0x20ac   : > { %7397 = vmatprep.subr.mxu1 %v7714_v31 }
0x20ae   : > { %7395 = vmatmul.mubr.msk.f32.vlgmr.msra.gmra.mxu1 %vm608_vm1, %v9005_v8 }
0x20af   : > { %5339 = vrot.lane.b32.xlu0 %v9005_v8, %s7708_s23  ;;  %7399 = vmatprep.mubr.msk.f32.mxu1 %vm7715_vm5, %v7714_v31  ;;  %s9276_s23 = smov 112  }
0x211d   : > { %v5342_v11 = vpop.permute.xlu0 %5341 }
0x211e   : > { %7403 = vmatpush3.xpose.msk.msra.mxu0 %vm608_vm1, %v5342_v11 }
0x211f   : > { %7412 = vmatprep.subr.mxu0 %v7714_v31 }
0x2121   : > { %v5340_v58 = vpop.permute.xlu0 %5339 }
0x2122   : > { %7405 = vmatmul.mubr.msk.f32.vlgmr.msra.gmra.mxu0 %vm608_vm1, %v5340_v58 }
0x2123   : > { %7414 = vmatprep.mubr.msk.f32.mxu0 %vm7715_vm5, %v7714_v31  ;;  %7413 = vmatpush3.msra.mxu0 %v6663_v28 }
0x2124   : > { %7422 = vmatprep.subr.mxu0 %v7714_v31 }
0x216e   : > { %v5246_v37 = vpop.f32.mrf.mxu1 }
0x216f   : > { %v5250_v38 = vmul.f32 0.35355338, %v5246_v37 }
0x2170   : > { %v7396_v24 = vpop.f32.mrf.mxu1 }
0x2171   : > { %v5251_v39 = vadd.f32 %v5250_v38, %v8772_v9 }
0x2173   : > { %v5252_v44 = vsel %vm608_vm1, %v5251_v39, -inf }
0x2174   : > { %5253 = vmax.xlane.f32.xlu1 %v5252_v44 }
0x2185   : > { %5263 = vrot.lane.b32.xlu1 %v8999_v30, %s7702_s1 }
0x21e2   : > { %v5413_v45 = vpop.f32.mrf.mxu0 }
0x21e3   : > { %v5417_v46 = vmul.f32 0.35355338, %v5413_v45 }
0x21e4   : > { %v7406_v12 = vpop.f32.mrf.mxu0 }
0x21e5   : > { %v5418_v1 = vadd.f32 %v5417_v46, %v8772_v9  ;;  %v6664_v46 = vld [vmem:[%s9245_s6 + $0x50] sm:$0xff] }
0x21e7   : > { %v5419_v56 = vsel %vm608_vm1, %v5418_v1, -inf }
0x21e8   : > { %5420 = vmax.xlane.f32.xlu0 %v5419_v56 }
0x21fd   : > { %v5254_v50 = vpop.xlane.xlu1 %5253 }
0x21fe   : > { %v5255_v41 = vsub.f32 %v5251_v39, %v5254_v50  ;;  %5654 = vrot.lane.b32.xlu0 %v8999_v30, %s9276_s23 }
0x2200   : > { %v5256_v20 = vmul.f32 1.442695, %v5255_v41 }
0x2201   : > { %v5264_v22 = vpop.permute.xlu1 %5263 }
0x2202   : > { %7663 = vpow2.f32 %v5256_v20  ;;  %7398 = vmatpush3.msra.mxu1 %v5264_v22 }
0x2203   : > { %7407 = vmatprep.subr.mxu1 %v7714_v31 }
0x220f   : > { %v7664_v3 = vpop.eup %7663 }
0x2210   : > { %v5258_v36 = vsel %vm608_vm1, %v7664_v3, 0.0 }
0x2211   : > { %5259 = vadd.xlane.f32.xlu1 %v5258_v36 }
0x2271   : > { %v5421_v10 = vpop.xlane.xlu0 %5420 }
0x2272   : > { %v5422_v25 = vsub.f32 %v5418_v1, %v5421_v10 }
0x2274   : > { %v5423_v13 = vmul.f32 1.442695, %v5422_v25 }
0x2275   : > { %v5655_v29 = vpop.permute.xlu0 %5654 }
0x2276   : > { %7665 = vpow2.f32 %v5423_v13 }
0x2283   : > { %v7666_v14 = vpop.eup %7665 }
0x2284   : > { %v5425_v4 = vsel %vm608_vm1, %v7666_v14, 0.0 }
0x2285   : > { %5426 = vadd.xlane.f32.xlu1 %v5425_v4 }
0x2296   : > { %5430 = vrot.lane.b32.xlu1 %v8999_v30, %s9277_s27  ;;  %s9280_s27 = sshll.u32 %s9282_s25, 3 }
0x2297   : > { %s560_s19 = scalar_lea.vmem %s9256_s17, %s9280_s27 }
0x229a   : > { %v5260_v6 = vpop.xlane.xlu1 %5259  ;;  %5652 = vrot.lane.b32.xlu1 %v9005_v8, %s9276_s23  ;;  %s9278_s23 = smov 64  }
0x229b   : > { %7667 = vrcp.f32 %v5260_v6  ;;  %v6665_v6 = vld [vmem:[%s9245_s6 + $0x58] sm:$0xff] }
0x22a8   : > { %v7668_v57 = vpop.eup %7667 }
0x22a9   : > { %v5262_v48 = vmul.f32 %v7668_v57, %v7664_v3 }
0x22ab   : > { %7400 = vmatmul.mubr.msk.f32.vlgmr.msra.gmra.mxu1 %vm608_vm1, %v5262_v48 }
0x22ac   : > { %7409 = vmatprep.mubr.msk.f32.mxu1 %vm7715_vm5, %v7714_v31 }
0x230e   : > { %v5427_v51 = vpop.xlane.xlu1 %5426 }
0x230f   : > { %7669 = vrcp.f32 %v5427_v51 }
0x2312   : > { %v5431_v47 = vpop.permute.xlu1 %5430 }
0x2313   : > { %7408 = vmatpush3.msra.mxu1 %v5431_v47 }
0x2314   : > { %7417 = vmatprep.subr.mxu1 %v7714_v31 }
0x2316   : > { %v5653_v7 = vpop.permute.xlu1 %5652 }
0x231c   : > { %v7670_v54 = vpop.eup %7669 }
0x231d   : > { %v5429_v60 = vmul.f32 %v7670_v54, %v7666_v14 }
0x231f   : > { %7410 = vmatmul.mubr.msk.f32.vlgmr.msra.gmra.mxu1 %vm608_vm1, %v5429_v60  ;;  %v6704_v60 = vld [vmem:[%s9246_s7 + $0x2] ss:$0 sm:$0xff] }
0x2320   : > { %7418 = vmatpush3.msra.mxu1 %v6662_v49  ;;  %7419 = vmatprep.mubr.msk.f32.mxu1 %vm7715_vm5, %v7714_v31 }
0x2321   : > { %7427 = vmatprep.subr.mxu1 %v7714_v31 }
0x236b   : > { %v5335_v23 = vpop.f32.mrf.mxu1 }
0x236c   : > { %7420 = vmatmul.mubr.msk.f32.vlgmr.msra.gmra.mxu1 %vm608_vm1, %v5335_v23 }
0x236d   : > { %v7401_v61 = vpop.f32.mrf.mxu1  ;;  %7429 = vmatprep.mubr.msk.f32.mxu1 %vm7715_vm5, %v7714_v31 }
0x23df   : > { %v5502_v62 = vpop.f32.mrf.mxu1 }
0x23e0   : > { %7415 = vmatmul.mubr.msk.f32.vlgmr.msra.gmra.mxu0 %vm608_vm1, %v5502_v62 }
0x23e1   : > { %7423 = vmatpush3.xpose.msk.msra.mxu0 %vm608_vm1, %v5655_v29  ;;  %v7411_v2 = vpop.f32.mrf.mxu1  ;;  %7424 = vmatprep.mubr.msk.f32.mxu0 %vm7715_vm5, %v7714_v31 }
0x23e2   : > { %7432 = vmatprep.subr.mxu0 %v7714_v31 }
0x23e4   : > { %7425 = vmatmul.mubr.msk.f32.vlgmr.msra.gmra.mxu0 %vm608_vm1, %v5653_v7 }
0x23e5   : > { %7434 = vmatprep.mubr.msk.f32.mxu0 %vm7715_vm5, %v7714_v31  ;;  %7433 = vmatpush3.msra.mxu0 %v6664_v46 }
0x23e6   : > { %7442 = vmatprep.subr.mxu0 %v7714_v31 }
0x242c   : > { %v5648_v15 = vpop.f32.mrf.mxu1 }
0x242e   : > { %v7421_v18 = vpop.f32.mrf.mxu1 }
0x24a0   : > { %v5575_v17 = vpop.f32.mrf.mxu0 }
0x24a1   : > { %v5649_v4 = vadd.f32 %v5648_v15, %v5575_v17 }
0x24a2   : > { %v7416_v21 = vpop.f32.mrf.mxu0 }
0x24a4   : > { %v5726_v40 = vpop.f32.mrf.mxu0 }
0x24a5   : > { %v5730_v32 = vmul.f32 0.35355338, %v5726_v40 }
0x24a6   : > { %v7426_v33 = vpop.f32.mrf.mxu0 }
0x24a7   : > { %v5731_v19 = vadd.f32 %v5730_v32, %v8772_v9 }
0x24a9   : > { %v5732_v5 = vsel %vm608_vm1, %v5731_v19, -inf }
0x24aa   : > { %5733 = vmax.xlane.f32.xlu1 %v5732_v5  ;;  %v6667_v5 = vld [vmem:[%s9247_s8 + $0x4] sm:$0x3] }
0x24bb   : > { %5743 = vrot.lane.b32.xlu1 %v8999_v30, %s9273_s18 }
0x24bf   : > { %5893 = vrot.lane.b32.xlu1 %v9005_v8, %s9274_s26 }
0x2533   : > { %v5734_v27 = vpop.xlane.xlu1 %5733 }
0x2534   : > { %v5735_v34 = vsub.f32 %v5731_v19, %v5734_v27 }
0x2536   : > { %v5736_v11 = vmul.f32 1.442695, %v5735_v34  ;;  %v6160_v34 = vrot.slane %v6667_v5, %v7944_v43 }
0x2537   : > { %v5744_v58 = vpop.permute.xlu1 %5743 }
0x2538   : > { %7671 = vpow2.f32 %v5736_v11  ;;  %7428 = vmatpush3.msra.mxu1 %v5744_v58 }
0x2539   : > { %7437 = vmatprep.subr.mxu1 %v7714_v31 }
0x253b   : > { %v5894_v45 = vpop.permute.xlu1 %5893 }
0x2545   : > { %v7672_v37 = vpop.eup %7671 }
0x2546   : > { %v5738_v38 = vsel %vm608_vm1, %v7672_v37, 0.0 }
0x2547   : > { %5739 = vadd.xlane.f32.xlu0 %v5738_v38 }
0x255d   : > { %5895 = vrot.lane.b32.xlu0 %v8999_v30, %s9274_s26 }
0x25d0   : > { %v5740_v24 = vpop.xlane.xlu0 %5739 }
0x25d1   : > { %7673 = vrcp.f32 %v5740_v24  ;;  %v7693_v24 = vld [vmem:[%s9252_s13] ss:$0 sm:$0xff] }
0x25d2   : > { %v3176_v46 = vadd.f32 %v7693_v24, %v8702_v55 }
0x25d4   : > { %v5896_v8 = vpop.permute.xlu0 %5895 }
0x25de   : > { %v7674_v39 = vpop.eup %7673 }
0x25df   : > { %v5742_v44 = vmul.f32 %v7674_v39, %v7672_v37  ;;  %v6165_v37 = vrot.slane %v6667_v5, %v8383_v0  ;;  %v3171_v39 = vadd.f32 %v7693_v24, %v8585_v52  ;;  %v3181_v52 = vadd.f32 %v7693_v24, %v8700_v59 }
0x25e1   : > { %7430 = vmatmul.mubr.msk.f32.vlgmr.msra.gmra.mxu1 %vm608_vm1, %v5742_v44  ;;  %v9135_v55 = vadd.f32 %v3181_v52, %v8565_v42  ;;  %v6679_v52 = vld [vmem:[%s9251_s12 + $0xa8] sm:$0xff] }
0x25e2   : > { %7438 = vmatpush3.xpose.msk.msra.mxu1 %vm608_vm1, %v5896_v8  ;;  %7439 = vmatprep.mubr.msk.f32.mxu1 %vm7715_vm5, %v7714_v31 }
0x25e3   : > { %7447 = vmatprep.subr.mxu1 %v7714_v31 }
0x25e5   : > { %7440 = vmatmul.mubr.msk.f32.vlgmr.msra.gmra.mxu1 %vm608_vm1, %v5894_v45  ;;  %v9120_v45 = vadd.f32 %v3171_v39, %v8502_v35 }
0x25e6   : > { %7449 = vmatprep.mubr.msk.f32.mxu1 %vm7715_vm5, %v7714_v31  ;;  %7448 = vmatpush3.msra.mxu1 %v6665_v6 }
0x25e7   : > { %7463 = vmatprep.subr.mxu1 %v7714_v31  ;;  %v3205_v35 = vsel %vm702_vm0, %v9120_v45, 0.0  ;;  %v3193_v59 = vmul.f32 %v9120_v45, %v9120_v45 }
0x26a1   : > { %v5815_v12 = vpop.f32.mrf.mxu1 }
0x26a2   : > { %7435 = vmatmul.mubr.msk.f32.vlgmr.msra.gmra.mxu0 %vm608_vm1, %v5815_v12 }
0x26a3   : > { %v7431_v1 = vpop.f32.mrf.mxu1  ;;  %7444 = vmatprep.mubr.msk.f32.mxu0 %vm7715_vm5, %v7714_v31 }
0x26a5   : > { %v5967_v56 = vpop.f32.mrf.mxu1 }
0x26a6   : > { %v5971_v50 = vmul.f32 0.35355338, %v5967_v56 }
0x26a7   : > { %v7441_v41 = vpop.f32.mrf.mxu1 }
0x26a8   : > { %v5972_v20 = vadd.f32 %v5971_v50, %v8772_v9  ;;  %v3211_v41 = vsel %vm702_vm0, %v9135_v55, 0.0 }
0x26aa   : > { %v5973_v22 = vsel %vm608_vm1, %v5972_v20, -inf }
0x26ab   : > { %5974 = vmax.xlane.f32.xlu1 %v5973_v22  ;;  %v3195_v22 = vmul.f32 %v9135_v55, %v9135_v55 }
0x26bc   : > { %5984 = vrot.lane.b32.xlu1 %v8999_v30, %s9275_s22  ;;  %s9279_s22 = smov 32  }
0x2734   : > { %v5975_v3 = vpop.xlane.xlu1 %5974 }
0x2735   : > { %v5976_v36 = vsub.f32 %v5972_v20, %v5975_v3  ;;  %v3229_v3 = vsel %vm702_vm0, %v3195_v22, 0.0 }
0x2737   : > { %v5977_v10 = vmul.f32 1.442695, %v5976_v36  ;;  %v6672_v36 = vld [vmem:[%s9249_s10 + $0x58] sm:$0xff] }
0x2738   : > { %v5985_v25 = vpop.permute.xlu1 %5984 }
0x2739   : > { %7675 = vpow2.f32 %v5977_v10  ;;  %7443 = vmatpush3.msra.mxu0 %v5985_v25  ;;  %v6671_v10 = vld [vmem:[%s9249_s10 + $0x50] sm:$0xff]  ;;  %v6670_v25 = vld [vmem:[%s9249_s10 + $0x48] sm:$0xff] }
0x273a   : > { %7452 = vmatprep.subr.mxu0 %v7714_v31 }
0x2746   : > { %v7676_v13 = vpop.eup %7675 }
0x2747   : > { %v5979_v14 = vsel %vm608_vm1, %v7676_v13, 0.0 }
0x2748   : > { %5980 = vadd.xlane.f32.xlu0 %v5979_v14 }
0x2762   : > { %v5888_v9 = vpop.f32.mrf.mxu0 }
0x2763   : > { %v5892_v57 = vadd.f32 %v5888_v9, %v5649_v4 }
0x2764   : > { %v7436_v30 = vpop.f32.mrf.mxu0 }
0x27d1   : > { %v5981_v48 = vpop.xlane.xlu0 %5980 }
0x27d2   : > { %7677 = vrcp.f32 %v5981_v48 }
0x27df   : > { %v7678_v28 = vpop.eup %7677 }
0x27e0   : > { %v5983_v51 = vmul.f32 %v7678_v28, %v7676_v13  ;;  %v6669_v13 = vld [vmem:[%s9249_s10 + $0x40] sm:$0xff] }
0x27e2   : > { %7445 = vmatmul.mubr.msk.f32.vlgmr.msra.gmra.mxu0 %vm608_vm1, %v5983_v51 }
0x27e3   : > { %7460 = vmatprep.mubr.msk.f32.mxu0 %vm7715_vm5, %v7714_v31  ;;  %7453 = vmatpush3.msra.mxu0 %v6672_v36  ;;  %v6675_v36 = vld [vmem:[%s9251_s12 + $0x88] sm:$0xff] }
0x27e4   : > { %7454 = vmatprep.subr.mxu0 %v7714_v31 }
0x27e5   : > { %7455 = vmatpush3.msra.mxu0 %v6671_v10  ;;  %v6674_v10 = vld [vmem:[%s9251_s12 + $0x80] sm:$0xff] }
0x27e6   : > { %7456 = vmatprep.subr.mxu0 %v7714_v31 }
0x27e7   : > { %7457 = vmatpush3.msra.mxu0 %v6670_v25  ;;  %v6705_v25 = vld [vmem:[%s9250_s11 + $0x2] ss:$0 sm:$0xff] }
0x27e8   : > { %7458 = vmatprep.subr.mxu0 %v7714_v31 }
0x27e9   : > { %7459 = vmatpush3.msra.mxu0 %v6669_v13 }
0x28a2   : > { %v6056_v47 = vpop.f32.mrf.mxu0 }
0x28a3   : > { %7450 = vmatmul.mubr.msk.f32.vlgmr.msra.gmra.mxu1 %vm608_vm1, %v6056_v47 }
0x28a4   : > { %v7446_v54 = vpop.f32.mrf.mxu0  ;;  %7479 = vmatprep.mubr.msk.f32.mxu1 %vm7715_vm5, %v7714_v31 }
0x2963   : > { %v6129_v49 = vpop.f32.mrf.mxu1 }
0x2964   : > { %v6133_v23 = vadd.f32 %v6129_v49, %v5892_v57 }
0x2965   : > { %v7451_v61 = vpop.f32.mrf.mxu1 }
0x2966   : > { %v6140_v62 = vadd.f32 %v6704_v60, %v6133_v23 }
0x2968   : > { %v6141_v29 = vadd.f32 %v6140_v62, %v8967_v16  ;;  %v6668_v62 = vld [vmem:[%s9248_s9 + $0xc] sm:$0x3] }
0x2969   : > { %v6191_v5 = vrot.slane %v6668_v62, %v8383_v0 }
0x296a   : > { %v6143_v2 = vsel %vm702_vm0, %v6141_v29, 0.0  ;;  %v6142_v7 = vmul.f32 %v6141_v29, %v6141_v29 }
0x296b   : > { %6144 = vadd.xlane.f32.xlu0 %v6143_v2 }
0x296c   : > { %v6146_v15 = vsel %vm702_vm0, %v6142_v7, 0.0 }
0x296f   : > { %6147 = vadd.xlane.f32.xlu0 %v6146_v15  ;;  %v6186_v15 = vrot.slane %v6668_v62, %v7944_v43 }
0x29f4   : > { %v6145_v18 = vpop.xlane.xlu0 %6144 }
0x29f5   : > { %v6149_v17 = vmul.f32 0.03125, %v6145_v18 }
0x29f7   : > { %v6151_v40 = vmul.f32 %v6149_v17, %v6149_v17  ;;  %v6153_v27 = vsub.f32 %v6141_v29, %v6149_v17 }
0x29f8   : > { %v6148_v21 = vpop.xlane.xlu0 %6147 }
0x29f9   : > { %v6150_v32 = vmul.f32 0.03125, %v6148_v21 }
0x29fb   : > { %v6152_v33 = vsub.f32 %v6150_v32, %v6151_v40 }
0x29fd   : > { %v6154_v19 = vadd.f32 1e-05, %v6152_v33 }
0x29ff   : > { %7679 = vrsqrt.f32 %v6154_v19 }
0x2a0c   : > { %v7680_v11 = vpop.eup %7679 }
0x2a0d   : > { %v6156_v58 = vmul.f32 %v7680_v11, %v6153_v27 }
0x2a0f   : > { %v6161_v38 = vmul.f32 %v6160_v34, %v6156_v58 }
0x2a11   : > { %v6166_v44 = vadd.f32 %v6165_v37, %v6161_v38 }
0x2a13   : > { %v9117_v8 = vadd.f32 %v6166_v44, %v8967_v16  ;;  %v9130_v16 = vadd.f32 %v3176_v46, %v8562_v26  ;;  %v3223_v26 = vsel %vm702_vm0, %v3193_v59, 0.0  ;;  %v6681_v46 = vld [vmem:[%s9251_s12 + $0xb8] sm:$0xff] }
0x2a14   : > { %7464 = vmatpush3.msra.mxu1 %v6681_v46  ;;  %v6677_v59 = vld [vmem:[%s9251_s12 + $0x98] sm:$0xff] }
0x2a15   : > { %v6169_v12 = vsel %vm702_vm0, %v9117_v8, 0.0  ;;  %v6168_v1 = vmul.f32 %v9117_v8, %v9117_v8  ;;  %v3208_v50 = vsel %vm702_vm0, %v9130_v16, 0.0  ;;  %v3194_v20 = vmul.f32 %v9130_v16, %v9130_v16  ;;  %7465 = vmatprep.subr.mxu1 %v7714_v31 }
0x2a16   : > { %6170 = vadd.xlane.f32.xlu0 %v6169_v12  ;;  %v6680_v12 = vld [vmem:[%s9251_s12 + $0xb0] sm:$0xff] }
0x2a17   : > { %v6172_v56 = vsel %vm702_vm0, %v6168_v1, 0.0  ;;  %v3226_v42 = vsel %vm702_vm0, %v3194_v20, 0.0  ;;  %7466 = vmatpush3.msra.mxu1 %v6680_v12 }
0x2a18   : > { %6173 = vadd.xlane.f32.xlu1 %v6172_v56  ;;  %7467 = vmatprep.subr.mxu1 %v7714_v31 }
0x2a19   : > { %7468 = vmatpush3.msra.mxu1 %v6679_v52 }
0x2a1a   : > { %3206 = vadd.xlane.f32.xlu0 %v3205_v35  ;;  %7469 = vmatprep.subr.mxu1 %v7714_v31 }
0x2a1e   : > { %3209 = vadd.xlane.f32.xlu0 %v3208_v50  ;;  %v6678_v50 = vld [vmem:[%s9251_s12 + $0xa0] sm:$0xff] }
0x2a1f   : > { %7470 = vmatpush3.msra.mxu1 %v6678_v50 }
0x2a20   : > { %7471 = vmatprep.subr.mxu1 %v7714_v31 }
0x2a21   : > { %7472 = vmatpush3.msra.mxu1 %v6677_v59 }
0x2a22   : > { %3212 = vadd.xlane.f32.xlu0 %v3211_v41  ;;  %7473 = vmatprep.subr.mxu1 %v7714_v31 }
0x2a26   : > { %3224 = vadd.xlane.f32.xlu0 %v3223_v26 }
0x2a2a   : > { %3227 = vadd.xlane.f32.xlu0 %v3226_v42 }
0x2a2e   : > { %3230 = vadd.xlane.f32.xlu0 %v3229_v3  ;;  %v6676_v3 = vld [vmem:[%s9251_s12 + $0x90] sm:$0xff] }
0x2a2f   : > { %7474 = vmatpush3.msra.mxu1 %v6676_v3 }
0x2a30   : > { %7475 = vmatprep.subr.mxu1 %v7714_v31 }
0x2a31   : > { %7476 = vmatpush3.msra.mxu1 %v6675_v36 }
0x2a32   : > { %7477 = vmatprep.subr.mxu1 %v7714_v31 }
0x2a33   : > { %7478 = vmatpush3.msra.mxu1 %v6674_v10 }
0x2a9f   : > { %v6171_v14 = vpop.xlane.xlu0 %6170 }
0x2aa0   : > { %v6175_v4 = vmul.f32 0.03125, %v6171_v14 }
0x2aa1   : > { %v6174_v9 = vpop.xlane.xlu1 %6173 }
0x2aa2   : > { %v6177_v6 = vmul.f32 %v6175_v4, %v6175_v4  ;;  %v6176_v57 = vmul.f32 0.03125, %v6174_v9  ;;  %v6179_v2 = vsub.f32 %v9117_v8, %v6175_v4 }
0x2aa3   : > { %v3207_v30 = vpop.xlane.xlu0 %3206 }
0x2aa4   : > { %v6178_v48 = vsub.f32 %v6176_v57, %v6177_v6  ;;  %v3235_v54 = vmul.f32 0.03125, %v3207_v30  ;;  %v6707_v6 = vld [vmem:[%s9252_s13 + $0x2] ss:$0 sm:$0xff] }
0x2aa6   : > { %v6180_v28 = vadd.f32 1e-05, %v6178_v48  ;;  %v3247_v49 = vmul.f32 %v3235_v54, %v3235_v54  ;;  %v3259_v44 = vsub.f32 %v9120_v45, %v3235_v54 }
0x2aa7   : > { %v3210_v51 = vpop.xlane.xlu0 %3209 }
0x2aa8   : > { %7681 = vrsqrt.f32 %v6180_v28  ;;  %v3236_v23 = vmul.f32 0.03125, %v3210_v51 }
0x2aaa   : > { %v3248_v18 = vmul.f32 %v3236_v23, %v3236_v23  ;;  %v3260_v56 = vsub.f32 %v9130_v16, %v3236_v23 }
0x2aab   : > { %v3213_v47 = vpop.xlane.xlu0 %3212 }
0x2aac   : > { %v3237_v17 = vmul.f32 0.03125, %v3213_v47 }
0x2aae   : > { %v3249_v34 = vmul.f32 %v3237_v17, %v3237_v17  ;;  %v3261_v41 = vsub.f32 %v9135_v55, %v3237_v17 }
0x2aaf   : > { %v3225_v60 = vpop.xlane.xlu0 %3224 }
0x2ab0   : > { %v3241_v61 = vmul.f32 0.03125, %v3225_v60 }
0x2ab2   : > { %v3253_v29 = vsub.f32 %v3241_v61, %v3247_v49 }
0x2ab3   : > { %v3228_v7 = vpop.xlane.xlu0 %3227 }
0x2ab4   : > { %v3265_v21 = vadd.f32 1e-05, %v3253_v29  ;;  %v3242_v40 = vmul.f32 0.03125, %v3228_v7 }
0x2ab5   : > { %v7682_v32 = vpop.eup %7681 }
0x2ab6   : > { %7683 = vrsqrt.f32 %v3265_v21  ;;  %v3254_v33 = vsub.f32 %v3242_v40, %v3248_v18  ;;  %v6182_v19 = vmul.f32 %v7682_v32, %v6179_v2 }
0x2ab7   : > { %v3231_v27 = vpop.xlane.xlu0 %3230 }
0x2ab8   : > { %v3266_v11 = vadd.f32 1e-05, %v3254_v33  ;;  %v3243_v58 = vmul.f32 0.03125, %v3231_v27  ;;  %v6187_v37 = vmul.f32 %v6186_v15, %v6182_v19  ;;  %v6683_v15 = vld [vmem:[%s9253_s14 + $0xc] sm:$0x3] }
0x2ab9   : > { %v6376_v21 = vrot.slane %v6683_v15, %v8383_v0 }
0x2aba   : > { %7685 = vrsqrt.f32 %v3266_v11  ;;  %v3255_v38 = vsub.f32 %v3243_v58, %v3249_v34  ;;  %v6192_v24 = vadd.f32 %v6191_v5, %v6187_v37 }
0x2abc   : > { %v3267_v39 = vadd.f32 1e-05, %v3255_v38  ;;  %7461 = vmatmul.mubr.msk.f32.vlgmr.msra.gmra.mxu0 %vm702_vm0, %v6192_v24 }
0x2abe   : > { %7687 = vrsqrt.f32 %v3267_v39 }
0x2ac3   : > { %v7684_v8 = vpop.eup %7683 }
0x2ac4   : > { %v3277_v1 = vmul.f32 %v7684_v8, %v3259_v44 }
0x2ac6   : > { %v3283_v54 = vmul.f32 %v3277_v1, %v8658_v53 }
0x2ac7   : > { %v7686_v45 = vpop.eup %7685 }
0x2ac8   : > { %v3278_v35 = vmul.f32 %v7686_v45, %v3260_v56  ;;  %v3289_v60 = vadd.f32 %v3283_v54, %v8666_v63 }
0x2aca   : > { %v3284_v16 = vmul.f32 %v3278_v35, %v8658_v53 }
0x2acb   : > { %v7688_v26 = vpop.eup %7687 }
0x2acc   : > { %v3290_v20 = vadd.f32 %v3284_v16, %v8666_v63  ;;  %v3279_v42 = vmul.f32 %v7688_v26, %v3261_v41 }
0x2ace   : > { %6383 = vrot.lane.b32.xlu1 %v3290_v20, %s9278_s23  ;;  %v3285_v55 = vmul.f32 %v3279_v42, %v8658_v53  ;;  %v6371_v53 = vrot.slane %v6683_v15, %v7944_v43 }
0x2ad0   : > { %v3291_v22 = vadd.f32 %v3285_v55, %v8666_v63 }
0x2ad2   : > { %6387 = vrot.lane.b32.xlu1 %v3291_v22, %s7702_s1 }
0x2b40   : > { %v6384_v40 = vpop.permute.xlu1 %6383 }
0x2b44   : > { %v6388_v27 = vpop.permute.xlu1 %6387 }
0x2b7c   : > { %v6268_v13 = vpop.f32.mrf.mxu0 }
0x2b7d   : > { %v6269_v14 = vadd.f32 %v6705_v25, %v6268_v13 }
0x2b7e   : > { %v7462_v4 = vpop.f32.mrf.mxu0 }
0x2b7f   : > { %v6272_v9 = vmax.f32 %v6269_v14, 0.0 }
0x2b81   : > { %7480 = vmatmul.mubr.msk.f32.vlgmr.msra.gmra.mxu1 %vm3070_vm4, %v6272_v9 }
0x2c41   : > { %v6348_v57 = vpop.f32.mrf.mxu1 }
0x2c42   : > { %v6349_v30 = vadd.f32 %v6707_v6, %v6348_v57 }
0x2c43   : > { %v7481_v48 = vpop.f32.mrf.mxu1 }
0x2c44   : > { %v6352_v28 = vadd.f32 %v6349_v30, %v6192_v24 }
0x2c46   : > { %v6354_v31 = vsel %vm702_vm0, %v6352_v28, 0.0  ;;  %v6353_v51 = vmul.f32 %v6352_v28, %v6352_v28 }
0x2c47   : > { %6355 = vadd.xlane.f32.xlu0 %v6354_v31 }
0x2c48   : > { %v6357_v47 = vsel %vm702_vm0, %v6353_v51, 0.0 }
0x2c4b   : > { %6358 = vadd.xlane.f32.xlu0 %v6357_v47 }
0x2c61   : > { %6379 = vrot.lane.b32.xlu0 %v3289_v60, %s9279_s22 }
0x2cd0   : > { %v6356_v49 = vpop.xlane.xlu0 %6355 }
0x2cd1   : > { %v6360_v23 = vmul.f32 0.03125, %v6356_v49 }
0x2cd3   : > { %v6362_v62 = vmul.f32 %v6360_v23, %v6360_v23  ;;  %v6364_v18 = vsub.f32 %v6352_v28, %v6360_v23 }
0x2cd4   : > { %v6359_v61 = vpop.xlane.xlu0 %6358 }
0x2cd5   : > { %v6361_v29 = vmul.f32 0.03125, %v6359_v61 }
0x2cd7   : > { %v6363_v2 = vsub.f32 %v6361_v29, %v6362_v62 }
0x2cd8   : > { %v6380_v19 = vpop.permute.xlu0 %6379 }
0x2cd9   : > { %v6365_v7 = vadd.f32 1e-05, %v6363_v2 }
0x2cdb   : > { %7689 = vrsqrt.f32 %v6365_v7 }
0x2ce8   : > { %v7690_v17 = vpop.eup %7689 }
0x2ce9   : > { %v6367_v63 = vmul.f32 %v7690_v17, %v6364_v18 }
0x2ceb   : > { %v6372_v32 = vmul.f32 %v6371_v53, %v6367_v63 }
0x2ced   : > { %v6377_v33 = vadd.f32 %v6376_v21, %v6372_v32 }
0x2cef   : > { %v6390_v5 = vsel %vm702_vm0, %v6377_v33, %v6380_v19 }
0x2cf0   : > { %v6391_v34 = vsel %vm3070_vm4, %v6390_v5, %v6384_v40 }
0x2cf1   : > { %v6393_v43 = vsel %vm6392_vm7, %v6391_v34, %v6388_v27 }
0x2cf2   : > { %6394 = vst [vmem:[%s560_s19] sm:$0xff] %v6393_v43 }
0x2cf3 PF: > { %s27_s24 = sadd.s32 1, %s7700_s24  }
0x2cf4   : > { %p24_p4 = scmp.ge.s32.totalorder %s27_s24, 4  }
0x2cf6   :  { %26 = sbr.rel (!%p24_p4) target bundleno = 3 (0x3), region = 149 }

</bundles_post_ra>
